<compile_context>
chip_gen: v5e
topology: v5e:2x2
jax: 0.10.0
libtpu: 0.0.40
codegen_flags: <defaults>
</compile_context>

<pallas_src>
import functools

import jax
import jax.numpy as jnp
from jax.experimental import pallas as pl
from jax.experimental.pallas import tpu as pltpu

LANE = 128       # TPU lane width; hidden feature dims are padded to this once.
NEG_BIG = -1e30  # bias fill for padded logit columns -> exp underflows to 0


def _round_up(n, m):
    return (n + m - 1) // m * m


def mlp_kernel(x_ref, w1_ref, w_ref, b_ref, o_ref, *, out_dim):
    x = x_ref[...]                                                   # (tb, 3)

    # fc1..fc3 + ReLU (zero-padded weight rows/cols are numerically inert).
    h = jnp.maximum(
        jnp.dot(x, w1_ref[...], preferred_element_type=jnp.float32) + b_ref[0], 0.0)
    h = jnp.maximum(
        jnp.dot(h, w_ref[0], preferred_element_type=jnp.float32) + b_ref[1], 0.0)
    h = jnp.maximum(
        jnp.dot(h, w_ref[1], preferred_element_type=jnp.float32) + b_ref[2], 0.0)

    # fc4 + softmax.  Padded logit columns carry a -1e30 bias, so exp()
    # underflows to exactly 0 and no explicit mask is needed.
    logits = jnp.dot(h, w_ref[2], preferred_element_type=jnp.float32) + b_ref[3]
    m = jnp.max(logits, axis=-1, keepdims=True)
    e = jnp.exp(logits - m)
    denom = jnp.sum(e, axis=-1, keepdims=True)
    probs = e / denom                                # exact normalization
    o_ref[...] = probs[:, :out_dim].astype(o_ref.dtype)


def prepare_params(params):
    """Pad/stack the weights ONCE (call at init, reuse across forward calls)."""
    (w1, b1), (w2, b2), (w3, b3), (w4, b4) = params
    out_dim = w4.shape[1]

    def pad_w(w):
        return jnp.pad(w, ((0, LANE - w.shape[0]), (0, LANE - w.shape[1])))

    def pad_b(b, fill=0.0):
        b = b.reshape(1, -1)
        return jnp.pad(b, ((0, 0), (0, LANE - b.shape[1])), constant_values=fill)

    w1_p = jnp.pad(w1, ((0, 0), (0, LANE - w1.shape[1])))            # (3, 128)
    w_stack = jnp.stack([pad_w(w2), pad_w(w3), pad_w(w4)])           # (3, 128, 128)
    b_stack = jnp.stack([pad_b(b1), pad_b(b2), pad_b(b3),
                         pad_b(b4, NEG_BIG)])                        # (4, 1, 128)
    return w1_p, w_stack, b_stack, out_dim


def mlp_forward(x, prepared, *, tb=1024):
    w1_p, w_stack, b_stack, out_dim = prepared
    B, in_dim = x.shape

    b_pad = _round_up(B, 8)
    if b_pad <= tb:
        tb = b_pad                       # single grid step for small/medium B
    else:
        b_pad = _round_up(B, tb)
    # NOTE(v7x): for very large B, b_pad // tb being even lets the "parallel"
    # batch axis shard across both TensorCores; this knob is inert on v5e/v6e.
    grid = (b_pad // tb,)

    x_p = x if b_pad == B else jnp.pad(x, ((0, b_pad - B), (0, 0)))

    out = pl.pallas_call(
        functools.partial(mlp_kernel, out_dim=out_dim),
        out_shape=jax.ShapeDtypeStruct((b_pad, out_dim), jnp.float32),
        grid=grid,
        in_specs=[
            pl.BlockSpec((tb, in_dim), lambda i: (i, 0)),        # x: batch-tiled, natural width
            pl.BlockSpec(w1_p.shape, lambda i: (0, 0)),          # fc1 weight (3,128), resident
            pl.BlockSpec(w_stack.shape, lambda i: (0, 0, 0)),    # fc2..fc4 weights, resident
            pl.BlockSpec(b_stack.shape, lambda i: (0, 0, 0)),    # biases, resident
        ],
        out_specs=pl.BlockSpec((tb, out_dim), lambda i: (i, 0)),  # true-width output
        compiler_params=pltpu.CompilerParams(
            dimension_semantics=("parallel",)),
    )(x_p, w1_p, w_stack, b_stack)

    return out if b_pad == B else out[:B]


def init_linear(key, fan_in, fan_out):
    # PyTorch nn.Linear default init: U(-1/sqrt(fan_in), 1/sqrt(fan_in)).
    kw, kb = jax.random.split(key)
    bound = 1.0 / jnp.sqrt(jnp.float32(fan_in))
    # Stored as (in, out) so the kernel computes x @ W + b.
    w = jax.random.uniform(kw, (fan_in, fan_out), jnp.float32, -bound, bound)
    b = jax.random.uniform(kb, (1, fan_out), jnp.float32, -bound, bound)
    return w, b


if __name__ == "__main__":
    key = jax.random.PRNGKey(0)
    k_x, k1, k2, k3, k4 = jax.random.split(key, 5)

    B = 512
    x = jax.random.normal(k_x, (B, 3), jnp.float32)

    params = (
        init_linear(k1, 3, 30),
        init_linear(k2, 30, 50),
        init_linear(k3, 50, 80),
        init_linear(k4, 80, 2),
    )
    prepared = prepare_params(params)   # one-time padding / stacking

    out = mlp_forward(x, prepared)
    out = jax.block_until_ready(out)

    # Plain-JAX reference for correctness.
    def ref(x, params):
        h = x
        for i, (w, b) in enumerate(params):
            h = h @ w + b
            if i < 3:
                h = jnp.maximum(h, 0.0)
        return jax.nn.softmax(h, axis=1)

    expected = ref(x, params)
    assert out.shape == (B, 2)
    assert jnp.allclose(out, expected, atol=1e-3, rtol=1e-3)
    assert jnp.allclose(jnp.sum(out, axis=1), 1.0, atol=1e-5)

    print("KERNEL_OK")
</pallas_src>

<mosaic_0001>
module attributes {stable_mosaic.version = 11 : i64} {
  func.func @mlp_kernel(%arg0: i32, %arg1: memref<512x3xf32, #tpu.memory_space<vmem>>, %arg2: memref<3x128xf32, #tpu.memory_space<vmem>>, %arg3: memref<3x128x128xf32, #tpu.memory_space<vmem>>, %arg4: memref<4x1x128xf32, #tpu.memory_space<vmem>>, %arg5: memref<512x2xf32, #tpu.memory_space<vmem>>) attributes {dimension_semantics = [#tpu.dimension_semantics<parallel>], iteration_bounds = array<i64: 1>, scalar_prefetch = 0 : i64, scratch_operands = 0 : i64, tpu.core_type = #tpu.core_type<tc>, window_params = [{transform_indices = @transform_0, window_bounds = array<i64: 512, 3>}, {pipeline_mode = #tpu.pipeline_mode<synchronous>, transform_indices = @transform_1, window_bounds = array<i64: 3, 128>}, {pipeline_mode = #tpu.pipeline_mode<synchronous>, transform_indices = @transform_2, window_bounds = array<i64: 3, 128, 128>}, {pipeline_mode = #tpu.pipeline_mode<synchronous>, transform_indices = @transform_3, window_bounds = array<i64: 4, 1, 128>}, {transform_indices = @transform_4, window_bounds = array<i64: 512, 2>}]} {
    %c0 = arith.constant 0 : index
    %c0_0 = arith.constant 0 : index
    %0 = vector.load %arg1[%c0, %c0_0] : memref<512x3xf32, #tpu.memory_space<vmem>>, vector<512x3xf32>
    %c0_1 = arith.constant 0 : index
    %c0_2 = arith.constant 0 : index
    %1 = vector.load %arg2[%c0_1, %c0_2] : memref<3x128xf32, #tpu.memory_space<vmem>>, vector<3x128xf32>
    %cst = arith.constant dense<0.000000e+00> : vector<512x128xf32>
    %2 = tpu.matmul %0, %1, %cst {dimension_numbers = #tpu.dot_dimension_numbers<[1], [0], [0], [1], [0, 0, 1, 1], [], []>} : vector<512x3xf32>, vector<3x128xf32>, vector<512x128xf32> -> vector<512x128xf32>
    %c0_3 = arith.constant 0 : index
    %c0_4 = arith.constant 0 : index
    %c0_5 = arith.constant 0 : index
    %3 = vector.load %arg4[%c0_3, %c0_4, %c0_5] : memref<4x1x128xf32, #tpu.memory_space<vmem>>, vector<1x1x128xf32>
    %4 = vector.shape_cast %3 : vector<1x1x128xf32> to vector<1x128xf32>
    %5 = vector.broadcast %4 : vector<1x128xf32> to vector<512x128xf32>
    %6 = arith.addf %2, %5 : vector<512x128xf32>
    %cst_6 = arith.constant 0.000000e+00 : f32
    %7 = vector.broadcast %cst_6 : f32 to vector<512x128xf32>
    %8 = arith.maximumf %6, %7 : vector<512x128xf32>
    %c0_7 = arith.constant 0 : index
    %c0_8 = arith.constant 0 : index
    %c0_9 = arith.constant 0 : index
    %9 = vector.load %arg3[%c0_7, %c0_8, %c0_9] : memref<3x128x128xf32, #tpu.memory_space<vmem>>, vector<1x128x128xf32>
    %10 = vector.shape_cast %9 : vector<1x128x128xf32> to vector<128x128xf32>
    %cst_10 = arith.constant dense<0.000000e+00> : vector<512x128xf32>
    %11 = tpu.matmul %8, %10, %cst_10 {dimension_numbers = #tpu.dot_dimension_numbers<[1], [0], [0], [1], [0, 0, 1, 1], [], []>} : vector<512x128xf32>, vector<128x128xf32>, vector<512x128xf32> -> vector<512x128xf32>
    %c1 = arith.constant 1 : index
    %c0_11 = arith.constant 0 : index
    %c0_12 = arith.constant 0 : index
    %12 = vector.load %arg4[%c1, %c0_11, %c0_12] : memref<4x1x128xf32, #tpu.memory_space<vmem>>, vector<1x1x128xf32>
    %13 = vector.shape_cast %12 : vector<1x1x128xf32> to vector<1x128xf32>
    %14 = vector.broadcast %13 : vector<1x128xf32> to vector<512x128xf32>
    %15 = arith.addf %11, %14 : vector<512x128xf32>
    %cst_13 = arith.constant 0.000000e+00 : f32
    %16 = vector.broadcast %cst_13 : f32 to vector<512x128xf32>
    %17 = arith.maximumf %15, %16 : vector<512x128xf32>
    %c1_14 = arith.constant 1 : index
    %c0_15 = arith.constant 0 : index
    %c0_16 = arith.constant 0 : index
    %18 = vector.load %arg3[%c1_14, %c0_15, %c0_16] : memref<3x128x128xf32, #tpu.memory_space<vmem>>, vector<1x128x128xf32>
    %19 = vector.shape_cast %18 : vector<1x128x128xf32> to vector<128x128xf32>
    %cst_17 = arith.constant dense<0.000000e+00> : vector<512x128xf32>
    %20 = tpu.matmul %17, %19, %cst_17 {dimension_numbers = #tpu.dot_dimension_numbers<[1], [0], [0], [1], [0, 0, 1, 1], [], []>} : vector<512x128xf32>, vector<128x128xf32>, vector<512x128xf32> -> vector<512x128xf32>
    %c2 = arith.constant 2 : index
    %c0_18 = arith.constant 0 : index
    %c0_19 = arith.constant 0 : index
    %21 = vector.load %arg4[%c2, %c0_18, %c0_19] : memref<4x1x128xf32, #tpu.memory_space<vmem>>, vector<1x1x128xf32>
    %22 = vector.shape_cast %21 : vector<1x1x128xf32> to vector<1x128xf32>
    %23 = vector.broadcast %22 : vector<1x128xf32> to vector<512x128xf32>
    %24 = arith.addf %20, %23 : vector<512x128xf32>
    %cst_20 = arith.constant 0.000000e+00 : f32
    %25 = vector.broadcast %cst_20 : f32 to vector<512x128xf32>
    %26 = arith.maximumf %24, %25 : vector<512x128xf32>
    %c2_21 = arith.constant 2 : index
    %c0_22 = arith.constant 0 : index
    %c0_23 = arith.constant 0 : index
    %27 = vector.load %arg3[%c2_21, %c0_22, %c0_23] : memref<3x128x128xf32, #tpu.memory_space<vmem>>, vector<1x128x128xf32>
    %28 = vector.shape_cast %27 : vector<1x128x128xf32> to vector<128x128xf32>
    %cst_24 = arith.constant dense<0.000000e+00> : vector<512x128xf32>
    %29 = tpu.matmul %26, %28, %cst_24 {dimension_numbers = #tpu.dot_dimension_numbers<[1], [0], [0], [1], [0, 0, 1, 1], [], []>} : vector<512x128xf32>, vector<128x128xf32>, vector<512x128xf32> -> vector<512x128xf32>
    %c3 = arith.constant 3 : index
    %c0_25 = arith.constant 0 : index
    %c0_26 = arith.constant 0 : index
    %30 = vector.load %arg4[%c3, %c0_25, %c0_26] : memref<4x1x128xf32, #tpu.memory_space<vmem>>, vector<1x1x128xf32>
    %31 = vector.shape_cast %30 : vector<1x1x128xf32> to vector<1x128xf32>
    %32 = vector.broadcast %31 : vector<1x128xf32> to vector<512x128xf32>
    %33 = arith.addf %29, %32 : vector<512x128xf32>
    %cst_27 = arith.constant dense<0xFF800000> : vector<512xf32>
    %34 = vector.multi_reduction <maximumf>, %33, %cst_27 [1] : vector<512x128xf32> to vector<512xf32>
    %35 = vector.shape_cast %34 : vector<512xf32> to vector<512x1xf32>
    %36 = vector.broadcast %35 : vector<512x1xf32> to vector<512x128xf32>
    %37 = arith.subf %33, %36 : vector<512x128xf32>
    %38 = math.exp %37 : vector<512x128xf32>
    %cst_28 = arith.constant dense<0.000000e+00> : vector<512xf32>
    %39 = vector.multi_reduction <add>, %38, %cst_28 [1] : vector<512x128xf32> to vector<512xf32>
    %40 = vector.shape_cast %39 : vector<512xf32> to vector<512x1xf32>
    %41 = vector.broadcast %40 : vector<512x1xf32> to vector<512x128xf32>
    %42 = arith.divf %38, %41 : vector<512x128xf32>
    %43 = vector.extract_strided_slice %42 {offsets = [0, 0], sizes = [512, 2], strides = [1, 1]} : vector<512x128xf32> to vector<512x2xf32>
    %c0_29 = arith.constant 0 : index
    %c0_30 = arith.constant 0 : index
    %44 = vector.load %arg5[%c0_29, %c0_30] : memref<512x2xf32, #tpu.memory_space<vmem>>, vector<512x2xf32>
    tpu.vector_store %arg5[%c0_29, %c0_30], %43 {strides = array<i32>} : memref<512x2xf32, #tpu.memory_space<vmem>>, vector<512x2xf32>,
    return
  }
  func.func @transform_0(%arg0: i32) -> (i32, i32) {
    %c0_i32 = arith.constant 0 : i32
    %c0_i32_0 = arith.constant 0 : i32
    return %arg0, %c0_i32 : i32, i32
  }
  func.func @transform_1(%arg0: i32) -> (i32, i32) {
    %c0_i32 = arith.constant 0 : i32
    %c0_i32_0 = arith.constant 0 : i32
    %c0_i32_1 = arith.constant 0 : i32
    return %c0_i32, %c0_i32_0 : i32, i32
  }
  func.func @transform_2(%arg0: i32) -> (i32, i32, i32) {
    %c0_i32 = arith.constant 0 : i32
    %c0_i32_0 = arith.constant 0 : i32
    %c0_i32_1 = arith.constant 0 : i32
    %c0_i32_2 = arith.constant 0 : i32
    return %c0_i32, %c0_i32_0, %c0_i32_1 : i32, i32, i32
  }
  func.func @transform_3(%arg0: i32) -> (i32, i32, i32) {
    %c0_i32 = arith.constant 0 : i32
    %c0_i32_0 = arith.constant 0 : i32
    %c0_i32_1 = arith.constant 0 : i32
    %c0_i32_2 = arith.constant 0 : i32
    return %c0_i32, %c0_i32_0, %c0_i32_1 : i32, i32, i32
  }
  func.func @transform_4(%arg0: i32) -> (i32, i32) {
    %c0_i32 = arith.constant 0 : i32
    %c0_i32_0 = arith.constant 0 : i32
    return %arg0, %c0_i32 : i32, i32
  }
}

</mosaic_0001>

<bundles_post_ra>
// kernel: tpu_custom_call.1
= control target key start
LH: loop header
LB: loop body
LE: loop exit
PB: predicated region body
PF: predicated region fallthrough
CT: control target
= control target key end

     0   :  { %vm279_vm0 = vcmask 1042432   ;;  %vm86_vm1 = vcmask 23552   ;;  %vm2784_vm6 = vcmask 15360   ;;  %s4915_s1 = inlined_call_operand.vmem [shape: f32[3,128], index: 1, kind: input, shape index: {}]   ;;  %s4916_s0 = inlined_call_operand.vmem [shape: f32[512,3], index: 0, kind: input, shape index: {}]   ;;  %s4917_s2 = inlined_call_operand.vmem [shape: f32[3,128,128], index: 2, kind: input, shape index: {}]   ;;  %s4918_s3 = inlined_call_operand.vmem [shape: f32[4,1,128], index: 3, kind: input, shape index: {}]   ;;  %s4919_s4 = inlined_call_operand.vmem [shape: f32[512,2], index: 4, kind: output, shape index: {}]  }
   0x1   :  { %v81_v0 = vld [vmem:[%s4915_s1] sm:$0x7]  ;;  %v571_v2 = vld [vmem:[%s4917_s2 + $0x78] sm:$0xff]  ;;  %v570_v3 = vld [vmem:[%s4917_s2 + $0x70] sm:$0xff] }
   0x2   :  { %v17_v1 = vld [vmem:[%s4916_s0] sm:$0xff]  ;;  %2853 = vmatpush.msk.msra.mxu0 %vm279_vm0, %v81_v0  ;;  %2953 = vmatpush.msra.mxu1 %v571_v2  ;;  %v18_v4 = vld [vmem:[%s4916_s0 + $0x8] sm:$0xff]  ;;  %v19_v5 = vld [vmem:[%s4916_s0 + $0x10] sm:$0xff] }
   0x3   :  { %2854 = vmatmul.msk.f32.vlgmr.msra.gmra.mxu0 %vm86_vm1, %v17_v1  ;;  %v20_v6 = vld [vmem:[%s4916_s0 + $0x18] sm:$0xff]  ;;  %v21_v7 = vld [vmem:[%s4916_s0 + $0x20] sm:$0xff]  ;;  %v569_v8 = vld [vmem:[%s4917_s2 + $0x68] sm:$0xff] }
   0x4   :  { %577 = vmatpush.msrb.mxu0 %v571_v2  ;;  %2954 = vmatpush.msra.mxu1 %v570_v3  ;;  %v22_v9 = vld [vmem:[%s4916_s0 + $0x28] sm:$0xff]  ;;  %v23_v10 = vld [vmem:[%s4916_s0 + $0x30] sm:$0xff]  ;;  %v24_v11 = vld [vmem:[%s4916_s0 + $0x38] sm:$0xff] }
   0x5   :  { %v25_v12 = vld [vmem:[%s4916_s0 + $0x40] sm:$0xff]  ;;  %v26_v14 = vld [vmem:[%s4916_s0 + $0x48] sm:$0xff]  ;;  %v27_v15 = vld [vmem:[%s4916_s0 + $0x50] sm:$0xff] }
   0x6   :  { %578 = vmatpush.msrb.mxu0 %v570_v3  ;;  %2955 = vmatpush.msra.mxu1 %v569_v8  ;;  %v568_v13 = vld [vmem:[%s4917_s2 + $0x60] sm:$0xff]  ;;  %v567_v16 = vld [vmem:[%s4917_s2 + $0x58] sm:$0xff]  ;;  %v566_v17 = vld [vmem:[%s4917_s2 + $0x50] sm:$0xff] }
   0x7   :  { %v565_v18 = vld [vmem:[%s4917_s2 + $0x48] sm:$0xff]  ;;  %v28_v19 = vld [vmem:[%s4916_s0 + $0x58] sm:$0xff]  ;;  %v564_v20 = vld [vmem:[%s4917_s2 + $0x40] sm:$0xff] }
   0x8   :  { %579 = vmatpush.msrb.mxu0 %v569_v8  ;;  %2956 = vmatpush.msra.mxu1 %v568_v13  ;;  %v563_v21 = vld [vmem:[%s4917_s2 + $0x38] sm:$0xff]  ;;  %v562_v22 = vld [vmem:[%s4917_s2 + $0x30] sm:$0xff]  ;;  %v29_v23 = vld [vmem:[%s4916_s0 + $0x60] sm:$0xff] }
   0x9   :  { %v561_v24 = vld [vmem:[%s4917_s2 + $0x28] sm:$0xff]  ;;  %v560_v25 = vld [vmem:[%s4917_s2 + $0x20] sm:$0xff]  ;;  %v559_v26 = vld [vmem:[%s4917_s2 + $0x18] sm:$0xff] }
   0xa   :  { %580 = vmatpush.msrb.mxu0 %v568_v13  ;;  %2957 = vmatpush.msra.mxu1 %v567_v16  ;;  %v558_v27 = vld [vmem:[%s4917_s2 + $0x10] sm:$0xff]  ;;  %v30_v28 = vld [vmem:[%s4916_s0 + $0x68] sm:$0xff]  ;;  %v556_v30 = vld [vmem:[%s4917_s2] sm:$0xff] }
   0xb   :  { %2855 = vmatmul.msk.f32.gmra.mxu0 %vm86_vm1, %v18_v4  ;;  %v557_v29 = vld [vmem:[%s4917_s2 + $0x8] sm:$0xff]  ;;  %v31_v31 = vld [vmem:[%s4916_s0 + $0x70] sm:$0xff]  ;;  %v32_v32 = vld [vmem:[%s4916_s0 + $0x78] sm:$0xff] }
   0xc   :  { %581 = vmatpush.msrb.mxu0 %v567_v16  ;;  %2958 = vmatpush.msra.mxu1 %v566_v17  ;;  %v33_v34 = vld [vmem:[%s4916_s0 + $0x80] sm:$0xff]  ;;  %v34_v37 = vld [vmem:[%s4916_s0 + $0x88] sm:$0xff]  ;;  %v35_v41 = vld [vmem:[%s4916_s0 + $0x90] sm:$0xff] }
   0xd   :  { %v3382_v35 = vld [vmem:[%s4918_s3] ss:$0 sm:$0xff]  ;;  %v36_v45 = vld [vmem:[%s4916_s0 + $0x98] sm:$0xff]  ;;  %v38_v53 = vld [vmem:[%s4916_s0 + $0xa8] sm:$0xff] }
   0xe   :  { %582 = vmatpush.msrb.mxu0 %v566_v17  ;;  %2959 = vmatpush.msra.mxu1 %v565_v18  ;;  %v37_v49 = vld [vmem:[%s4916_s0 + $0xa0] sm:$0xff]  ;;  %v39_v57 = vld [vmem:[%s4916_s0 + $0xb0] sm:$0xff]  ;;  %v40_v61 = vld [vmem:[%s4916_s0 + $0xb8] sm:$0xff] }
   0xf   :  { %v41_v1 = vld [vmem:[%s4916_s0 + $0xc0] sm:$0xff]  ;;  %v44_v13 = vld [vmem:[%s4916_s0 + $0xd8] sm:$0xff] }
  0x10   :  { %583 = vmatpush.msrb.mxu0 %v565_v18  ;;  %2960 = vmatpush.msra.mxu1 %v564_v20  ;;  %v45_v17 = vld [vmem:[%s4916_s0 + $0xe0] sm:$0xff] }
  0x12   :  { %584 = vmatpush.msrb.mxu0 %v564_v20  ;;  %2961 = vmatpush.msra.mxu1 %v563_v21 }
  0x13   :  { %2856 = vmatmul.msk.f32.gmra.mxu0 %vm86_vm1, %v19_v5  ;;  %v42_v5 = vld [vmem:[%s4916_s0 + $0xc8] sm:$0xff] }
  0x14   :  { %585 = vmatpush.msrb.mxu0 %v563_v21  ;;  %2962 = vmatpush.msra.mxu1 %v562_v22  ;;  %v46_v21 = vld [vmem:[%s4916_s0 + $0xe8] sm:$0xff] }
  0x16   :  { %586 = vmatpush.msrb.mxu0 %v562_v22  ;;  %2963 = vmatpush.msra.mxu1 %v561_v24 }
  0x18   :  { %587 = vmatpush.msrb.mxu0 %v561_v24  ;;  %2964 = vmatpush.msra.mxu1 %v560_v25 }
  0x1a   :  { %588 = vmatpush.msrb.mxu0 %v560_v25  ;;  %2965 = vmatpush.msra.mxu1 %v559_v26  ;;  %v47_v25 = vld [vmem:[%s4916_s0 + $0xf0] sm:$0xff] }
  0x1b   :  { %2857 = vmatmul.msk.f32.gmra.mxu0 %vm86_vm1, %v20_v6 }
  0x1c   :  { %589 = vmatpush.msrb.mxu0 %v559_v26  ;;  %2966 = vmatpush.msra.mxu1 %v558_v27 }
  0x1e   :  { %590 = vmatpush.msrb.mxu0 %v558_v27  ;;  %2967 = vmatpush.msra.mxu1 %v557_v29 }
  0x20   :  { %591 = vmatpush.msrb.mxu0 %v557_v29  ;;  %2968 = vmatpush.msra.mxu1 %v556_v30  ;;  %v48_v29 = vld [vmem:[%s4916_s0 + $0xf8] sm:$0xff] }
  0x22   :  { %592 = vmatpush.msrb.mxu0 %v556_v30 }
  0x23   :  { %2858 = vmatmul.msk.f32.gmra.mxu0 %vm86_vm1, %v21_v7 }
  0x2b   :  { %2859 = vmatmul.msk.f32.gmra.mxu0 %vm86_vm1, %v22_v9  ;;  %v43_v9 = vld [vmem:[%s4916_s0 + $0xd0] sm:$0xff] }
  0x33   :  { %2860 = vmatmul.msk.f32.gmra.mxu0 %vm86_vm1, %v23_v10 }
  0x3b   :  { %2861 = vmatmul.msk.f32.gmra.mxu0 %vm86_vm1, %v24_v11 }
  0x43   :  { %2862 = vmatmul.msk.f32.gmra.mxu0 %vm86_vm1, %v25_v12 }
  0x4b   :  { %2863 = vmatmul.msk.f32.gmra.mxu0 %vm86_vm1, %v26_v14 }
  0x53   :  { %2864 = vmatmul.msk.f32.gmra.mxu0 %vm86_vm1, %v27_v15 }
  0x5b   :  { %2865 = vmatmul.msk.f32.gmra.mxu0 %vm86_vm1, %v28_v19 }
  0x63   :  { %2866 = vmatmul.msk.f32.gmra.mxu0 %vm86_vm1, %v29_v23 }
  0x6b   :  { %2867 = vmatmul.msk.f32.gmra.mxu0 %vm86_vm1, %v30_v28 }
  0x73   :  { %2868 = vmatmul.msk.f32.gmra.mxu0 %vm86_vm1, %v31_v31 }
  0x7b   :  { %2869 = vmatmul.msk.f32.gmra.mxu0 %vm86_vm1, %v32_v32 }
  0x80   :  { %v3373_v33 = vpop.f32.mrf.mxu0 }
  0x83   :  { %2870 = vmatmul.msk.f32.gmra.mxu0 %vm86_vm1, %v33_v34  ;;  %v49_v34 = vld [vmem:[%s4916_s0 + $0x100] sm:$0xff] }
  0x88   :  { %v303_v36 = vpop.f32.mrf.mxu0 }
  0x89   :  { %v304_v38 = vadd.f32 %v3382_v35, %v303_v36 }
  0x8b   :  { %2871 = vmatmul.msk.f32.gmra.mxu0 %vm86_vm1, %v34_v37  ;;  %v493_v39 = vmax.f32 %v304_v38, 0.0 }
  0x8d   :  { %596 = vmatmul.f32.vlgmr.msra.gmra.mxu1 %v493_v39  ;;  %v50_v39 = vld [vmem:[%s4916_s0 + $0x108] sm:$0xff] }
  0x90   :  { %v306_v40 = vpop.f32.mrf.mxu0 }
  0x91   :  { %v307_v42 = vadd.f32 %v3382_v35, %v306_v40 }
  0x93   :  { %2872 = vmatmul.msk.f32.gmra.mxu0 %vm86_vm1, %v35_v41  ;;  %v494_v43 = vmax.f32 %v307_v42, 0.0 }
  0x95   :  { %599 = vmatmul.f32.gmra.mxu1 %v494_v43 }
  0x98   :  { %v309_v44 = vpop.f32.mrf.mxu0 }
  0x99   :  { %v310_v46 = vadd.f32 %v3382_v35, %v309_v44  ;;  %v51_v44 = vld [vmem:[%s4916_s0 + $0x110] sm:$0xff] }
  0x9b   :  { %2873 = vmatmul.msk.f32.gmra.mxu0 %vm86_vm1, %v36_v45  ;;  %v495_v47 = vmax.f32 %v310_v46, 0.0 }
  0x9d   :  { %602 = vmatmul.f32.gmra.mxu1 %v495_v47 }
  0xa0   :  { %v312_v48 = vpop.f32.mrf.mxu0 }
  0xa1   :  { %v313_v50 = vadd.f32 %v3382_v35, %v312_v48 }
  0xa3   :  { %2874 = vmatmul.msk.f32.gmra.mxu0 %vm86_vm1, %v37_v49  ;;  %v496_v51 = vmax.f32 %v313_v50, 0.0  ;;  %v52_v49 = vld [vmem:[%s4916_s0 + $0x118] sm:$0xff] }
  0xa5   :  { %605 = vmatmul.f32.gmra.mxu1 %v496_v51 }
  0xa8   :  { %v315_v52 = vpop.f32.mrf.mxu0 }
  0xa9   :  { %v316_v54 = vadd.f32 %v3382_v35, %v315_v52 }
  0xab   :  { %2875 = vmatmul.msk.f32.gmra.mxu0 %vm86_vm1, %v38_v53  ;;  %v497_v55 = vmax.f32 %v316_v54, 0.0  ;;  %v53_v54 = vld [vmem:[%s4916_s0 + $0x120] sm:$0xff] }
  0xad   :  { %608 = vmatmul.f32.gmra.mxu1 %v497_v55 }
  0xb0   :  { %v318_v56 = vpop.f32.mrf.mxu0 }
  0xb1   :  { %v319_v58 = vadd.f32 %v3382_v35, %v318_v56 }
  0xb3   :  { %2876 = vmatmul.msk.f32.gmra.mxu0 %vm86_vm1, %v39_v57  ;;  %v498_v59 = vmax.f32 %v319_v58, 0.0 }
  0xb5   :  { %611 = vmatmul.f32.gmra.mxu1 %v498_v59  ;;  %v54_v59 = vld [vmem:[%s4916_s0 + $0x128] sm:$0xff] }
  0xb8   :  { %v321_v60 = vpop.f32.mrf.mxu0 }
  0xb9   :  { %v322_v62 = vadd.f32 %v3382_v35, %v321_v60 }
  0xbb   :  { %2877 = vmatmul.msk.f32.gmra.mxu0 %vm86_vm1, %v40_v61  ;;  %v499_v63 = vmax.f32 %v322_v62, 0.0 }
  0xbd   :  { %614 = vmatmul.f32.gmra.mxu1 %v499_v63 }
  0xc0   :  { %v324_v0 = vpop.f32.mrf.mxu0 }
  0xc1   :  { %v325_v2 = vadd.f32 %v3382_v35, %v324_v0  ;;  %v55_v0 = vld [vmem:[%s4916_s0 + $0x130] sm:$0xff] }
  0xc3   :  { %2878 = vmatmul.msk.f32.gmra.mxu0 %vm86_vm1, %v41_v1  ;;  %v500_v3 = vmax.f32 %v325_v2, 0.0 }
  0xc5   :  { %617 = vmatmul.f32.gmra.mxu1 %v500_v3 }
  0xc8   :  { %v327_v4 = vpop.f32.mrf.mxu0 }
  0xc9   :  { %v328_v6 = vadd.f32 %v3382_v35, %v327_v4 }
  0xcb   :  { %2879 = vmatmul.msk.f32.gmra.mxu0 %vm86_vm1, %v42_v5  ;;  %v501_v7 = vmax.f32 %v328_v6, 0.0  ;;  %v56_v5 = vld [vmem:[%s4916_s0 + $0x138] sm:$0xff] }
  0xcd   :  { %620 = vmatmul.f32.gmra.mxu1 %v501_v7 }
  0xd0   :  { %v330_v8 = vpop.f32.mrf.mxu0 }
  0xd1   :  { %v331_v10 = vadd.f32 %v3382_v35, %v330_v8 }
  0xd3   :  { %2880 = vmatmul.msk.f32.gmra.mxu0 %vm86_vm1, %v43_v9  ;;  %v502_v11 = vmax.f32 %v331_v10, 0.0  ;;  %v57_v10 = vld [vmem:[%s4916_s0 + $0x140] sm:$0xff] }
  0xd5   :  { %623 = vmatmul.f32.gmra.mxu1 %v502_v11 }
  0xd8   :  { %v333_v12 = vpop.f32.mrf.mxu0 }
  0xd9   :  { %v334_v14 = vadd.f32 %v3382_v35, %v333_v12 }
  0xdb   :  { %2881 = vmatmul.msk.f32.gmra.mxu0 %vm86_vm1, %v44_v13  ;;  %v503_v15 = vmax.f32 %v334_v14, 0.0 }
  0xdd   :  { %626 = vmatmul.f32.gmra.mxu1 %v503_v15  ;;  %v58_v15 = vld [vmem:[%s4916_s0 + $0x148] sm:$0xff] }
  0xe0   :  { %v336_v16 = vpop.f32.mrf.mxu0 }
  0xe1   :  { %v337_v18 = vadd.f32 %v3382_v35, %v336_v16 }
  0xe3   :  { %2882 = vmatmul.msk.f32.gmra.mxu0 %vm86_vm1, %v45_v17  ;;  %v504_v19 = vmax.f32 %v337_v18, 0.0 }
  0xe5   :  { %629 = vmatmul.f32.gmra.mxu1 %v504_v19  ;;  %v59_v19 = vld [vmem:[%s4916_s0 + $0x150] sm:$0xff] }
  0xe8   :  { %v339_v20 = vpop.f32.mrf.mxu0 }
  0xe9   :  { %v340_v22 = vadd.f32 %v3382_v35, %v339_v20 }
  0xeb   :  { %2883 = vmatmul.msk.f32.gmra.mxu0 %vm86_vm1, %v46_v21  ;;  %v505_v23 = vmax.f32 %v340_v22, 0.0 }
  0xed   :  { %632 = vmatmul.f32.gmra.mxu1 %v505_v23 }
  0xf0   :  { %v342_v24 = vpop.f32.mrf.mxu0 }
  0xf1   :  { %v343_v26 = vadd.f32 %v3382_v35, %v342_v24  ;;  %v60_v24 = vld [vmem:[%s4916_s0 + $0x158] sm:$0xff] }
  0xf3   :  { %2884 = vmatmul.msk.f32.gmra.mxu0 %vm86_vm1, %v47_v25  ;;  %v506_v27 = vmax.f32 %v343_v26, 0.0 }
  0xf5   :  { %635 = vmatmul.f32.gmra.mxu1 %v506_v27 }
  0xf8   :  { %v345_v28 = vpop.f32.mrf.mxu0 }
  0xf9   :  { %v346_v30 = vadd.f32 %v3382_v35, %v345_v28 }
  0xfb   :  { %2885 = vmatmul.msk.f32.gmra.mxu0 %vm86_vm1, %v48_v29  ;;  %v507_v31 = vmax.f32 %v346_v30, 0.0  ;;  %v61_v29 = vld [vmem:[%s4916_s0 + $0x160] sm:$0xff] }
  0xfd   :  { %638 = vmatmul.f32.gmra.mxu1 %v507_v31 }
 0x100   :  { %v348_v32 = vpop.f32.mrf.mxu0 }
 0x101   :  { %v349_v36 = vadd.f32 %v3382_v35, %v348_v32 }
 0x103   :  { %2886 = vmatmul.msk.f32.gmra.mxu0 %vm86_vm1, %v49_v34  ;;  %v508_v37 = vmax.f32 %v349_v36, 0.0  ;;  %v62_v36 = vld [vmem:[%s4916_s0 + $0x168] sm:$0xff] }
 0x105   :  { %641 = vmatmul.f32.gmra.mxu1 %v508_v37 }
 0x108   :  { %v351_v38 = vpop.f32.mrf.mxu0 }
 0x109   :  { %v352_v40 = vadd.f32 %v3382_v35, %v351_v38 }
 0x10a   :  { %v3468_v41 = vpop.f32.mrf.mxu1 }
 0x10b   :  { %2887 = vmatmul.msk.f32.gmra.mxu0 %vm86_vm1, %v50_v39  ;;  %v509_v42 = vmax.f32 %v352_v40, 0.0 }
 0x10d   :  { %644 = vmatmul.f32.gmra.mxu1 %v509_v42  ;;  %v63_v42 = vld [vmem:[%s4916_s0 + $0x170] sm:$0xff] }
 0x110   :  { %v354_v43 = vpop.f32.mrf.mxu0 }
 0x111   :  { %v355_v45 = vadd.f32 %v3382_v35, %v354_v43 }
 0x112   :  { %v3475_v46 = vpop.f32.mrf.mxu1 }
 0x113   :  { %2888 = vmatmul.msk.f32.gmra.mxu0 %vm86_vm1, %v51_v44  ;;  %v510_v47 = vmax.f32 %v355_v45, 0.0 }
 0x115   :  { %647 = vmatmul.f32.gmra.mxu1 %v510_v47  ;;  %v64_v47 = vld [vmem:[%s4916_s0 + $0x178] sm:$0xff] }
 0x118   :  { %v357_v48 = vpop.f32.mrf.mxu0 }
 0x119   :  { %v358_v50 = vadd.f32 %v3382_v35, %v357_v48 }
 0x11a   :  { %v3482_v51 = vpop.f32.mrf.mxu1 }
 0x11b   :  { %2889 = vmatmul.msk.f32.gmra.mxu0 %vm86_vm1, %v52_v49  ;;  %v511_v52 = vmax.f32 %v358_v50, 0.0 }
 0x11d   :  { %650 = vmatmul.f32.gmra.mxu1 %v511_v52 }
 0x120   :  { %v360_v53 = vpop.f32.mrf.mxu0 }
 0x121   :  { %v361_v55 = vadd.f32 %v3382_v35, %v360_v53  ;;  %v65_v53 = vld [vmem:[%s4916_s0 + $0x180] sm:$0xff] }
 0x122   :  { %v3489_v56 = vpop.f32.mrf.mxu1 }
 0x123   :  { %2890 = vmatmul.msk.f32.gmra.mxu0 %vm86_vm1, %v53_v54  ;;  %v512_v57 = vmax.f32 %v361_v55, 0.0 }
 0x125   :  { %653 = vmatmul.f32.gmra.mxu1 %v512_v57 }
 0x128   :  { %v363_v58 = vpop.f32.mrf.mxu0 }
 0x129   :  { %v364_v60 = vadd.f32 %v3382_v35, %v363_v58 }
 0x12a   :  { %v3496_v61 = vpop.f32.mrf.mxu1 }
 0x12b   :  { %2891 = vmatmul.msk.f32.gmra.mxu0 %vm86_vm1, %v54_v59  ;;  %v513_v62 = vmax.f32 %v364_v60, 0.0  ;;  %v66_v59 = vld [vmem:[%s4916_s0 + $0x188] sm:$0xff] }
 0x12d   :  { %656 = vmatmul.f32.gmra.mxu1 %v513_v62 }
 0x130   :  { %v366_v63 = vpop.f32.mrf.mxu0 }
 0x131   :  { %v367_v1 = vadd.f32 %v3382_v35, %v366_v63 }
 0x132   :  { %v3503_v2 = vpop.f32.mrf.mxu1 }
 0x133   :  { %2892 = vmatmul.msk.f32.gmra.mxu0 %vm86_vm1, %v55_v0  ;;  %v514_v3 = vmax.f32 %v367_v1, 0.0  ;;  %v67_v1 = vld [vmem:[%s4916_s0 + $0x190] sm:$0xff] }
 0x135   :  { %659 = vmatmul.f32.gmra.mxu1 %v514_v3 }
 0x138   :  { %v369_v4 = vpop.f32.mrf.mxu0 }
 0x139   :  { %v370_v6 = vadd.f32 %v3382_v35, %v369_v4 }
 0x13a   :  { %v3511_v8 = vpop.f32.mrf.mxu1 }
 0x13b   :  { %2893 = vmatmul.msk.f32.gmra.mxu0 %vm86_vm1, %v56_v5  ;;  %v515_v7 = vmax.f32 %v370_v6, 0.0 }
 0x13d   :  { %662 = vmatmul.f32.gmra.mxu1 %v515_v7  ;;  %v68_v7 = vld [vmem:[%s4916_s0 + $0x198] sm:$0xff] }
 0x140   :  { %v372_v9 = vpop.f32.mrf.mxu0 }
 0x141   :  { %v373_v11 = vadd.f32 %v3382_v35, %v372_v9 }
 0x142   :  { %v3518_v13 = vpop.f32.mrf.mxu1 }
 0x143   :  { %2894 = vmatmul.msk.f32.gmra.mxu0 %vm86_vm1, %v57_v10  ;;  %v516_v12 = vmax.f32 %v373_v11, 0.0 }
 0x145   :  { %665 = vmatmul.f32.gmra.mxu1 %v516_v12  ;;  %v69_v12 = vld [vmem:[%s4916_s0 + $0x1a0] sm:$0xff] }
 0x148   :  { %v375_v14 = vpop.f32.mrf.mxu0 }
 0x149   :  { %v376_v16 = vadd.f32 %v3382_v35, %v375_v14 }
 0x14a   :  { %v3528_v20 = vpop.f32.mrf.mxu1 }
 0x14b   :  { %v517_v17 = vmax.f32 %v376_v16, 0.0  ;;  %2895 = vmatmul.msk.f32.gmra.mxu0 %vm86_vm1, %v58_v15 }
 0x14d   :  { %668 = vmatmul.f32.gmra.mxu1 %v517_v17 }
 0x150   :  { %v378_v18 = vpop.f32.mrf.mxu0 }
 0x151   :  { %v379_v21 = vadd.f32 %v3382_v35, %v378_v18  ;;  %v70_v18 = vld [vmem:[%s4916_s0 + $0x1a8] sm:$0xff] }
 0x152   :  { %v3536_v26 = vpop.f32.mrf.mxu1 }
 0x153   :  { %v518_v22 = vmax.f32 %v379_v21, 0.0  ;;  %2896 = vmatmul.msk.f32.gmra.mxu0 %vm86_vm1, %v59_v19 }
 0x155   :  { %671 = vmatmul.f32.gmra.mxu1 %v518_v22 }
 0x158   :  { %v381_v23 = vpop.f32.mrf.mxu0 }
 0x159   :  { %v382_v25 = vadd.f32 %v3382_v35, %v381_v23 }
 0x15a   :  { %v3544_v32 = vpop.f32.mrf.mxu1 }
 0x15b   :  { %v519_v27 = vmax.f32 %v382_v25, 0.0  ;;  %2897 = vmatmul.msk.f32.gmra.mxu0 %vm86_vm1, %v60_v24  ;;  %v71_v24 = vld [vmem:[%s4916_s0 + $0x1b0] sm:$0xff] }
 0x15d   :  { %674 = vmatmul.f32.gmra.mxu1 %v519_v27 }
 0x160   :  { %v384_v28 = vpop.f32.mrf.mxu0 }
 0x161   :  { %v385_v30 = vadd.f32 %v3382_v35, %v384_v28 }
 0x162   :  { %v3551_v39 = vpop.f32.mrf.mxu1 }
 0x163   :  { %v520_v31 = vmax.f32 %v385_v30, 0.0  ;;  %2898 = vmatmul.msk.f32.gmra.mxu0 %vm86_vm1, %v61_v29  ;;  %v72_v30 = vld [vmem:[%s4916_s0 + $0x1b8] sm:$0xff] }
 0x165   :  { %677 = vmatmul.f32.gmra.mxu1 %v520_v31 }
 0x168   :  { %v387_v34 = vpop.f32.mrf.mxu0 }
 0x169   :  { %v388_v37 = vadd.f32 %v3382_v35, %v387_v34 }
 0x16a   :  { %v3561_v48 = vpop.f32.mrf.mxu1 }
 0x16b   :  { %v521_v38 = vmax.f32 %v388_v37, 0.0  ;;  %2899 = vmatmul.msk.f32.gmra.mxu0 %vm86_vm1, %v62_v36 }
 0x16d   :  { %680 = vmatmul.f32.gmra.mxu1 %v521_v38  ;;  %v73_v38 = vld [vmem:[%s4916_s0 + $0x1c0] sm:$0xff] }
 0x170   :  { %v390_v40 = vpop.f32.mrf.mxu0 }
 0x171   :  { %v391_v43 = vadd.f32 %v3382_v35, %v390_v40 }
 0x172   :  { %v3569_v55 = vpop.f32.mrf.mxu1 }
 0x173   :  { %v522_v44 = vmax.f32 %v391_v43, 0.0  ;;  %2900 = vmatmul.msk.f32.gmra.mxu0 %vm86_vm1, %v63_v42 }
 0x175   :  { %683 = vmatmul.f32.gmra.mxu1 %v522_v44  ;;  %v74_v44 = vld [vmem:[%s4916_s0 + $0x1c8] sm:$0xff] }
 0x178   :  { %v393_v45 = vpop.f32.mrf.mxu0 }
 0x179   :  { %v394_v49 = vadd.f32 %v3382_v35, %v393_v45 }
 0x17a   :  { %v3577_v63 = vpop.f32.mrf.mxu1 }
 0x17b   :  { %v523_v50 = vmax.f32 %v394_v49, 0.0  ;;  %2901 = vmatmul.msk.f32.gmra.mxu0 %vm86_vm1, %v64_v47 }
 0x17d   :  { %686 = vmatmul.f32.gmra.mxu1 %v523_v50 }
 0x180   :  { %v396_v52 = vpop.f32.mrf.mxu0 }
 0x181   :  { %v397_v54 = vadd.f32 %v3382_v35, %v396_v52  ;;  %v75_v52 = vld [vmem:[%s4916_s0 + $0x1d0] sm:$0xff] }
 0x182   :  { %v3584_v5 = vpop.f32.mrf.mxu1 }
 0x183   :  { %v524_v57 = vmax.f32 %v397_v54, 0.0  ;;  %2902 = vmatmul.msk.f32.gmra.mxu0 %vm86_vm1, %v65_v53 }
 0x185   :  { %689 = vmatmul.f32.gmra.mxu1 %v524_v57 }
 0x188   :  { %v399_v58 = vpop.f32.mrf.mxu0 }
 0x189   :  { %v400_v60 = vadd.f32 %v3382_v35, %v399_v58 }
 0x18a   :  { %v3594_v14 = vpop.f32.mrf.mxu1 }
 0x18b   :  { %v525_v62 = vmax.f32 %v400_v60, 0.0  ;;  %2903 = vmatmul.msk.f32.gmra.mxu0 %vm86_vm1, %v66_v59  ;;  %v76_v59 = vld [vmem:[%s4916_s0 + $0x1d8] sm:$0xff] }
 0x18d   :  { %692 = vmatmul.f32.gmra.mxu1 %v525_v62 }
 0x190   :  { %v402_v0 = vpop.f32.mrf.mxu0 }
 0x191   :  { %v403_v3 = vadd.f32 %v3382_v35, %v402_v0 }
 0x192   :  { %v3602_v21 = vpop.f32.mrf.mxu1 }
 0x193   :  { %v526_v4 = vmax.f32 %v403_v3, 0.0  ;;  %2904 = vmatmul.msk.f32.gmra.mxu0 %vm86_vm1, %v67_v1  ;;  %v77_v3 = vld [vmem:[%s4916_s0 + $0x1e0] sm:$0xff] }
 0x195   :  { %695 = vmatmul.f32.gmra.mxu1 %v526_v4 }
 0x198   :  { %v405_v6 = vpop.f32.mrf.mxu0 }
 0x199   :  { %v406_v9 = vadd.f32 %v3382_v35, %v405_v6 }
 0x19a   :  { %v3610_v28 = vpop.f32.mrf.mxu1 }
 0x19b   :  { %v527_v10 = vmax.f32 %v406_v9, 0.0  ;;  %2905 = vmatmul.msk.f32.gmra.mxu0 %vm86_vm1, %v68_v7 }
 0x19d   :  { %698 = vmatmul.f32.gmra.mxu1 %v527_v10  ;;  %v78_v10 = vld [vmem:[%s4916_s0 + $0x1e8] sm:$0xff] }
 0x1a0   :  { %v408_v11 = vpop.f32.mrf.mxu0 }
 0x1a1   :  { %v409_v15 = vadd.f32 %v3382_v35, %v408_v11 }
 0x1a2   :  { %v3617_v36 = vpop.f32.mrf.mxu1 }
 0x1a3   :  { %v528_v16 = vmax.f32 %v409_v15, 0.0  ;;  %2906 = vmatmul.msk.f32.gmra.mxu0 %vm86_vm1, %v69_v12 }
 0x1a5   :  { %701 = vmatmul.f32.gmra.mxu1 %v528_v16  ;;  %v79_v16 = vld [vmem:[%s4916_s0 + $0x1f0] sm:$0xff] }
 0x1a8   :  { %v411_v17 = vpop.f32.mrf.mxu0 }
 0x1a9   :  { %v412_v19 = vadd.f32 %v3382_v35, %v411_v17 }
 0x1aa   :  { %v3627_v45 = vpop.f32.mrf.mxu1 }
 0x1ab   :  { %v529_v22 = vmax.f32 %v412_v19, 0.0  ;;  %2907 = vmatmul.msk.f32.gmra.mxu0 %vm86_vm1, %v70_v18 }
 0x1ad   :  { %704 = vmatmul.f32.gmra.mxu1 %v529_v22 }
 0x1b0   :  { %v414_v23 = vpop.f32.mrf.mxu0 }
 0x1b1   :  { %v415_v25 = vadd.f32 %v3382_v35, %v414_v23  ;;  %v80_v23 = vld [vmem:[%s4916_s0 + $0x1f8] sm:$0xff] }
 0x1b2   :  { %v3635_v54 = vpop.f32.mrf.mxu1 }
 0x1b3   :  { %v530_v27 = vmax.f32 %v415_v25, 0.0  ;;  %2908 = vmatmul.msk.f32.gmra.mxu0 %vm86_vm1, %v71_v24 }
 0x1b5   :  { %707 = vmatmul.f32.gmra.mxu1 %v530_v27 }
 0x1b8   :  { %v417_v29 = vpop.f32.mrf.mxu0 }
 0x1b9   :  { %v418_v31 = vadd.f32 %v3382_v35, %v417_v29  ;;  %v301_v29 = vadd.f32 %v3382_v35, %v3373_v33 }
 0x1ba   :  { %v3643_v0 = vpop.f32.mrf.mxu1 }
 0x1bb   :  { %v531_v34 = vmax.f32 %v418_v31, 0.0  ;;  %2909 = vmatmul.msk.f32.gmra.mxu0 %vm86_vm1, %v72_v30  ;;  %v492_v31 = vmax.f32 %v301_v29, 0.0  ;;  %v2933_v29 = vld [vmem:[%s4917_s2 + $0xf0] sm:$0xff] }
 0x1bd   :  { %710 = vmatmul.f32.gmra.mxu1 %v531_v34 }
 0x1c0   :  { %v420_v37 = vpop.f32.mrf.mxu0 }
 0x1c1   :  { %v421_v40 = vadd.f32 %v3382_v35, %v420_v37 }
 0x1c2   :  { %v3650_v7 = vpop.f32.mrf.mxu1 }
 0x1c3   :  { %v532_v42 = vmax.f32 %v421_v40, 0.0  ;;  %2910 = vmatmul.msk.f32.gmra.mxu0 %vm86_vm1, %v73_v38 }
 0x1c5   :  { %713 = vmatmul.f32.gmra.mxu1 %v532_v42 }
 0x1c8   :  { %v423_v43 = vpop.f32.mrf.mxu0 }
 0x1c9   :  { %v424_v47 = vadd.f32 %v3382_v35, %v423_v43 }
 0x1ca   :  { %v3660_v17 = vpop.f32.mrf.mxu1 }
 0x1cb   :  { %v533_v49 = vmax.f32 %v424_v47, 0.0  ;;  %2911 = vmatmul.msk.f32.gmra.mxu0 %vm86_vm1, %v74_v44 }
 0x1cd   :  { %716 = vmatmul.f32.gmra.mxu1 %v533_v49 }
 0x1d0   :  { %v426_v50 = vpop.f32.mrf.mxu0 }
 0x1d1   :  { %v427_v53 = vadd.f32 %v3382_v35, %v426_v50 }
 0x1d2   :  { %v3668_v25 = vpop.f32.mrf.mxu1 }
 0x1d3   :  { %v534_v57 = vmax.f32 %v427_v53, 0.0  ;;  %2912 = vmatmul.msk.f32.gmra.mxu0 %vm86_vm1, %v75_v52 }
 0x1d5   :  { %719 = vmatmul.f32.gmra.mxu1 %v534_v57 }
 0x1d8   :  { %v429_v58 = vpop.f32.mrf.mxu0 }
 0x1d9   :  { %v430_v60 = vadd.f32 %v3382_v35, %v429_v58 }
 0x1da   :  { %v3674_v38 = vpop.f32.mrf.mxu1 }
 0x1db   :  { %v535_v62 = vmax.f32 %v430_v60, 0.0  ;;  %2913 = vmatmul.msk.f32.gmra.mxu0 %vm86_vm1, %v76_v59 }
 0x1dd   :  { %722 = vmatmul.f32.gmra.mxu1 %v535_v62 }
 0x1e0   :  { %v432_v1 = vpop.f32.mrf.mxu0 }
 0x1e1   :  { %v433_v4 = vadd.f32 %v3382_v35, %v432_v1 }
 0x1e2   :  { %v3677_v44 = vpop.f32.mrf.mxu1 }
 0x1e3   :  { %v536_v6 = vmax.f32 %v433_v4, 0.0  ;;  %2914 = vmatmul.msk.f32.gmra.mxu0 %vm86_vm1, %v77_v3 }
 0x1e5   :  { %725 = vmatmul.f32.gmra.mxu1 %v536_v6 }
 0x1e8   :  { %v435_v9 = vpop.f32.mrf.mxu0 }
 0x1e9   :  { %v436_v11 = vadd.f32 %v3382_v35, %v435_v9 }
 0x1ea   :  { %v3680_v52 = vpop.f32.mrf.mxu1 }
 0x1eb   :  { %v537_v12 = vmax.f32 %v436_v11, 0.0  ;;  %2915 = vmatmul.msk.f32.gmra.mxu0 %vm86_vm1, %v78_v10 }
 0x1ed   :  { %728 = vmatmul.f32.gmra.mxu1 %v537_v12 }
 0x1f0   :  { %v438_v15 = vpop.f32.mrf.mxu0 }
 0x1f1   :  { %v439_v18 = vadd.f32 %v3382_v35, %v438_v15 }
 0x1f2   :  { %v3684_v60 = vpop.f32.mrf.mxu1 }
 0x1f3   :  { %v538_v19 = vmax.f32 %v439_v18, 0.0  ;;  %2916 = vmatmul.msk.f32.gmra.mxu0 %vm86_vm1, %v79_v16 }
 0x1f5   :  { %731 = vmatmul.f32.gmra.mxu1 %v538_v19 }
 0x1f8   :  { %v441_v22 = vpop.f32.mrf.mxu0 }
 0x1f9   :  { %v442_v24 = vadd.f32 %v3382_v35, %v441_v22 }
 0x1fa   :  { %v3687_v6 = vpop.f32.mrf.mxu1 }
 0x1fb   :  { %v539_v27 = vmax.f32 %v442_v24, 0.0  ;;  %2917 = vmatmul.msk.f32.gmra.mxu0 %vm86_vm1, %v80_v23 }
 0x1fd   :  { %734 = vmatmul.f32.gmra.mxu1 %v539_v27  ;;  %v2934_v27 = vld [vmem:[%s4917_s2 + $0xf8] sm:$0xff] }
 0x1fe   :  { %872 = vmatpush.msra.mxu2 %v2934_v27  ;;  %v2919_v27 = vld [vmem:[%s4917_s2 + $0x80] sm:$0xff] }
 0x200   :  { %v444_v30 = vpop.f32.mrf.mxu0  ;;  %873 = vmatpush.msra.mxu2 %v2933_v29 }
 0x201   :  { %v445_v34 = vadd.f32 %v3382_v35, %v444_v30 }
 0x202   :  { %v3690_v12 = vpop.f32.mrf.mxu1 }
 0x203   :  { %v540_v37 = vmax.f32 %v445_v34, 0.0  ;;  %593 = vmatmul.f32.vlgmr.msrb.gmra.mxu0 %v492_v31  ;;  %v2932_v34 = vld [vmem:[%s4917_s2 + $0xe8] sm:$0xff] }
 0x204   :  { %874 = vmatpush.msra.mxu2 %v2932_v34 }
 0x205   :  { %737 = vmatmul.f32.gmra.mxu1 %v540_v37 }
 0x208   :  { %v447_v40 = vpop.f32.mrf.mxu0 }
 0x209   :  { %v448_v42 = vadd.f32 %v3382_v35, %v447_v40 }
 0x20a   :  { %v3693_v22 = vpop.f32.mrf.mxu1 }
 0x20b   :  { %v541_v43 = vmax.f32 %v448_v42, 0.0  ;;  %v2931_v42 = vld [vmem:[%s4917_s2 + $0xe0] sm:$0xff] }
 0x20c   :  { %875 = vmatpush.msra.mxu2 %v2931_v42 }
 0x20d   :  { %740 = vmatmul.f32.gmra.mxu1 %v541_v43  ;;  %v2930_v43 = vld [vmem:[%s4917_s2 + $0xd8] sm:$0xff] }
 0x20e   :  { %876 = vmatpush.msra.mxu2 %v2930_v43 }
 0x210   :  { %v450_v47 = vpop.f32.mrf.mxu0 }
 0x211   :  { %v451_v33 = vadd.f32 %v3382_v35, %v450_v47  ;;  %v2929_v47 = vld [vmem:[%s4917_s2 + $0xd0] sm:$0xff] }
 0x212   :  { %v3706_v37 = vpop.f32.mrf.mxu1  ;;  %877 = vmatpush.msra.mxu2 %v2929_v47 }
 0x213   :  { %v542_v49 = vmax.f32 %v451_v33, 0.0 }
 0x215   :  { %743 = vmatmul.f32.gmra.mxu1 %v542_v49 }
 0x218   :  { %v453_v50 = vpop.f32.mrf.mxu0 }
 0x219   :  { %v454_v53 = vadd.f32 %v3382_v35, %v453_v50  ;;  %v2928_v50 = vld [vmem:[%s4917_s2 + $0xc8] sm:$0xff] }
 0x21a   :  { %878 = vmatpush.msra.mxu2 %v2928_v50 }
 0x21b   :  { %v543_v57 = vmax.f32 %v454_v53, 0.0 }
 0x21d   :  { %746 = vmatmul.f32.gmra.mxu1 %v543_v57  ;;  %v2927_v57 = vld [vmem:[%s4917_s2 + $0xc0] sm:$0xff] }
 0x21e   :  { %879 = vmatpush.msra.mxu2 %v2927_v57  ;;  %v3766_v57 = vld [vmem:[%s4918_s3 + $0x1] ss:$0 sm:$0xff] }
 0x220   :  { %v456_v58 = vpop.f32.mrf.mxu0 }
 0x221   :  { %v457_v59 = vadd.f32 %v3382_v35, %v456_v58  ;;  %v3724_v58 = vpop.f32.mrf.mxu1 }
 0x223   :  { %v544_v62 = vmax.f32 %v457_v59, 0.0  ;;  %v2926_v59 = vld [vmem:[%s4917_s2 + $0xb8] sm:$0xff] }
 0x224   :  { %880 = vmatpush.msra.mxu2 %v2926_v59 }
 0x225   :  { %749 = vmatmul.f32.gmra.mxu1 %v544_v62  ;;  %v2925_v62 = vld [vmem:[%s4917_s2 + $0xb0] sm:$0xff] }
 0x226   :  { %881 = vmatpush.msra.mxu2 %v2925_v62 }
 0x228   :  { %v459_v1 = vpop.f32.mrf.mxu0 }
 0x229   :  { %v460_v3 = vadd.f32 %v3382_v35, %v459_v1 }
 0x22b   :  { %v545_v4 = vmax.f32 %v460_v3, 0.0 }
 0x22d   :  { %752 = vmatmul.f32.gmra.mxu1 %v545_v4  ;;  %v2924_v4 = vld [vmem:[%s4917_s2 + $0xa8] sm:$0xff] }
 0x22e   :  { %882 = vmatpush.msra.mxu2 %v2924_v4 }
 0x230   :  { %v462_v9 = vpop.f32.mrf.mxu0 }
 0x231   :  { %v463_v10 = vadd.f32 %v3382_v35, %v462_v9 }
 0x233   :  { %v546_v11 = vmax.f32 %v463_v10, 0.0  ;;  %v2923_v10 = vld [vmem:[%s4917_s2 + $0xa0] sm:$0xff] }
 0x234   :  { %883 = vmatpush.msra.mxu2 %v2923_v10  ;;  %v604_v10 = vadd.f32 %v3766_v57, %v3482_v51  ;;  %v616_v51 = vadd.f32 %v3766_v57, %v3511_v8  ;;  %v2950_v8 = vld [vmem:[%s4917_s2 + $0x170] sm:$0xff] }
 0x235   :  { %755 = vmatmul.f32.gmra.mxu1 %v546_v11  ;;  %v2922_v11 = vld [vmem:[%s4917_s2 + $0x98] sm:$0xff] }
 0x236   :  { %884 = vmatpush.msra.mxu2 %v2922_v11  ;;  %v789_v11 = vmax.f32 %v604_v10, 0.0  ;;  %v2936_v10 = vld [vmem:[%s4917_s2 + $0x100] sm:$0xff] }
 0x238   :  { %v465_v15 = vpop.f32.mrf.mxu0 }
 0x239   :  { %v466_v16 = vadd.f32 %v3382_v35, %v465_v15  ;;  %v3742_v15 = vpop.f32.mrf.mxu1 }
 0x23b   :  { %v547_v18 = vmax.f32 %v466_v16, 0.0  ;;  %v2921_v16 = vld [vmem:[%s4917_s2 + $0x90] sm:$0xff] }
 0x23c   :  { %885 = vmatpush.msra.mxu2 %v2921_v16  ;;  %v607_v16 = vadd.f32 %v3766_v57, %v3489_v56  ;;  %v619_v56 = vadd.f32 %v3766_v57, %v3518_v13  ;;  %v2949_v13 = vld [vmem:[%s4917_s2 + $0x168] sm:$0xff] }
 0x23d   :  { %758 = vmatmul.f32.gmra.mxu1 %v547_v18 }
 0x240   :  { %v468_v19 = vpop.f32.mrf.mxu0 }
 0x241   :  { %v469_v23 = vadd.f32 %v3382_v35, %v468_v19 }
 0x243   :  { %v548_v24 = vmax.f32 %v469_v23, 0.0  ;;  %v2920_v23 = vld [vmem:[%s4917_s2 + $0x88] sm:$0xff] }
 0x244   :  { %886 = vmatpush.msra.mxu2 %v2920_v23 }
 0x245   :  { %761 = vmatmul.f32.gmra.mxu1 %v548_v24 }
 0x246   :  { %887 = vmatpush.msra.mxu2 %v2919_v27  ;;  %v794_v27 = vmax.f32 %v619_v56, 0.0 }
 0x248   :  { %v471_v30 = vpop.f32.mrf.mxu0 }
 0x249   :  { %v472_v31 = vadd.f32 %v3382_v35, %v471_v30  ;;  %v3754_v30 = vpop.f32.mrf.mxu1 }
 0x24b   :  { %v549_v40 = vmax.f32 %v472_v31, 0.0 }
 0x24d   :  { %764 = vmatmul.f32.gmra.mxu1 %v549_v40 }
 0x250   :  { %v474_v33 = vpop.f32.mrf.mxu0 }
 0x251   :  { %v475_v49 = vadd.f32 %v3382_v35, %v474_v33  ;;  %v3758_v43 = vpop.f32.mrf.mxu1 }
 0x253   :  { %v550_v53 = vmax.f32 %v475_v49, 0.0 }
 0x255   :  { %767 = vmatmul.f32.gmra.mxu1 %v550_v53 }
 0x258   :  { %v477_v1 = vpop.f32.mrf.mxu0 }
 0x259   :  { %v478_v3 = vadd.f32 %v3382_v35, %v477_v1  ;;  %v3761_v53 = vpop.f32.mrf.mxu1 }
 0x25b   :  { %v551_v9 = vmax.f32 %v478_v3, 0.0  ;;  %v598_v3 = vadd.f32 %v3766_v57, %v3468_v41  ;;  %v610_v41 = vadd.f32 %v3766_v57, %v3496_v61  ;;  %v622_v61 = vadd.f32 %v3766_v57, %v3528_v20 }
 0x25d   :  { %770 = vmatmul.f32.gmra.mxu1 %v551_v9  ;;  %v787_v4 = vmax.f32 %v598_v3, 0.0 }
 0x260   :  { %v480_v18 = vpop.f32.mrf.mxu0 }
 0x261   :  { %v481_v19 = vadd.f32 %v3382_v35, %v480_v18  ;;  %v790_v18 = vmax.f32 %v607_v16, 0.0 }
 0x263   :  { %v552_v24 = vmax.f32 %v481_v19, 0.0  ;;  %v791_v19 = vmax.f32 %v610_v41, 0.0 }
 0x265   :  { %773 = vmatmul.f32.gmra.mxu1 %v552_v24  ;;  %v793_v24 = vmax.f32 %v616_v51, 0.0 }
 0x268   :  { %v483_v29 = vpop.f32.mrf.mxu0 }
 0x269   :  { %v484_v31 = vadd.f32 %v3382_v35, %v483_v29  ;;  %v795_v29 = vmax.f32 %v622_v61, 0.0 }
 0x26b   :  { %v553_v34 = vmax.f32 %v484_v31, 0.0  ;;  %v625_v31 = vadd.f32 %v3766_v57, %v3536_v26  ;;  %v2946_v26 = vld [vmem:[%s4917_s2 + $0x150] sm:$0xff] }
 0x26d   :  { %776 = vmatmul.f32.gmra.mxu1 %v553_v34  ;;  %v796_v20 = vmax.f32 %v625_v31, 0.0  ;;  %v2948_v34 = vld [vmem:[%s4917_s2 + $0x160] sm:$0xff] }
 0x270   :  { %v486_v40 = vpop.f32.mrf.mxu0 }
 0x271   :  { %v487_v42 = vadd.f32 %v3382_v35, %v486_v40  ;;  %v2947_v40 = vld [vmem:[%s4917_s2 + $0x158] sm:$0xff] }
 0x273   :  { %v554_v47 = vmax.f32 %v487_v42, 0.0  ;;  %v628_v42 = vadd.f32 %v3766_v57, %v3544_v32  ;;  %v2942_v32 = vld [vmem:[%s4917_s2 + $0x130] sm:$0xff] }
 0x275   :  { %779 = vmatmul.f32.gmra.mxu1 %v554_v47  ;;  %v2945_v47 = vld [vmem:[%s4917_s2 + $0x148] sm:$0xff] }
 0x278   :  { %v489_v33 = vpop.f32.mrf.mxu0 }
 0x279   :  { %v490_v49 = vadd.f32 %v3382_v35, %v489_v33  ;;  %v601_v35 = vadd.f32 %v3766_v57, %v3475_v46  ;;  %v613_v46 = vadd.f32 %v3766_v57, %v3503_v2  ;;  %v2951_v2 = vld [vmem:[%s4917_s2 + $0x178] sm:$0xff]  ;;  %v797_v33 = vmax.f32 %v628_v42, 0.0 }
 0x27a   :  { %1167 = vmatpush.msra.mxu3 %v2951_v2 }
 0x27b   :  { %v555_v50 = vmax.f32 %v490_v49, 0.0  ;;  %v788_v9 = vmax.f32 %v601_v35, 0.0  ;;  %v792_v23 = vmax.f32 %v613_v46, 0.0  ;;  %v2944_v49 = vld [vmem:[%s4917_s2 + $0x140] sm:$0xff]  ;;  %v2938_v35 = vld [vmem:[%s4917_s2 + $0x110] sm:$0xff] }
 0x27c   :  { %1168 = vmatpush.msra.mxu3 %v2950_v8 }
 0x27d   :  { %782 = vmatmul.f32.gmra.mxu1 %v555_v50  ;;  %v2943_v50 = vld [vmem:[%s4917_s2 + $0x138] sm:$0xff] }
 0x27e   :  { %1169 = vmatpush.msra.mxu3 %v2949_v13 }
 0x280   :  { %v594_v59 = vpop.f32.mrf.mxu0  ;;  %1170 = vmatpush.msra.mxu3 %v2948_v34 }
 0x281   :  { %v595_v62 = vadd.f32 %v3766_v57, %v594_v59  ;;  %v631_v59 = vadd.f32 %v3766_v57, %v3551_v39  ;;  %v634_v39 = vadd.f32 %v3766_v57, %v3561_v48  ;;  %v637_v48 = vadd.f32 %v3766_v57, %v3569_v55 }
 0x282   :  { %1171 = vmatpush.msra.mxu3 %v2947_v40  ;;  %v646_v55 = vadd.f32 %v3766_v57, %v3594_v14  ;;  %v652_v14 = vadd.f32 %v3766_v57, %v3610_v28  ;;  %v658_v28 = vadd.f32 %v3766_v57, %v3627_v45  ;;  %v664_v45 = vadd.f32 %v3766_v57, %v3643_v0 }
 0x283   :  { %v786_v1 = vmax.f32 %v595_v62, 0.0  ;;  %v2941_v62 = vld [vmem:[%s4917_s2 + $0x128] sm:$0xff]  ;;  %v798_v3 = vmax.f32 %v631_v59, 0.0  ;;  %v800_v16 = vmax.f32 %v637_v48, 0.0  ;;  %v670_v0 = vadd.f32 %v3766_v57, %v3660_v17 }
 0x284   :  { %1172 = vmatpush.msra.mxu3 %v2946_v26  ;;  %v803_v56 = vmax.f32 %v646_v55, 0.0  ;;  %v805_v13 = vmax.f32 %v652_v14, 0.0  ;;  %v676_v17 = vadd.f32 %v3766_v57, %v3674_v38  ;;  %v682_v38 = vadd.f32 %v3766_v57, %v3680_v52 }
 0x285   :  { %888 = vmatmul.f32.vlgmr.msra.gmra.mxu2 %v786_v1  ;;  %v2940_v1 = vld [vmem:[%s4917_s2 + $0x120] sm:$0xff]  ;;  %v688_v52 = vadd.f32 %v3766_v57, %v3687_v6  ;;  %v694_v6 = vadd.f32 %v3766_v57, %v3693_v22 }
 0x286   :  { %1173 = vmatpush.msra.mxu3 %v2945_v47 }
 0x288   :  { %1174 = vmatpush.msra.mxu3 %v2944_v49  ;;  %v807_v49 = vmax.f32 %v658_v28, 0.0 }
 0x28a   :  { %1175 = vmatpush.msra.mxu3 %v2943_v50 }
 0x28c   :  { %1176 = vmatpush.msra.mxu3 %v2942_v32 }
 0x28d   :  { %891 = vmatmul.f32.gmra.mxu2 %v787_v4  ;;  %v2939_v4 = vld [vmem:[%s4917_s2 + $0x118] sm:$0xff] }
 0x28e   :  { %1177 = vmatpush.msra.mxu3 %v2941_v62 }
 0x290   :  { %1178 = vmatpush.msra.mxu3 %v2940_v1 }
 0x292   :  { %1179 = vmatpush.msra.mxu3 %v2939_v4 }
 0x294   :  { %1180 = vmatpush.msra.mxu3 %v2938_v35 }
 0x295   :  { %894 = vmatmul.f32.gmra.mxu2 %v788_v9  ;;  %v2937_v9 = vld [vmem:[%s4917_s2 + $0x108] sm:$0xff] }
 0x296   :  { %1181 = vmatpush.msra.mxu3 %v2937_v9 }
 0x298   :  { %1182 = vmatpush.msra.mxu3 %v2936_v10 }
 0x29d   :  { %897 = vmatmul.f32.gmra.mxu2 %v789_v11  ;;  %v799_v11 = vmax.f32 %v634_v39, 0.0  ;;  %v809_v39 = vmax.f32 %v664_v45, 0.0 }
 0x2a5   :  { %900 = vmatmul.f32.gmra.mxu2 %v790_v18  ;;  %v640_v18 = vadd.f32 %v3766_v57, %v3577_v63 }
 0x2a7   :  { %v801_v41 = vmax.f32 %v640_v18, 0.0 }
 0x2ad   :  { %903 = vmatmul.f32.gmra.mxu2 %v791_v19  ;;  %v643_v19 = vadd.f32 %v3766_v57, %v3584_v5  ;;  %v649_v5 = vadd.f32 %v3766_v57, %v3602_v21  ;;  %v655_v21 = vadd.f32 %v3766_v57, %v3617_v36  ;;  %v661_v36 = vadd.f32 %v3766_v57, %v3635_v54 }
 0x2ae   :  { %v667_v54 = vadd.f32 %v3766_v57, %v3650_v7  ;;  %v673_v7 = vadd.f32 %v3766_v57, %v3668_v25  ;;  %v679_v25 = vadd.f32 %v3766_v57, %v3677_v44  ;;  %v685_v44 = vadd.f32 %v3766_v57, %v3684_v60 }
 0x2af   :  { %v802_v46 = vmax.f32 %v643_v19, 0.0  ;;  %v806_v26 = vmax.f32 %v655_v21, 0.0  ;;  %v808_v62 = vmax.f32 %v661_v36, 0.0  ;;  %v691_v60 = vadd.f32 %v3766_v57, %v3690_v12  ;;  %v3910_v12 = vld [vmem:[%s4918_s3 + $0x3] ss:$0 sm:$0xff] }
 0x2b1   :  { %v818_v36 = vmax.f32 %v691_v60, 0.0 }
 0x2b5   :  { %906 = vmatmul.f32.gmra.mxu2 %v792_v23  ;;  %v3852_v23 = vld [vmem:[%s4918_s3 + $0x2] ss:$0 sm:$0xff] }
 0x2bd   :  { %909 = vmatmul.f32.gmra.mxu2 %v793_v24 }
 0x2c5   :  { %912 = vmatmul.f32.gmra.mxu2 %v794_v27 }
 0x2cd   :  { %915 = vmatmul.f32.gmra.mxu2 %v795_v29  ;;  %v804_v29 = vmax.f32 %v649_v5, 0.0  ;;  %v813_v5 = vmax.f32 %v676_v17, 0.0 }
 0x2d5   :  { %918 = vmatmul.f32.gmra.mxu2 %v796_v20 }
 0x2dd   :  { %921 = vmatmul.f32.gmra.mxu2 %v797_v33 }
 0x2e5   :  { %924 = vmatmul.f32.gmra.mxu2 %v798_v3 }
 0x2ed   :  { %927 = vmatmul.f32.gmra.mxu2 %v799_v11  ;;  %v810_v11 = vmax.f32 %v667_v54, 0.0 }
 0x2f5   :  { %930 = vmatmul.f32.gmra.mxu2 %v800_v16 }
 0x2fd   :  { %933 = vmatmul.f32.gmra.mxu2 %v801_v41  ;;  %v811_v41 = vmax.f32 %v670_v0, 0.0 }
 0x305   :  { %936 = vmatmul.f32.gmra.mxu2 %v802_v46 }
 0x308   :  { %v889_v51 = vpop.f32.mrf.mxu2 }
 0x309   :  { %v890_v24 = vadd.f32 %v3852_v23, %v889_v51  ;;  %v812_v51 = vmax.f32 %v673_v7, 0.0  ;;  %v703_v7 = vadd.f32 %v3766_v57, %v3742_v15 }
 0x30b   :  { %v1081_v63 = vmax.f32 %v890_v24, 0.0  ;;  %v822_v17 = vmax.f32 %v703_v7, 0.0 }
 0x30d   :  { %939 = vmatmul.f32.gmra.mxu2 %v803_v56  ;;  %1183 = vmatmul.f32.vlgmr.msra.gmra.mxu3 %v1081_v63 }
 0x310   :  { %v892_v27 = vpop.f32.mrf.mxu2 }
 0x311   :  { %v893_v61 = vadd.f32 %v3852_v23, %v892_v27 }
 0x313   :  { %v1082_v2 = vmax.f32 %v893_v61, 0.0 }
 0x315   :  { %942 = vmatmul.f32.gmra.mxu2 %v804_v29  ;;  %1186 = vmatmul.f32.gmra.mxu3 %v1082_v2  ;;  %v814_v2 = vmax.f32 %v679_v25, 0.0 }
 0x318   :  { %v895_v8 = vpop.f32.mrf.mxu2 }
 0x319   :  { %v896_v31 = vadd.f32 %v3852_v23, %v895_v8 }
 0x31b   :  { %v1083_v20 = vmax.f32 %v896_v31, 0.0 }
 0x31d   :  { %945 = vmatmul.f32.gmra.mxu2 %v805_v13  ;;  %1189 = vmatmul.f32.gmra.mxu3 %v1083_v20  ;;  %v815_v13 = vmax.f32 %v682_v38, 0.0 }
 0x320   :  { %v898_v34 = vpop.f32.mrf.mxu2 }
 0x321   :  { %v899_v40 = vadd.f32 %v3852_v23, %v898_v34 }
 0x323   :  { %v1084_v42 = vmax.f32 %v899_v40, 0.0  ;;  %v816_v40 = vmax.f32 %v685_v44, 0.0 }
 0x325   :  { %948 = vmatmul.f32.gmra.mxu2 %v806_v26  ;;  %1192 = vmatmul.f32.gmra.mxu3 %v1084_v42 }
 0x328   :  { %v901_v47 = vpop.f32.mrf.mxu2 }
 0x329   :  { %v902_v33 = vadd.f32 %v3852_v23, %v901_v47  ;;  %v817_v47 = vmax.f32 %v688_v52, 0.0 }
 0x32b   :  { %v1085_v50 = vmax.f32 %v902_v33, 0.0 }
 0x32d   :  { %951 = vmatmul.f32.gmra.mxu2 %v807_v49  ;;  %1195 = vmatmul.f32.gmra.mxu3 %v1085_v50 }
 0x330   :  { %v904_v32 = vpop.f32.mrf.mxu2 }
 0x331   :  { %v905_v59 = vadd.f32 %v3852_v23, %v904_v32 }
 0x333   :  { %v1086_v1 = vmax.f32 %v905_v59, 0.0 }
 0x335   :  { %954 = vmatmul.f32.gmra.mxu2 %v808_v62  ;;  %1198 = vmatmul.f32.gmra.mxu3 %v1086_v1  ;;  %v819_v1 = vmax.f32 %v694_v6, 0.0 }
 0x338   :  { %v907_v3 = vpop.f32.mrf.mxu2 }
 0x339   :  { %v908_v4 = vadd.f32 %v3852_v23, %v907_v3  ;;  %v3905_v3 = vpop.f32.mrf.mxu1 }
 0x33b   :  { %v1087_v35 = vmax.f32 %v908_v4, 0.0  ;;  %v697_v4 = vadd.f32 %v3766_v57, %v3706_v37 }
 0x33d   :  { %957 = vmatmul.f32.gmra.mxu2 %v809_v39  ;;  %1201 = vmatmul.f32.gmra.mxu3 %v1087_v35 }
 0x340   :  { %v910_v9 = vpop.f32.mrf.mxu2 }
 0x341   :  { %v911_v10 = vadd.f32 %v3852_v23, %v910_v9  ;;  %v820_v9 = vmax.f32 %v697_v4, 0.0 }
 0x343   :  { %v1088_v48 = vmax.f32 %v911_v10, 0.0 }
 0x345   :  { %960 = vmatmul.f32.gmra.mxu2 %v810_v11  ;;  %1204 = vmatmul.f32.gmra.mxu3 %v1088_v48  ;;  %v700_v11 = vadd.f32 %v3766_v57, %v3724_v58  ;;  %v3921_v48 = vpop.f32.mrf.mxu1 }
 0x348   :  { %v913_v16 = vpop.f32.mrf.mxu2 }
 0x349   :  { %v914_v18 = vadd.f32 %v3852_v23, %v913_v16 }
 0x34b   :  { %v1089_v19 = vmax.f32 %v914_v18, 0.0 }
 0x34d   :  { %963 = vmatmul.f32.gmra.mxu2 %v811_v41  ;;  %1207 = vmatmul.f32.gmra.mxu3 %v1089_v19  ;;  %v821_v41 = vmax.f32 %v700_v11, 0.0 }
 0x350   :  { %v916_v46 = vpop.f32.mrf.mxu2 }
 0x351   :  { %v917_v55 = vadd.f32 %v3852_v23, %v916_v46 }
 0x353   :  { %v1090_v24 = vmax.f32 %v917_v55, 0.0  ;;  %v720_v55 = vpop.f32.mrf.mxu1 }
 0x355   :  { %966 = vmatmul.f32.gmra.mxu2 %v812_v51  ;;  %1210 = vmatmul.f32.gmra.mxu3 %v1090_v24 }
 0x358   :  { %v919_v56 = vpop.f32.mrf.mxu2 }
 0x359   :  { %v920_v63 = vadd.f32 %v3852_v23, %v919_v56 }
 0x35b   :  { %v1091_v27 = vmax.f32 %v920_v63, 0.0  ;;  %v706_v63 = vadd.f32 %v3766_v57, %v3754_v30 }
 0x35d   :  { %969 = vmatmul.f32.gmra.mxu2 %v813_v5  ;;  %1213 = vmatmul.f32.gmra.mxu3 %v1091_v27 }
 0x360   :  { %v922_v61 = vpop.f32.mrf.mxu2 }
 0x361   :  { %v923_v29 = vadd.f32 %v3852_v23, %v922_v61  ;;  %v823_v61 = vmax.f32 %v706_v63, 0.0 }
 0x363   :  { %v1092_v14 = vmax.f32 %v923_v29, 0.0  ;;  %v723_v29 = vpop.f32.mrf.mxu1 }
 0x365   :  { %972 = vmatmul.f32.gmra.mxu2 %v814_v2  ;;  %1216 = vmatmul.f32.gmra.mxu3 %v1092_v14  ;;  %v709_v14 = vadd.f32 %v3766_v57, %v3758_v43 }
 0x368   :  { %v925_v8 = vpop.f32.mrf.mxu2 }
 0x369   :  { %v926_v31 = vadd.f32 %v3852_v23, %v925_v8 }
 0x36b   :  { %v1093_v20 = vmax.f32 %v926_v31, 0.0  ;;  %v726_v44 = vpop.f32.mrf.mxu1 }
 0x36d   :  { %975 = vmatmul.f32.gmra.mxu2 %v815_v13  ;;  %1219 = vmatmul.f32.gmra.mxu3 %v1093_v20  ;;  %v824_v13 = vmax.f32 %v709_v14, 0.0 }
 0x370   :  { %v928_v21 = vpop.f32.mrf.mxu2 }
 0x371   :  { %v929_v34 = vadd.f32 %v3852_v23, %v928_v21  ;;  %v712_v21 = vadd.f32 %v3766_v57, %v3761_v53 }
 0x373   :  { %v1094_v26 = vmax.f32 %v929_v34, 0.0  ;;  %v825_v52 = vmax.f32 %v712_v21, 0.0 }
 0x375   :  { %978 = vmatmul.f32.gmra.mxu2 %v816_v40  ;;  %1222 = vmatmul.f32.gmra.mxu3 %v1094_v26 }
 0x378   :  { %v931_v42 = vpop.f32.mrf.mxu2 }
 0x379   :  { %v932_v28 = vadd.f32 %v3852_v23, %v931_v42 }
 0x37b   :  { %v1095_v33 = vmax.f32 %v932_v28, 0.0  ;;  %v715_v28 = vadd.f32 %v3766_v57, %v3905_v3 }
 0x37d   :  { %981 = vmatmul.f32.gmra.mxu2 %v817_v47  ;;  %1225 = vmatmul.f32.gmra.mxu3 %v1095_v33  ;;  %v729_v47 = vpop.f32.mrf.mxu1 }
 0x380   :  { %v934_v49 = vpop.f32.mrf.mxu2 }
 0x381   :  { %v935_v50 = vadd.f32 %v3852_v23, %v934_v49 }
 0x383   :  { %v1096_v32 = vmax.f32 %v935_v50, 0.0  ;;  %v826_v50 = vmax.f32 %v715_v28, 0.0 }
 0x385   :  { %984 = vmatmul.f32.gmra.mxu2 %v818_v36  ;;  %1228 = vmatmul.f32.gmra.mxu3 %v1096_v32  ;;  %v718_v32 = vadd.f32 %v3766_v57, %v3921_v48 }
 0x387   :  { %v827_v3 = vmax.f32 %v718_v32, 0.0 }
 0x388   :  { %v937_v59 = vpop.f32.mrf.mxu2 }
 0x389   :  { %v938_v62 = vadd.f32 %v3852_v23, %v937_v59 }
 0x38b   :  { %v1097_v45 = vmax.f32 %v938_v62, 0.0  ;;  %v732_v62 = vpop.f32.mrf.mxu1 }
 0x38d   :  { %987 = vmatmul.f32.gmra.mxu2 %v819_v1  ;;  %1231 = vmatmul.f32.gmra.mxu3 %v1097_v45 }
 0x390   :  { %v940_v39 = vpop.f32.mrf.mxu2  ;;  %v1184_v35 = vpop.f32.mrf.mxu3 }
 0x391   :  { %v941_v22 = vadd.f32 %v3852_v23, %v940_v39  ;;  %v3916_v54 = vadd.f32 %v3910_v12, %v1184_v35  ;;  %v721_v39 = vadd.f32 %v3766_v57, %v720_v55 }
 0x393   :  { %1376 = vmax.xlane.f32.xlu0 %v3916_v54  ;;  %v1098_v10 = vmax.f32 %v941_v22, 0.0  ;;  %v828_v11 = vmax.f32 %v721_v39, 0.0  ;;  %v735_v48 = vpop.f32.mrf.mxu1 }
 0x394   :  { %v736_v28 = vadd.f32 %v3766_v57, %v735_v48 }
 0x395   :  { %990 = vmatmul.f32.gmra.mxu2 %v820_v9  ;;  %1234 = vmatmul.f32.gmra.mxu3 %v1098_v10 }
 0x398   :  { %v943_v0 = vpop.f32.mrf.mxu2  ;;  %v1187_v37 = vpop.f32.mrf.mxu3 }
 0x399   :  { %v944_v16 = vadd.f32 %v3852_v23, %v943_v0  ;;  %v3925_v18 = vadd.f32 %v3910_v12, %v1187_v37  ;;  %v724_v37 = vadd.f32 %v3766_v57, %v723_v29 }
 0x39b   :  { %1378 = vmax.xlane.f32.xlu0 %v3925_v18  ;;  %v1099_v19 = vmax.f32 %v944_v16, 0.0  ;;  %v738_v55 = vpop.f32.mrf.mxu1 }
 0x39d   :  { %993 = vmatmul.f32.gmra.mxu2 %v821_v41  ;;  %1237 = vmatmul.f32.gmra.mxu3 %v1099_v19 }
 0x3a0   :  { %v946_v46 = vpop.f32.mrf.mxu2  ;;  %v1190_v58 = vpop.f32.mrf.mxu3 }
 0x3a1   :  { %v947_v51 = vadd.f32 %v3852_v23, %v946_v46  ;;  %v3932_v24 = vadd.f32 %v3910_v12, %v1190_v58  ;;  %v829_v46 = vmax.f32 %v724_v37, 0.0 }
 0x3a3   :  { %1380 = vmax.xlane.f32.xlu1 %v3932_v24  ;;  %v1100_v56 = vmax.f32 %v947_v51, 0.0  ;;  %v727_v51 = vadd.f32 %v3766_v57, %v726_v44  ;;  %v741_v29 = vpop.f32.mrf.mxu1 }
 0x3a5   :  { %996 = vmatmul.f32.gmra.mxu2 %v822_v17  ;;  %1240 = vmatmul.f32.gmra.mxu3 %v1100_v56 }
 0x3a8   :  { %v949_v5 = vpop.f32.mrf.mxu2  ;;  %v1193_v27 = vpop.f32.mrf.mxu3 }
 0x3a9   :  { %v950_v15 = vadd.f32 %v3852_v23, %v949_v5  ;;  %v3939_v25 = vadd.f32 %v3910_v12, %v1193_v27  ;;  %v830_v27 = vmax.f32 %v727_v51, 0.0 }
 0x3ab   :  { %1382 = vmax.xlane.f32.xlu1 %v3939_v25  ;;  %v1101_v2 = vmax.f32 %v950_v15, 0.0 }
 0x3ad   :  { %999 = vmatmul.f32.gmra.mxu2 %v823_v61  ;;  %1243 = vmatmul.f32.gmra.mxu3 %v1101_v2  ;;  %v730_v61 = vadd.f32 %v3766_v57, %v729_v47 }
 0x3b0   :  { %v952_v38 = vpop.f32.mrf.mxu2  ;;  %v1196_v8 = vpop.f32.mrf.mxu3 }
 0x3b1   :  { %v953_v30 = vadd.f32 %v3852_v23, %v952_v38  ;;  %v3946_v31 = vadd.f32 %v3910_v12, %v1196_v8 }
 0x3b3   :  { %1384 = vmax.xlane.f32.xlu2 %v3946_v31  ;;  %v1102_v20 = vmax.f32 %v953_v30, 0.0  ;;  %v831_v30 = vmax.f32 %v730_v61, 0.0 }
 0x3b5   :  { %1002 = vmatmul.f32.gmra.mxu2 %v824_v13  ;;  %1246 = vmatmul.f32.gmra.mxu3 %v1102_v20  ;;  %v733_v20 = vadd.f32 %v3766_v57, %v732_v62 }
 0x3b8   :  { %v955_v34 = vpop.f32.mrf.mxu2  ;;  %v1199_v40 = vpop.f32.mrf.mxu3 }
 0x3b9   :  { %v956_v43 = vadd.f32 %v3852_v23, %v955_v34  ;;  %v3953_v26 = vadd.f32 %v3910_v12, %v1199_v40  ;;  %v744_v34 = vpop.f32.mrf.mxu1 }
 0x3bb   :  { %1386 = vmax.xlane.f32.xlu2 %v3953_v26  ;;  %v1103_v42 = vmax.f32 %v956_v43, 0.0 }
 0x3bd   :  { %1005 = vmatmul.f32.gmra.mxu2 %v825_v52  ;;  %1249 = vmatmul.f32.gmra.mxu3 %v1103_v42  ;;  %v832_v52 = vmax.f32 %v733_v20, 0.0 }
 0x3c0   :  { %v958_v33 = vpop.f32.mrf.mxu2  ;;  %v1202_v60 = vpop.f32.mrf.mxu3 }
 0x3c1   :  { %v959_v53 = vadd.f32 %v3852_v23, %v958_v33  ;;  %v3960_v49 = vadd.f32 %v3910_v12, %v1202_v60 }
 0x3c3   :  { %1388 = vmax.xlane.f32.xlu0 %v3960_v49  ;;  %v1104_v36 = vmax.f32 %v959_v53, 0.0 }
 0x3c5   :  { %1008 = vmatmul.f32.gmra.mxu2 %v826_v50  ;;  %1252 = vmatmul.f32.gmra.mxu3 %v1104_v36  ;;  %v833_v50 = vmax.f32 %v736_v28, 0.0  ;;  %v747_v36 = vpop.f32.mrf.mxu1 }
 0x3c8   :  { %v961_v6 = vpop.f32.mrf.mxu2  ;;  %v1205_v59 = vpop.f32.mrf.mxu3 }
 0x3c9   :  { %v962_v1 = vadd.f32 %v3852_v23, %v961_v6  ;;  %v3967_v45 = vadd.f32 %v3910_v12, %v1205_v59  ;;  %v739_v6 = vadd.f32 %v3766_v57, %v738_v55  ;;  %v745_v55 = vadd.f32 %v3766_v57, %v744_v34 }
 0x3cb   :  { %v1105_v4 = vmax.f32 %v962_v1, 0.0  ;;  %1390 = vmax.xlane.f32.xlu1 %v3967_v45  ;;  %v836_v61 = vmax.f32 %v745_v55, 0.0 }
 0x3cd   :  { %1011 = vmatmul.f32.gmra.mxu2 %v827_v3  ;;  %1255 = vmatmul.f32.gmra.mxu3 %v1105_v4  ;;  %v834_v4 = vmax.f32 %v739_v6, 0.0 }
 0x3d0   :  { %v964_v35 = vpop.f32.mrf.mxu2  ;;  %v1208_v22 = vpop.f32.mrf.mxu3 }
 0x3d1   :  { %v965_v9 = vadd.f32 %v3852_v23, %v964_v35  ;;  %v3973_v10 = vadd.f32 %v3910_v12, %v1208_v22  ;;  %v750_v35 = vpop.f32.mrf.mxu1 }
 0x3d3   :  { %v1106_v0 = vmax.f32 %v965_v9, 0.0  ;;  %1392 = vmax.xlane.f32.xlu2 %v3973_v10  ;;  %v742_v9 = vadd.f32 %v3766_v57, %v741_v29 }
 0x3d5   :  { %1014 = vmatmul.f32.gmra.mxu2 %v828_v11  ;;  %1258 = vmatmul.f32.gmra.mxu3 %v1106_v0 }
 0x3d8   :  { %v967_v16 = vpop.f32.mrf.mxu2  ;;  %v1211_v41 = vpop.f32.mrf.mxu3 }
 0x3d9   :  { %v968_v19 = vadd.f32 %v3852_v23, %v967_v16  ;;  %v3979_v7 = vadd.f32 %v3910_v12, %v1211_v41  ;;  %v753_v51 = vpop.f32.mrf.mxu1 }
 0x3db   :  { %v1107_v58 = vmax.f32 %v968_v19, 0.0  ;;  %1394 = vmax.xlane.f32.xlu0 %v3979_v7  ;;  %v835_v19 = vmax.f32 %v742_v9, 0.0 }
 0x3dd   :  { %1017 = vmatmul.f32.gmra.mxu2 %v829_v46  ;;  %1261 = vmatmul.f32.gmra.mxu3 %v1107_v58 }
 0x3e0   :  { %v970_v17 = vpop.f32.mrf.mxu2  ;;  %v1214_v56 = vpop.f32.mrf.mxu3 }
 0x3e1   :  { %v971_v63 = vadd.f32 %v3852_v23, %v970_v17  ;;  %v3985_v5 = vadd.f32 %v3910_v12, %v1214_v56 }
 0x3e3   :  { %v1108_v15 = vmax.f32 %v971_v63, 0.0  ;;  %1396 = vmax.xlane.f32.xlu1 %v3985_v5 }
 0x3e5   :  { %1020 = vmatmul.f32.gmra.mxu2 %v830_v27  ;;  %1264 = vmatmul.f32.gmra.mxu3 %v1108_v15 }
 0x3e8   :  { %v973_v2 = vpop.f32.mrf.mxu2  ;;  %v1217_v14 = vpop.f32.mrf.mxu3 }
 0x3e9   :  { %v974_v38 = vadd.f32 %v3852_v23, %v973_v2  ;;  %v3991_v8 = vadd.f32 %v3910_v12, %v1217_v14  ;;  %v748_v14 = vadd.f32 %v3766_v57, %v747_v36 }
 0x3eb   :  { %v1109_v13 = vmax.f32 %v974_v38, 0.0  ;;  %1398 = vmax.xlane.f32.xlu2 %v3991_v8 }
 0x3ed   :  { %1023 = vmatmul.f32.gmra.mxu2 %v831_v30  ;;  %1267 = vmatmul.f32.gmra.mxu3 %v1109_v13 }
 0x3f0   :  { %v976_v44 = vpop.f32.mrf.mxu2  ;;  %v1220_v21 = vpop.f32.mrf.mxu3 }
 0x3f1   :  { %v977_v40 = vadd.f32 %v3852_v23, %v976_v44  ;;  %v3997_v43 = vadd.f32 %v3910_v12, %v1220_v21  ;;  %v756_v44 = vpop.f32.mrf.mxu1 }
 0x3f3   :  { %v1110_v42 = vmax.f32 %v977_v40, 0.0  ;;  %1400 = vmax.xlane.f32.xlu0 %v3997_v43  ;;  %v837_v40 = vmax.f32 %v748_v14, 0.0 }
 0x3f5   :  { %1026 = vmatmul.f32.gmra.mxu2 %v832_v52  ;;  %1270 = vmatmul.f32.gmra.mxu3 %v1110_v42  ;;  %v751_v42 = vadd.f32 %v3766_v57, %v750_v35 }
 0x3f7   :  { %v838_v6 = vmax.f32 %v751_v42, 0.0 }
 0x3f8   :  { %v979_v47 = vpop.f32.mrf.mxu2  ;;  %v1223_v33 = vpop.f32.mrf.mxu3 }
 0x3f9   :  { %v980_v60 = vadd.f32 %v3852_v23, %v979_v47  ;;  %v4003_v53 = vadd.f32 %v3910_v12, %v1223_v33 }
 0x3fb   :  { %v1111_v32 = vmax.f32 %v980_v60, 0.0  ;;  %1402 = vmax.xlane.f32.xlu1 %v4003_v53 }
 0x3fd   :  { %1029 = vmatmul.f32.gmra.mxu2 %v833_v50  ;;  %1273 = vmatmul.f32.gmra.mxu3 %v1111_v32 }
 0x400   :  { %v982_v59 = vpop.f32.mrf.mxu2  ;;  %v1226_v62 = vpop.f32.mrf.mxu3 }
 0x401   :  { %v983_v1 = vadd.f32 %v3852_v23, %v982_v59  ;;  %v4009_v3 = vadd.f32 %v3910_v12, %v1226_v62  ;;  %v759_v59 = vpop.f32.mrf.mxu1 }
 0x403   :  { %v1112_v39 = vmax.f32 %v983_v1, 0.0  ;;  %1404 = vmax.xlane.f32.xlu2 %v4009_v3  ;;  %v754_v1 = vadd.f32 %v3766_v57, %v753_v51 }
 0x405   :  { %1032 = vmatmul.f32.gmra.mxu2 %v834_v4  ;;  %1276 = vmatmul.f32.gmra.mxu3 %v1112_v39 }
 0x406   :  { %v1377_v22 = vpop.xlane.xlu0 %1376 }
 0x407   :  { %v1504_v11 = vsub.f32 %v3916_v54, %v1377_v22 }
 0x408   :  { %v985_v48 = vpop.f32.mrf.mxu2  ;;  %v1229_v0 = vpop.f32.mrf.mxu3 }
 0x409   :  { %v1568_v37 = vmul.f32 1.442695, %v1504_v11  ;;  %v986_v16 = vadd.f32 %v3852_v23, %v985_v48  ;;  %v4016_v41 = vadd.f32 %v3910_v12, %v1229_v0  ;;  %v839_v0 = vmax.f32 %v754_v1, 0.0 }
 0x40b   :  { %2973 = vpow2.f32 %v1568_v37  ;;  %v1113_v46 = vmax.f32 %v986_v16, 0.0  ;;  %1406 = vmax.xlane.f32.xlu0 %v4016_v41  ;;  %v762_v16 = vpop.f32.mrf.mxu1 }
 0x40d   :  { %1035 = vmatmul.f32.gmra.mxu2 %v835_v19  ;;  %1279 = vmatmul.f32.gmra.mxu3 %v1113_v46  ;;  %v757_v19 = vadd.f32 %v3766_v57, %v756_v44 }
 0x40e   :  { %v1379_v58 = vpop.xlane.xlu0 %1378 }
 0x40f   :  { %v1505_v54 = vsub.f32 %v3925_v18, %v1379_v58 }
 0x410   :  { %v988_v17 = vpop.f32.mrf.mxu2  ;;  %v1232_v56 = vpop.f32.mrf.mxu3 }
 0x411   :  { %v4021_v63 = vpop.eup %2973  ;;  %v1570_v27 = vmul.f32 1.442695, %v1505_v54  ;;  %v989_v15 = vadd.f32 %v3852_v23, %v988_v17  ;;  %v4028_v13 = vadd.f32 %v3910_v12, %v1232_v56 }
 0x412   :  { %1696 = vadd.xlane.f32.xlu1 %v4021_v63 }
 0x413   :  { %2975 = vpow2.f32 %v1570_v27  ;;  %v1114_v29 = vmax.f32 %v989_v15, 0.0  ;;  %v840_v27 = vmax.f32 %v757_v19, 0.0 }
 0x415   :  { %1038 = vmatmul.f32.gmra.mxu2 %v836_v61  ;;  %1282 = vmatmul.f32.gmra.mxu3 %v1114_v29  ;;  %v760_v61 = vadd.f32 %v3766_v57, %v759_v59  ;;  %v765_v29 = vpop.f32.mrf.mxu1 }
 0x416   :  { %v1381_v2 = vpop.xlane.xlu1 %1380 }
 0x417   :  { %v1506_v38 = vsub.f32 %v3932_v24, %v1381_v2 }
 0x418   :  { %v991_v18 = vpop.f32.mrf.mxu2  ;;  %v1235_v30 = vpop.f32.mrf.mxu3 }
 0x419   :  { %v4030_v20 = vpop.eup %2975  ;;  %v1572_v21 = vmul.f32 1.442695, %v1506_v38  ;;  %v992_v34 = vadd.f32 %v3852_v23, %v991_v18  ;;  %v4038_v60 = vadd.f32 %v3910_v12, %v1235_v30 }
 0x41a   :  { %1408 = vmax.xlane.f32.xlu1 %v4028_v13  ;;  %1698 = vadd.xlane.f32.xlu2 %v4030_v20 }
 0x41b   :  { %2977 = vpow2.f32 %v1572_v21  ;;  %v1115_v52 = vmax.f32 %v992_v34, 0.0  ;;  %v841_v34 = vmax.f32 %v760_v61, 0.0 }
 0x41d   :  { %1041 = vmatmul.f32.gmra.mxu2 %v837_v40  ;;  %1285 = vmatmul.f32.gmra.mxu3 %v1115_v52  ;;  %v763_v52 = vadd.f32 %v3766_v57, %v762_v16 }
 0x41e   :  { %v1383_v24 = vpop.xlane.xlu1 %1382 }
 0x41f   :  { %v1507_v28 = vsub.f32 %v3939_v25, %v1383_v24  ;;  %v842_v59 = vmax.f32 %v763_v52, 0.0 }
 0x420   :  { %v994_v47 = vpop.f32.mrf.mxu2  ;;  %v1238_v33 = vpop.f32.mrf.mxu3 }
 0x421   :  { %v4040_v50 = vpop.eup %2977  ;;  %v1574_v36 = vmul.f32 1.442695, %v1507_v28  ;;  %v995_v32 = vadd.f32 %v3852_v23, %v994_v47  ;;  %v4048_v22 = vadd.f32 %v3910_v12, %v1238_v33 }
 0x422   :  { %1700 = vadd.xlane.f32.xlu0 %v4040_v50  ;;  %1410 = vmax.xlane.f32.xlu2 %v4038_v60 }
 0x423   :  { %2979 = vpow2.f32 %v1574_v36  ;;  %v1116_v62 = vmax.f32 %v995_v32, 0.0  ;;  %v768_v36 = vpop.f32.mrf.mxu1 }
 0x425   :  { %1044 = vmatmul.f32.gmra.mxu2 %v838_v6  ;;  %1288 = vmatmul.f32.gmra.mxu3 %v1116_v62 }
 0x426   :  { %v1385_v25 = vpop.xlane.xlu2 %1384 }
 0x427   :  { %v1508_v4 = vsub.f32 %v3946_v31, %v1385_v25  ;;  %v766_v25 = vadd.f32 %v3766_v57, %v765_v29 }
 0x428   :  { %v997_v39 = vpop.f32.mrf.mxu2  ;;  %v1241_v35 = vpop.f32.mrf.mxu3 }
 0x429   :  { %v4050_v9 = vpop.eup %2979  ;;  %v1576_v11 = vmul.f32 1.442695, %v1508_v4  ;;  %v998_v48 = vadd.f32 %v3852_v23, %v997_v39  ;;  %v4058_v51 = vadd.f32 %v3910_v12, %v1241_v35 }
 0x42a   :  { %1412 = vmax.xlane.f32.xlu0 %v4048_v22  ;;  %1702 = vadd.xlane.f32.xlu1 %v4050_v9 }
 0x42b   :  { %2981 = vpow2.f32 %v1576_v11  ;;  %v1117_v37 = vmax.f32 %v998_v48, 0.0  ;;  %v771_v16 = vpop.f32.mrf.mxu1 }
 0x42d   :  { %1047 = vmatmul.f32.gmra.mxu2 %v839_v0  ;;  %1291 = vmatmul.f32.gmra.mxu3 %v1117_v37  ;;  %v843_v37 = vmax.f32 %v766_v25, 0.0 }
 0x42e   :  { %v1387_v31 = vpop.xlane.xlu2 %1386 }
 0x42f   :  { %v1509_v46 = vsub.f32 %v3953_v26, %v1387_v31  ;;  %v4098_v31 = vld [vmem:[%s4918_s3 + $0x1] ss:$0 sm:$0xff] }
 0x430   :  { %v1000_v58 = vpop.f32.mrf.mxu2  ;;  %v1244_v55 = vpop.f32.mrf.mxu3  ;;  %v769_v19 = vadd.f32 %v4098_v31, %v768_v36 }
 0x431   :  { %v4060_v54 = vpop.eup %2981  ;;  %v1578_v17 = vmul.f32 1.442695, %v1509_v46  ;;  %v1001_v56 = vadd.f32 %v3852_v23, %v1000_v58  ;;  %v4068_v18 = vadd.f32 %v3910_v12, %v1244_v55 }
 0x432   :  { %1414 = vmax.xlane.f32.xlu1 %v4058_v51  ;;  %1704 = vadd.xlane.f32.xlu2 %v4060_v54 }
 0x433   :  { %2983 = vpow2.f32 %v1578_v17  ;;  %v1118_v15 = vmax.f32 %v1001_v56, 0.0  ;;  %v774_v29 = vpop.f32.mrf.mxu1 }
 0x435   :  { %1050 = vmatmul.f32.gmra.mxu2 %v840_v27  ;;  %1294 = vmatmul.f32.gmra.mxu3 %v1118_v15 }
 0x436   :  { %v1389_v26 = vpop.xlane.xlu0 %1388 }
 0x437   :  { %v1510_v2 = vsub.f32 %v3960_v49, %v1389_v26  ;;  %v844_v26 = vmax.f32 %v769_v19, 0.0 }
 0x438   :  { %v1003_v14 = vpop.f32.mrf.mxu2  ;;  %v1247_v38 = vpop.f32.mrf.mxu3 }
 0x439   :  { %v4070_v30 = vpop.eup %2983  ;;  %v1580_v44 = vmul.f32 1.442695, %v1510_v2  ;;  %v1004_v21 = vadd.f32 %v3852_v23, %v1003_v14  ;;  %v4078_v47 = vadd.f32 %v3910_v12, %v1247_v38  ;;  %v772_v2 = vadd.f32 %v4098_v31, %v771_v16 }
 0x43a   :  { %1706 = vadd.xlane.f32.xlu0 %v4070_v30  ;;  %1416 = vmax.xlane.f32.xlu2 %v4068_v18 }
 0x43b   :  { %2985 = vpow2.f32 %v1580_v44  ;;  %v1119_v40 = vmax.f32 %v1004_v21, 0.0  ;;  %v845_v52 = vmax.f32 %v772_v2, 0.0 }
 0x43d   :  { %1053 = vmatmul.f32.gmra.mxu2 %v841_v34  ;;  %1297 = vmatmul.f32.gmra.mxu3 %v1119_v40 }
 0x43e   :  { %v1391_v49 = vpop.xlane.xlu1 %1390 }
 0x43f   :  { %v1511_v24 = vsub.f32 %v3967_v45, %v1391_v49 }
 0x440   :  { %v1006_v42 = vpop.f32.mrf.mxu2  ;;  %v1250_v28 = vpop.f32.mrf.mxu3 }
 0x441   :  { %v4080_v33 = vpop.eup %2985  ;;  %v1582_v32 = vmul.f32 1.442695, %v1511_v24  ;;  %v1007_v6 = vadd.f32 %v3852_v23, %v1006_v42  ;;  %v4088_v35 = vadd.f32 %v3910_v12, %v1250_v28  ;;  %v775_v42 = vadd.f32 %v4098_v31, %v774_v29  ;;  %v777_v28 = vpop.f32.mrf.mxu1 }
 0x442   :  { %1418 = vmax.xlane.f32.xlu0 %v4078_v47  ;;  %1708 = vadd.xlane.f32.xlu1 %v4080_v33 }
 0x443   :  { %2987 = vpow2.f32 %v1582_v32  ;;  %v1120_v62 = vmax.f32 %v1007_v6, 0.0 }
 0x445   :  { %1056 = vmatmul.f32.gmra.mxu2 %v842_v59  ;;  %1300 = vmatmul.f32.gmra.mxu3 %v1120_v62 }
 0x446   :  { %v1393_v45 = vpop.xlane.xlu2 %1392 }
 0x447   :  { %v1512_v1 = vsub.f32 %v3973_v10, %v1393_v45 }
 0x448   :  { %v1009_v4 = vpop.f32.mrf.mxu2  ;;  %v1253_v39 = vpop.f32.mrf.mxu3 }
 0x449   :  { %v4090_v11 = vpop.eup %2987  ;;  %v1584_v48 = vmul.f32 1.442695, %v1512_v1  ;;  %v1010_v0 = vadd.f32 %v3852_v23, %v1009_v4  ;;  %v4103_v17 = vadd.f32 %v3910_v12, %v1253_v39  ;;  %v846_v1 = vmax.f32 %v775_v42, 0.0 }
 0x44a   :  { %1710 = vadd.xlane.f32.xlu2 %v4090_v11  ;;  %1420 = vmax.xlane.f32.xlu1 %v4088_v35  ;;  %v778_v39 = vadd.f32 %v4098_v31, %v777_v28 }
 0x44b   :  { %2989 = vpow2.f32 %v1584_v48  ;;  %v1121_v57 = vmax.f32 %v1010_v0, 0.0 }
 0x44d   :  { %1059 = vmatmul.f32.gmra.mxu2 %v843_v37  ;;  %1303 = vmatmul.f32.gmra.mxu3 %v1121_v57 }
 0x44e   :  { %v1395_v10 = vpop.xlane.xlu0 %1394 }
 0x44f   :  { %v1513_v46 = vsub.f32 %v3979_v7, %v1395_v10 }
 0x450   :  { %v1012_v58 = vpop.f32.mrf.mxu2  ;;  %v1256_v55 = vpop.f32.mrf.mxu3 }
 0x451   :  { %v4105_v56 = vpop.eup %2989  ;;  %v1586_v27 = vmul.f32 1.442695, %v1513_v46  ;;  %v1013_v15 = vadd.f32 %v3852_v23, %v1012_v58  ;;  %v4113_v21 = vadd.f32 %v3910_v12, %v1256_v55  ;;  %v780_v46 = vpop.f32.mrf.mxu1  ;;  %v847_v58 = vmax.f32 %v778_v39, 0.0 }
 0x452   :  { %1712 = vadd.xlane.f32.xlu0 %v4105_v56  ;;  %1422 = vmax.xlane.f32.xlu2 %v4103_v17 }
 0x453   :  { %2991 = vpow2.f32 %v1586_v27  ;;  %v1122_v61 = vmax.f32 %v1013_v15, 0.0  ;;  %v781_v27 = vadd.f32 %v4098_v31, %v780_v46 }
 0x455   :  { %1062 = vmatmul.f32.gmra.mxu2 %v844_v26  ;;  %1306 = vmatmul.f32.gmra.mxu3 %v1122_v61 }
 0x456   :  { %v1397_v7 = vpop.xlane.xlu1 %1396 }
 0x457   :  { %v1514_v14 = vsub.f32 %v3985_v5, %v1397_v7 }
 0x458   :  { %v1015_v38 = vpop.f32.mrf.mxu2  ;;  %v1259_v44 = vpop.f32.mrf.mxu3 }
 0x459   :  { %v4115_v34 = vpop.eup %2991  ;;  %v1588_v40 = vmul.f32 1.442695, %v1514_v14  ;;  %v1016_v49 = vadd.f32 %v3852_v23, %v1015_v38  ;;  %v4123_v59 = vadd.f32 %v3910_v12, %v1259_v44  ;;  %v848_v38 = vmax.f32 %v781_v27, 0.0 }
 0x45a   :  { %1424 = vmax.xlane.f32.xlu0 %v4113_v21  ;;  %1714 = vadd.xlane.f32.xlu1 %v4115_v34 }
 0x45b   :  { %2993 = vpow2.f32 %v1588_v40  ;;  %v1123_v24 = vmax.f32 %v1016_v49, 0.0  ;;  %v783_v40 = vpop.f32.mrf.mxu1 }
 0x45c   :  { %v784_v49 = vadd.f32 %v4098_v31, %v783_v40 }
 0x45d   :  { %1065 = vmatmul.f32.gmra.mxu2 %v845_v52  ;;  %1309 = vmatmul.f32.gmra.mxu3 %v1123_v24 }
 0x45e   :  { %v1399_v5 = vpop.xlane.xlu2 %1398 }
 0x45f   :  { %v1515_v36 = vsub.f32 %v3991_v8, %v1399_v5 }
 0x460   :  { %v1018_v32 = vpop.f32.mrf.mxu2  ;;  %v1262_v6 = vpop.f32.mrf.mxu3 }
 0x461   :  { %v4125_v62 = vpop.eup %2993  ;;  %v1590_v45 = vmul.f32 1.442695, %v1515_v36  ;;  %v1019_v25 = vadd.f32 %v3852_v23, %v1018_v32  ;;  %v4133_v16 = vadd.f32 %v3910_v12, %v1262_v6  ;;  %v4160_v36 = vld [vmem:[%s4918_s3 + $0x2] ss:$0 sm:$0xff] }
 0x462   :  { %1716 = vadd.xlane.f32.xlu2 %v4125_v62  ;;  %1426 = vmax.xlane.f32.xlu1 %v4123_v59 }
 0x463   :  { %2995 = vpow2.f32 %v1590_v45  ;;  %v1124_v4 = vmax.f32 %v1019_v25, 0.0 }
 0x465   :  { %1068 = vmatmul.f32.gmra.mxu2 %v846_v1  ;;  %1312 = vmatmul.f32.gmra.mxu3 %v1124_v4 }
 0x466   :  { %v1401_v8 = vpop.xlane.xlu0 %1400 }
 0x467   :  { %v1516_v48 = vsub.f32 %v3997_v43, %v1401_v8 }
 0x468   :  { %v1021_v0 = vpop.f32.mrf.mxu2  ;;  %v1265_v37 = vpop.f32.mrf.mxu3 }
 0x469   :  { %v4135_v57 = vpop.eup %2995  ;;  %v1592_v10 = vmul.f32 1.442695, %v1516_v48  ;;  %v1022_v19 = vadd.f32 %v3852_v23, %v1021_v0  ;;  %v4143_v29 = vadd.f32 %v3910_v12, %v1265_v37 }
 0x46a   :  { %1718 = vadd.xlane.f32.xlu0 %v4135_v57  ;;  %1428 = vmax.xlane.f32.xlu2 %v4133_v16 }
 0x46b   :  { %2997 = vpow2.f32 %v1592_v10  ;;  %v1125_v55 = vmax.f32 %v1022_v19, 0.0 }
 0x46d   :  { %1071 = vmatmul.f32.gmra.mxu2 %v847_v58  ;;  %1315 = vmatmul.f32.gmra.mxu3 %v1125_v55 }
 0x46e   :  { %v1403_v43 = vpop.xlane.xlu1 %1402 }
 0x46f   :  { %v1517_v15 = vsub.f32 %v4003_v53, %v1403_v43 }
 0x470   :  { %v1024_v26 = vpop.f32.mrf.mxu2  ;;  %v1268_v61 = vpop.f32.mrf.mxu3 }
 0x471   :  { %v4145_v7 = vpop.eup %2997  ;;  %v1594_v2 = vmul.f32 1.442695, %v1517_v15  ;;  %v1025_v14 = vadd.f32 %v3852_v23, %v1024_v26  ;;  %v4153_v42 = vadd.f32 %v3910_v12, %v1268_v61 }
 0x472   :  { %1430 = vmax.xlane.f32.xlu0 %v4143_v29  ;;  %1720 = vadd.xlane.f32.xlu1 %v4145_v7 }
 0x473   :  { %2999 = vpow2.f32 %v1594_v2  ;;  %v1126_v44 = vmax.f32 %v1025_v14, 0.0 }
 0x475   :  { %1074 = vmatmul.f32.gmra.mxu2 %v848_v38  ;;  %1318 = vmatmul.f32.gmra.mxu3 %v1126_v44 }
 0x476   :  { %v1405_v53 = vpop.xlane.xlu2 %1404 }
 0x477   :  { %v1518_v52 = vsub.f32 %v4009_v3, %v1405_v53  ;;  %v849_v3 = vmax.f32 %v784_v49, 0.0 }
 0x478   :  { %v1027_v24 = vpop.f32.mrf.mxu2  ;;  %v1271_v5 = vpop.f32.mrf.mxu3 }
 0x479   :  { %v4155_v23 = vpop.eup %2999  ;;  %v1596_v28 = vmul.f32 1.442695, %v1518_v52  ;;  %v1028_v32 = vadd.f32 %v4160_v36, %v1027_v24  ;;  %v4167_v4 = vadd.f32 %v3910_v12, %v1271_v5 }
 0x47a   :  { %1722 = vadd.xlane.f32.xlu2 %v4155_v23  ;;  %1432 = vmax.xlane.f32.xlu1 %v4153_v42 }
 0x47b   :  { %3001 = vpow2.f32 %v1596_v28  ;;  %v1127_v31 = vmax.f32 %v1028_v32, 0.0 }
 0x47d   :  { %1077 = vmatmul.f32.gmra.mxu2 %v849_v3  ;;  %1321 = vmatmul.f32.gmra.mxu3 %v1127_v31 }
 0x47e   :  { %v1407_v6 = vpop.xlane.xlu0 %1406 }
 0x47f   :  { %v1519_v45 = vsub.f32 %v4016_v41, %v1407_v6 }
 0x480   :  { %v1030_v25 = vpop.f32.mrf.mxu2  ;;  %v1274_v1 = vpop.f32.mrf.mxu3 }
 0x481   :  { %v4169_v8 = vpop.eup %3001  ;;  %v1598_v39 = vmul.f32 1.442695, %v1519_v45  ;;  %v1031_v48 = vadd.f32 %v4160_v36, %v1030_v25  ;;  %v4175_v19 = vadd.f32 %v3910_v12, %v1274_v1 }
 0x482   :  { %1724 = vadd.xlane.f32.xlu0 %v4169_v8  ;;  %1434 = vmax.xlane.f32.xlu2 %v4167_v4 }
 0x483   :  { %3003 = vpow2.f32 %v1598_v39  ;;  %v1128_v0 = vmax.f32 %v1031_v48, 0.0 }
 0x485   :  { %1324 = vmatmul.f32.gmra.mxu3 %v1128_v0  ;;  %v1697_v37 = vpop.xlane.xlu1 %1696 }
 0x486   :  { %3005 = vrcp.f32 %v1697_v37  ;;  %v1835_v14 = vand.u32 2147483648, %v1697_v37  ;;  %v1833_v52 = vand.u32 2147483647, %v1697_v37  ;;  %vm1829_vm3 = vweird.f32 %v1697_v37 }
 0x488   :  { %v1033_v41 = vpop.f32.mrf.mxu2  ;;  %v1277_v10 = vpop.f32.mrf.mxu3  ;;  %v1836_v32 = vor.u32 1.1754944e-38, %v1835_v14  ;;  %vm1834_vm5 = vcmp.eq.f32.partialorder %v1833_v52, 8.507059e+37 }
 0x489   :  { %v4177_v46 = vpop.eup %3003  ;;  %v1034_v58 = vadd.f32 %v4160_v36, %v1033_v41  ;;  %v4184_v53 = vadd.f32 %v3910_v12, %v1277_v10 }
 0x48a   :  { %1436 = vmax.xlane.f32.xlu0 %v4175_v19  ;;  %1726 = vadd.xlane.f32.xlu1 %v4177_v46 }
 0x48b   :  { %v1129_v55 = vmax.f32 %v1034_v58, 0.0 }
 0x48c   :  { %v3006_v43 = vpop.eup %3005 }
 0x48d   :  { %v1825_v27 = vmul.f32 %v3006_v43, %v1697_v37  ;;  %1327 = vmatmul.f32.gmra.mxu3 %v1129_v55  ;;  %v1409_v15 = vpop.xlane.xlu1 %1408  ;;  %v1699_v26 = vpop.xlane.xlu2 %1698  ;;  %vm1830_vm2 = vweird.f32 %v3006_v43 }
 0x48e   :  { %v1520_v61 = vsub.f32 %v4028_v13, %v1409_v15  ;;  %3007 = vrcp.f32 %v1699_v26  ;;  %vm1831_vm4 = vmor %vm1829_vm3, %vm1830_vm2  ;;  %v1850_v37 = vand.u32 2147483648, %v1699_v26  ;;  %vm1844_vm8 = vweird.f32 %v1699_v26 }
 0x48f   :  { %v1826_v2 = vsub.f32 1.0, %v1825_v27 }
 0x490   :  { %v1600_v38 = vmul.f32 1.442695, %v1520_v61  ;;  %v1036_v44 = vpop.f32.mrf.mxu2  ;;  %v1280_v40 = vpop.f32.mrf.mxu3  ;;  %v1851_v61 = vor.u32 1.1754944e-38, %v1850_v37 }
 0x491   :  { %v1827_v49 = vmul.f32 %v3006_v43, %v1826_v2  ;;  %v1037_v24 = vadd.f32 %v4160_v36, %v1036_v44 }
 0x492   :  { %3009 = vpow2.f32 %v1600_v38  ;;  %1438 = vmax.xlane.f32.xlu1 %v4184_v53 }
 0x493   :  { %v1828_v5 = vadd.f32 %v3006_v43, %v1827_v49  ;;  %v1130_v13 = vmax.f32 %v1037_v24, 0.0 }
 0x494   :  { %v3008_v28 = vpop.eup %3007 }
 0x495   :  { %v1832_v3 = vsel %vm1831_vm4, %v3006_v43, %v1828_v5  ;;  %v1840_v31 = vmul.f32 %v3008_v28, %v1699_v26  ;;  %1330 = vmatmul.f32.gmra.mxu3 %v1130_v13  ;;  %v1411_v6 = vpop.xlane.xlu2 %1410  ;;  %v1701_v45 = vpop.xlane.xlu0 %1700  ;;  %vm1845_vm7 = vweird.f32 %v3008_v28  ;;  %v1848_v43 = vand.u32 2147483647, %v1699_v26 }
 0x496   :  { %v1837_v25 = vsel %vm1834_vm5, %v1836_v32, %v1832_v3  ;;  %v1521_v1 = vsub.f32 %v4038_v60, %v1411_v6  ;;  %3011 = vrcp.f32 %v1701_v45  ;;  %vm1846_vm9 = vmor %vm1844_vm8, %vm1845_vm7  ;;  %v4201_v13 = vadd.f32 %v3910_v12, %v1280_v40 }
 0x497   :  { %v1838_v39 = vmul.f32 %v4021_v63, %v1837_v25  ;;  %v1841_v48 = vsub.f32 1.0, %v1840_v31  ;;  %vm1849_vm10 = vcmp.eq.f32.partialorder %v1848_v43, 8.507059e+37  ;;  %v1863_v32 = vand.u32 2147483647, %v1701_v45 }
 0x498   :  { %v4190_v0 = vpop.eup %3009  ;;  %v1602_v41 = vmul.f32 1.442695, %v1521_v1  ;;  %v1039_v10 = vpop.f32.mrf.mxu2  ;;  %v1865_v3 = vand.u32 2147483648, %v1701_v45  ;;  %vm1859_vm12 = vweird.f32 %v1701_v45 }
 0x499   :  { %v1283_v58 = vpop.f32.mrf.mxu3  ;;  %2785 = vst.msk [vmem:[%s4919_s4] sm:$0xff] %vm2784_vm6, %v1838_v39  ;;  %v1842_v55 = vmul.f32 %v3008_v28, %v1841_v48  ;;  %v1040_v60 = vadd.f32 %v4160_v36, %v1039_v10  ;;  %1728 = vadd.xlane.f32.xlu2 %v4190_v0  ;;  %vm1864_vm14 = vcmp.eq.f32.partialorder %v1863_v32, 8.507059e+37 }
 0x49a   :  { %3013 = vpow2.f32 %v1602_v41  ;;  %v1866_v1 = vor.u32 1.1754944e-38, %v1865_v3 }
 0x49b   :  { %v1843_v63 = vadd.f32 %v3008_v28, %v1842_v55  ;;  %v1131_v27 = vmax.f32 %v1040_v60, 0.0 }
 0x49c   :  { %v3012_v15 = vpop.eup %3011 }
 0x49d   :  { %v1847_v2 = vsel %vm1846_vm9, %v3008_v28, %v1843_v63  ;;  %v1855_v14 = vmul.f32 %v3012_v15, %v1701_v45  ;;  %1333 = vmatmul.f32.gmra.mxu3 %v1131_v27  ;;  %v1703_v38 = vpop.xlane.xlu1 %1702  ;;  %v1413_v44 = vpop.xlane.xlu0 %1412  ;;  %vm1860_vm11 = vweird.f32 %v3012_v15  ;;  %v4219_v45 = vld [vmem:[%s4918_s3 + $0x3] ss:$0 sm:$0xff] }
 0x49e   :  { %v1852_v49 = vsel %vm1849_vm10, %v1851_v61, %v1847_v2  ;;  %3015 = vrcp.f32 %v1703_v38  ;;  %v1522_v5 = vsub.f32 %v4048_v22, %v1413_v44  ;;  %vm1861_vm13 = vmor %vm1859_vm12, %vm1860_vm11  ;;  %v4222_v63 = vadd.f32 %v4219_v45, %v1283_v58 }
 0x49f   :  { %v1853_v52 = vmul.f32 %v4030_v20, %v1852_v49  ;;  %v1856_v24 = vsub.f32 1.0, %v1855_v14  ;;  %v1880_v27 = vand.u32 2147483648, %v1703_v38  ;;  %vm1874_vm0 = vweird.f32 %v1703_v38 }
 0x4a0   :  { %v4203_v26 = vpop.eup %3013  ;;  %v1042_v28 = vpop.f32.mrf.mxu2  ;;  %v1604_v20 = vmul.f32 1.442695, %v1522_v5 }
 0x4a1   :  { %v4205_v31 = vpop.f32.mrf.mxu3  ;;  %2786 = vst.msk [vmem:[%s4919_s4 + $0x8] sm:$0xff] %vm2784_vm6, %v1853_v52  ;;  %v1857_v6 = vmul.f32 %v3012_v15, %v1856_v24  ;;  %v1043_v22 = vadd.f32 %v4160_v36, %v1042_v28  ;;  %1440 = vmax.xlane.f32.xlu2 %v4201_v13  ;;  %1730 = vadd.xlane.f32.xlu0 %v4203_v26  ;;  %v1881_v24 = vor.u32 1.1754944e-38, %v1880_v27 }
 0x4a2   :  { %3017 = vpow2.f32 %v1604_v20 }
 0x4a3   :  { %v1858_v12 = vadd.f32 %v3012_v15, %v1857_v6  ;;  %v1132_v40 = vmax.f32 %v1043_v22, 0.0 }
 0x4a4   :  { %v3016_v25 = vpop.eup %3015 }
 0x4a5   :  { %v1862_v39 = vsel %vm1861_vm13, %v3012_v15, %v1858_v12  ;;  %v1870_v48 = vmul.f32 %v3016_v25, %v1703_v38  ;;  %1336 = vmatmul.f32.gmra.mxu3 %v1132_v40  ;;  %v1415_v37 = vpop.xlane.xlu1 %1414  ;;  %v1705_v41 = vpop.xlane.xlu2 %1704  ;;  %vm1875_vm15 = vweird.f32 %v3016_v25 }
 0x4a6   :  { %v1867_v10 = vsel %vm1864_vm14, %v1866_v1, %v1862_v39  ;;  %v1523_v55 = vsub.f32 %v4058_v51, %v1415_v37  ;;  %3019 = vrcp.f32 %v1705_v41  ;;  %v1878_v51 = vand.u32 2147483647, %v1703_v38  ;;  %vm1876_vm1 = vmor %vm1874_vm0, %vm1875_vm15 }
 0x4a7   :  { %v1868_v43 = vmul.f32 %v4040_v50, %v1867_v10  ;;  %v1871_v60 = vsub.f32 1.0, %v1870_v48  ;;  %v1895_v38 = vand.u32 2147483648, %v1705_v41  ;;  %v1893_v37 = vand.u32 2147483647, %v1705_v41 }
 0x4a8   :  { %v1606_v15 = vmul.f32 1.442695, %v1523_v55  ;;  %v1045_v61 = vpop.f32.mrf.mxu2  ;;  %v4224_v14 = vpop.eup %3017  ;;  %vm1879_vm2 = vcmp.eq.f32.partialorder %v1878_v51, 8.507059e+37  ;;  %vm1889_vm4 = vweird.f32 %v1705_v41 }
 0x4a9   :  { %v1289_v2 = vpop.f32.mrf.mxu3  ;;  %2787 = vst.msk [vmem:[%s4919_s4 + $0x10] sm:$0xff] %vm2784_vm6, %v1868_v43  ;;  %v1872_v50 = vmul.f32 %v3016_v25, %v1871_v60  ;;  %v1046_v44 = vadd.f32 %v4160_v36, %v1045_v61  ;;  %1442 = vmax.xlane.f32.xlu0 %v4222_v63  ;;  %1732 = vadd.xlane.f32.xlu1 %v4224_v14  ;;  %v1896_v43 = vor.u32 1.1754944e-38, %v1895_v38  ;;  %vm1894_vm7 = vcmp.eq.f32.partialorder %v1893_v37, 8.507059e+37 }
 0x4aa   :  { %3021 = vpow2.f32 %v1606_v15 }
 0x4ab   :  { %v1873_v58 = vadd.f32 %v3016_v25, %v1872_v50  ;;  %v1133_v49 = vmax.f32 %v1046_v44, 0.0 }
 0x4ac   :  { %v3020_v52 = vpop.eup %3019 }
 0x4ad   :  { %v1877_v5 = vsel %vm1876_vm1, %v3016_v25, %v1873_v58  ;;  %v1885_v32 = vmul.f32 %v3020_v52, %v1705_v41  ;;  %1339 = vmatmul.f32.gmra.mxu3 %v1133_v49  ;;  %v1417_v3 = vpop.xlane.xlu2 %1416  ;;  %v1707_v28 = vpop.xlane.xlu0 %1706  ;;  %v4239_v25 = vadd.f32 %v4219_v45, %v4205_v31  ;;  %vm1890_vm3 = vweird.f32 %v3020_v52 }
 0x4ae   :  { %v1882_v6 = vsel %vm1879_vm2, %v1881_v24, %v1877_v5  ;;  %v1524_v20 = vsub.f32 %v4068_v18, %v1417_v3  ;;  %3023 = vrcp.f32 %v1707_v28  ;;  %vm1891_vm5 = vmor %vm1889_vm4, %vm1890_vm3  ;;  %v4251_v49 = vadd.f32 %v4219_v45, %v1289_v2 }
 0x4af   :  { %v1883_v22 = vmul.f32 %v4050_v9, %v1882_v6  ;;  %v1886_v12 = vsub.f32 1.0, %v1885_v32  ;;  %v1908_v24 = vand.u32 2147483647, %v1707_v28  ;;  %v1910_v5 = vand.u32 2147483648, %v1707_v28 }
 0x4b0   :  { %v4235_v40 = vpop.eup %3021  ;;  %v1608_v1 = vmul.f32 1.442695, %v1524_v20  ;;  %v1048_v39 = vpop.f32.mrf.mxu2  ;;  %vm1904_vm9 = vweird.f32 %v1707_v28 }
 0x4b1   :  { %v1292_v48 = vpop.f32.mrf.mxu3  ;;  %2788 = vst.msk [vmem:[%s4919_s4 + $0x18] sm:$0xff] %vm2784_vm6, %v1883_v22  ;;  %v1887_v18 = vmul.f32 %v3020_v52, %v1886_v12  ;;  %v1049_v9 = vadd.f32 %v4160_v36, %v1048_v39  ;;  %1734 = vadd.xlane.f32.xlu2 %v4235_v40  ;;  %1444 = vmax.xlane.f32.xlu1 %v4239_v25  ;;  %v1911_v22 = vor.u32 1.1754944e-38, %v1910_v5  ;;  %vm1909_vm11 = vcmp.eq.f32.partialorder %v1908_v24, 8.507059e+37 }
 0x4b2   :  { %3025 = vpow2.f32 %v1608_v1 }
 0x4b3   :  { %v1888_v10 = vadd.f32 %v3020_v52, %v1887_v18  ;;  %v1134_v55 = vmax.f32 %v1049_v9, 0.0 }
 0x4b4   :  { %v3024_v31 = vpop.eup %3023 }
 0x4b5   :  { %v1892_v60 = vsel %vm1891_vm5, %v3020_v52, %v1888_v10  ;;  %v1900_v27 = vmul.f32 %v3024_v31, %v1707_v28  ;;  %1342 = vmatmul.f32.gmra.mxu3 %v1134_v55  ;;  %v1709_v15 = vpop.xlane.xlu1 %1708  ;;  %v1419_v61 = vpop.xlane.xlu0 %1418  ;;  %vm1905_vm8 = vweird.f32 %v3024_v31  ;;  %v4265_v28 = vadd.f32 %v4219_v45, %v1292_v48 }
 0x4b6   :  { %v1897_v50 = vsel %vm1894_vm7, %v1896_v43, %v1892_v60  ;;  %3027 = vrcp.f32 %v1709_v15  ;;  %v1525_v58 = vsub.f32 %v4078_v47, %v1419_v61  ;;  %vm1906_vm10 = vmor %vm1904_vm9, %vm1905_vm8  ;;  %v1923_v55 = vand.u32 2147483647, %v1709_v15 }
 0x4b7   :  { %v1898_v51 = vmul.f32 %v4060_v54, %v1897_v50  ;;  %v1901_v44 = vsub.f32 1.0, %v1900_v27  ;;  %v1925_v43 = vand.u32 2147483648, %v1709_v15  ;;  %vm1919_vm13 = vweird.f32 %v1709_v15 }
 0x4b8   :  { %v4253_v41 = vpop.eup %3025  ;;  %v1051_v52 = vpop.f32.mrf.mxu2  ;;  %v1610_v54 = vmul.f32 1.442695, %v1525_v58  ;;  %vm1924_vm15 = vcmp.eq.f32.partialorder %v1923_v55, 8.507059e+37 }
 0x4b9   :  { %v1295_v32 = vpop.f32.mrf.mxu3  ;;  %2789 = vst.msk [vmem:[%s4919_s4 + $0x20] sm:$0xff] %vm2784_vm6, %v1898_v51  ;;  %v1902_v3 = vmul.f32 %v3024_v31, %v1901_v44  ;;  %v1052_v6 = vadd.f32 %v4160_v36, %v1051_v52  ;;  %1446 = vmax.xlane.f32.xlu2 %v4251_v49  ;;  %1736 = vadd.xlane.f32.xlu0 %v4253_v41  ;;  %v1926_v44 = vor.u32 1.1754944e-38, %v1925_v43 }
 0x4ba   :  { %3029 = vpow2.f32 %v1610_v54 }
 0x4bb   :  { %v1903_v47 = vadd.f32 %v3024_v31, %v1902_v3  ;;  %v1135_v2 = vmax.f32 %v1052_v6, 0.0 }
 0x4bc   :  { %v3028_v20 = vpop.eup %3027 }
 0x4bd   :  { %v1907_v12 = vsel %vm1906_vm10, %v3024_v31, %v1903_v47  ;;  %v1915_v38 = vmul.f32 %v3028_v20, %v1709_v15  ;;  %1345 = vmatmul.f32.gmra.mxu3 %v1135_v2  ;;  %v1711_v1 = vpop.xlane.xlu2 %1710  ;;  %v1421_v39 = vpop.xlane.xlu1 %1420  ;;  %vm1920_vm12 = vweird.f32 %v3028_v20 }
 0x4be   :  { %v1912_v18 = vsel %vm1909_vm11, %v1911_v22, %v1907_v12  ;;  %3031 = vrcp.f32 %v1711_v1  ;;  %v1526_v10 = vsub.f32 %v4088_v35, %v1421_v39  ;;  %vm1921_vm14 = vmor %vm1919_vm13, %vm1920_vm12  ;;  %v1940_v2 = vand.u32 2147483648, %v1711_v1 }
 0x4bf   :  { %v1913_v37 = vmul.f32 %v4070_v30, %v1912_v18  ;;  %v1916_v9 = vsub.f32 1.0, %v1915_v38  ;;  %v4281_v38 = vadd.f32 %v4219_v45, %v1295_v32  ;;  %vm1934_vm1 = vweird.f32 %v1711_v1 }
 0x4c0   :  { %v1054_v60 = vpop.f32.mrf.mxu2  ;;  %v4269_v31 = vpop.eup %3029  ;;  %v1612_v30 = vmul.f32 1.442695, %v1526_v10 }
 0x4c1   :  { %v4267_v27 = vpop.f32.mrf.mxu3  ;;  %2790 = vst.msk [vmem:[%s4919_s4 + $0x28] sm:$0xff] %vm2784_vm6, %v1913_v37  ;;  %v1917_v61 = vmul.f32 %v3028_v20, %v1916_v9  ;;  %v1055_v35 = vadd.f32 %v4160_v36, %v1054_v60  ;;  %1448 = vmax.xlane.f32.xlu0 %v4265_v28  ;;  %1738 = vadd.xlane.f32.xlu1 %v4269_v31  ;;  %v1941_v9 = vor.u32 1.1754944e-38, %v1940_v2 }
 0x4c2   :  { %3033 = vpow2.f32 %v1612_v30 }
 0x4c3   :  { %v1918_v48 = vadd.f32 %v3028_v20, %v1917_v61  ;;  %v1136_v50 = vmax.f32 %v1055_v35, 0.0 }
 0x4c4   :  { %v3032_v51 = vpop.eup %3031 }
 0x4c5   :  { %v1922_v58 = vsel %vm1921_vm14, %v3028_v20, %v1918_v48  ;;  %v1930_v24 = vmul.f32 %v3032_v51, %v1711_v1  ;;  %1348 = vmatmul.f32.gmra.mxu3 %v1136_v50  ;;  %v1423_v5 = vpop.xlane.xlu2 %1422  ;;  %v1713_v52 = vpop.xlane.xlu0 %1712  ;;  %vm1935_vm0 = vweird.f32 %v3032_v51 }
 0x4c6   :  { %v1927_v3 = vsel %vm1924_vm15, %v1926_v44, %v1922_v58  ;;  %v1527_v54 = vsub.f32 %v4103_v17, %v1423_v5  ;;  %3035 = vrcp.f32 %v1713_v52  ;;  %v1938_v17 = vand.u32 2147483647, %v1711_v1  ;;  %vm1936_vm2 = vmor %vm1934_vm1, %vm1935_vm0 }
 0x4c7   :  { %v1928_v6 = vmul.f32 %v4080_v33, %v1927_v3  ;;  %v1931_v47 = vsub.f32 1.0, %v1930_v24  ;;  %v1953_v1 = vand.u32 2147483647, %v1713_v52  ;;  %v1955_v44 = vand.u32 2147483648, %v1713_v52 }
 0x4c8   :  { %v1614_v15 = vmul.f32 1.442695, %v1527_v54  ;;  %v1057_v22 = vpop.f32.mrf.mxu2  ;;  %v4283_v20 = vpop.eup %3033  ;;  %vm1939_vm3 = vcmp.eq.f32.partialorder %v1938_v17, 8.507059e+37  ;;  %vm1949_vm5 = vweird.f32 %v1713_v52 }
 0x4c9   :  { %v1301_v12 = vpop.f32.mrf.mxu3  ;;  %2791 = vst.msk [vmem:[%s4919_s4 + $0x30] sm:$0xff] %vm2784_vm6, %v1928_v6  ;;  %v1932_v39 = vmul.f32 %v3032_v51, %v1931_v47  ;;  %v1058_v33 = vadd.f32 %v4160_v36, %v1057_v22  ;;  %1740 = vadd.xlane.f32.xlu2 %v4283_v20  ;;  %1450 = vmax.xlane.f32.xlu1 %v4281_v38  ;;  %v1956_v6 = vor.u32 1.1754944e-38, %v1955_v44  ;;  %vm1954_vm8 = vcmp.eq.f32.partialorder %v1953_v1, 8.507059e+37 }
 0x4ca   :  { %3037 = vpow2.f32 %v1614_v15 }
 0x4cb   :  { %v1933_v18 = vadd.f32 %v3032_v51, %v1932_v39  ;;  %v1137_v32 = vmax.f32 %v1058_v33, 0.0 }
 0x4cc   :  { %v3036_v37 = vpop.eup %3035 }
 0x4cd   :  { %v1937_v10 = vsel %vm1936_vm2, %v3032_v51, %v1933_v18  ;;  %v1945_v55 = vmul.f32 %v3036_v37, %v1713_v52  ;;  %1351 = vmatmul.f32.gmra.mxu3 %v1137_v32  ;;  %v1715_v43 = vpop.xlane.xlu1 %1714  ;;  %v1425_v60 = vpop.xlane.xlu0 %1424  ;;  %v4298_v51 = vadd.f32 %v4219_v45, %v4267_v27  ;;  %vm1950_vm4 = vweird.f32 %v3036_v37 }
 0x4ce   :  { %v1942_v61 = vsel %vm1939_vm3, %v1941_v9, %v1937_v10  ;;  %3039 = vrcp.f32 %v1715_v43  ;;  %v1528_v48 = vsub.f32 %v4113_v21, %v1425_v60  ;;  %vm1951_vm7 = vmor %vm1949_vm5, %vm1950_vm4  ;;  %v4310_v52 = vadd.f32 %v4219_v45, %v1301_v12 }
 0x4cf   :  { %v1943_v30 = vmul.f32 %v4090_v11, %v1942_v61  ;;  %v1946_v35 = vsub.f32 1.0, %v1945_v55  ;;  %v1968_v32 = vand.u32 2147483647, %v1715_v43  ;;  %v1970_v9 = vand.u32 2147483648, %v1715_v43 }
 0x4d0   :  { %v4294_v50 = vpop.eup %3037  ;;  %v1060_v58 = vpop.f32.mrf.mxu2  ;;  %v1616_v11 = vmul.f32 1.442695, %v1528_v48  ;;  %vm1964_vm10 = vweird.f32 %v1715_v43 }
 0x4d1   :  { %v1304_v24 = vpop.f32.mrf.mxu3  ;;  %2792 = vst.msk [vmem:[%s4919_s4 + $0x38] sm:$0xff] %vm2784_vm6, %v1943_v30  ;;  %v1947_v5 = vmul.f32 %v3036_v37, %v1946_v35  ;;  %v1061_v21 = vadd.f32 %v4160_v36, %v1060_v58  ;;  %1742 = vadd.xlane.f32.xlu0 %v4294_v50  ;;  %1452 = vmax.xlane.f32.xlu2 %v4298_v51  ;;  %v1971_v35 = vor.u32 1.1754944e-38, %v1970_v9  ;;  %vm1969_vm12 = vcmp.eq.f32.partialorder %v1968_v32, 8.507059e+37 }
 0x4d2   :  { %3041 = vpow2.f32 %v1616_v11 }
 0x4d3   :  { %v1948_v3 = vadd.f32 %v3036_v37, %v1947_v5  ;;  %v1138_v54 = vmax.f32 %v1061_v21, 0.0 }
 0x4d4   :  { %v3040_v27 = vpop.eup %3039 }
 0x4d5   :  { %v1952_v47 = vsel %vm1951_vm7, %v3036_v37, %v1948_v3  ;;  %v1960_v2 = vmul.f32 %v3040_v27, %v1715_v43  ;;  %1354 = vmatmul.f32.gmra.mxu3 %v1138_v54  ;;  %v1717_v15 = vpop.xlane.xlu2 %1716  ;;  %v1427_v22 = vpop.xlane.xlu1 %1426  ;;  %vm1965_vm9 = vweird.f32 %v3040_v27  ;;  %v4324_v43 = vadd.f32 %v4219_v45, %v1304_v24 }
 0x4d6   :  { %v1957_v39 = vsel %vm1954_vm8, %v1956_v6, %v1952_v47  ;;  %3043 = vrcp.f32 %v1717_v15  ;;  %v1529_v18 = vsub.f32 %v4123_v59, %v1427_v22  ;;  %vm1966_vm11 = vmor %vm1964_vm10, %vm1965_vm9  ;;  %v1985_v54 = vand.u32 2147483648, %v1717_v15 }
 0x4d7   :  { %v1958_v17 = vmul.f32 %v4105_v56, %v1957_v39  ;;  %v1961_v33 = vsub.f32 1.0, %v1960_v2  ;;  %vm1979_vm14 = vweird.f32 %v1717_v15 }
 0x4d8   :  { %v1063_v10 = vpop.f32.mrf.mxu2  ;;  %v4312_v37 = vpop.eup %3041  ;;  %v1618_v56 = vmul.f32 1.442695, %v1529_v18 }
 0x4d9   :  { %v1307_v55 = vpop.f32.mrf.mxu3  ;;  %2793 = vst.msk [vmem:[%s4919_s4 + $0x40] sm:$0xff] %vm2784_vm6, %v1958_v17  ;;  %v1962_v60 = vmul.f32 %v3040_v27, %v1961_v33  ;;  %v1064_v61 = vadd.f32 %v4160_v36, %v1063_v10  ;;  %1454 = vmax.xlane.f32.xlu0 %v4310_v52  ;;  %1744 = vadd.xlane.f32.xlu1 %v4312_v37  ;;  %v1986_v33 = vor.u32 1.1754944e-38, %v1985_v54 }
 0x4da   :  { %3045 = vpow2.f32 %v1618_v56 }
 0x4db   :  { %v1963_v59 = vadd.f32 %v3040_v27, %v1962_v60  ;;  %v1139_v12 = vmax.f32 %v1064_v61, 0.0 }
 0x4dc   :  { %v3044_v30 = vpop.eup %3043 }
 0x4dd   :  { %v1967_v48 = vsel %vm1966_vm11, %v3040_v27, %v1963_v59  ;;  %v1975_v1 = vmul.f32 %v3044_v30, %v1717_v15  ;;  %1357 = vmatmul.f32.gmra.mxu3 %v1139_v12  ;;  %v1429_v44 = vpop.xlane.xlu2 %1428  ;;  %v1719_v58 = vpop.xlane.xlu0 %1718  ;;  %vm1980_vm13 = vweird.f32 %v3044_v30 }
 0x4de   :  { %v1972_v5 = vsel %vm1969_vm12, %v1971_v35, %v1967_v48  ;;  %v1530_v11 = vsub.f32 %v4133_v16, %v1429_v44  ;;  %3047 = vrcp.f32 %v1719_v58  ;;  %v1983_v16 = vand.u32 2147483647, %v1717_v15  ;;  %vm1981_vm15 = vmor %vm1979_vm14, %vm1980_vm13 }
 0x4df   :  { %v1973_v21 = vmul.f32 %v4115_v34, %v1972_v5  ;;  %v1976_v3 = vsub.f32 1.0, %v1975_v1  ;;  %v4340_v15 = vadd.f32 %v4219_v45, %v1307_v55  ;;  %v1998_v35 = vand.u32 2147483647, %v1719_v58 }
 0x4e0   :  { %v1620_v6 = vmul.f32 1.442695, %v1530_v11  ;;  %v1066_v47 = vpop.f32.mrf.mxu2  ;;  %v4326_v27 = vpop.eup %3045  ;;  %vm1984_vm0 = vcmp.eq.f32.partialorder %v1983_v16, 8.507059e+37  ;;  %v2000_v48 = vand.u32 2147483648, %v1719_v58  ;;  %vm1994_vm2 = vweird.f32 %v1719_v58 }
 0x4e1   :  { %v1310_v2 = vpop.f32.mrf.mxu3  ;;  %2794 = vst.msk [vmem:[%s4919_s4 + $0x48] sm:$0xff] %vm2784_vm6, %v1973_v21  ;;  %v1977_v22 = vmul.f32 %v3044_v30, %v1976_v3  ;;  %v1067_v34 = vadd.f32 %v4160_v36, %v1066_v47  ;;  %1746 = vadd.xlane.f32.xlu2 %v4326_v27  ;;  %1456 = vmax.xlane.f32.xlu1 %v4324_v43  ;;  %vm1999_vm4 = vcmp.eq.f32.partialorder %v1998_v35, 8.507059e+37 }
 0x4e2   :  { %3049 = vpow2.f32 %v1620_v6  ;;  %v2001_v21 = vor.u32 1.1754944e-38, %v2000_v48 }
 0x4e3   :  { %v1978_v24 = vadd.f32 %v3044_v30, %v1977_v22  ;;  %v1140_v39 = vmax.f32 %v1067_v34, 0.0  ;;  %v4351_v34 = vadd.f32 %v4219_v45, %v1310_v2 }
 0x4e4   :  { %v3048_v17 = vpop.eup %3047 }
 0x4e5   :  { %v1982_v18 = vsel %vm1981_vm15, %v3044_v30, %v1978_v24  ;;  %v1990_v32 = vmul.f32 %v3048_v17, %v1719_v58  ;;  %1360 = vmatmul.f32.gmra.mxu3 %v1140_v39  ;;  %v1721_v9 = vpop.xlane.xlu1 %1720  ;;  %v1431_v10 = vpop.xlane.xlu0 %1430  ;;  %vm1995_vm1 = vweird.f32 %v3048_v17 }
 0x4e6   :  { %v1987_v60 = vsel %vm1984_vm0, %v1986_v33, %v1982_v18  ;;  %3051 = vrcp.f32 %v1721_v9  ;;  %v1531_v59 = vsub.f32 %v4143_v29, %v1431_v10  ;;  %vm1996_vm3 = vmor %vm1994_vm2, %vm1995_vm1  ;;  %v2013_v39 = vand.u32 2147483647, %v1721_v9 }
 0x4e7   :  { %v1988_v56 = vmul.f32 %v4125_v62, %v1987_v60  ;;  %v1991_v61 = vsub.f32 1.0, %v1990_v32  ;;  %v2015_v33 = vand.u32 2147483648, %v1721_v9  ;;  %vm2009_vm7 = vweird.f32 %v1721_v9 }
 0x4e8   :  { %v4337_v12 = vpop.eup %3049  ;;  %v1069_v30 = vpop.f32.mrf.mxu2  ;;  %v1622_v62 = vmul.f32 1.442695, %v1531_v59  ;;  %vm2014_vm9 = vcmp.eq.f32.partialorder %v2013_v39, 8.507059e+37 }
 0x4e9   :  { %v1313_v1 = vpop.f32.mrf.mxu3  ;;  %2795 = vst.msk [vmem:[%s4919_s4 + $0x50] sm:$0xff] %vm2784_vm6, %v1988_v56  ;;  %v1992_v44 = vmul.f32 %v3048_v17, %v1991_v61  ;;  %v1070_v5 = vadd.f32 %v4160_v36, %v1069_v30  ;;  %1748 = vadd.xlane.f32.xlu0 %v4337_v12  ;;  %1458 = vmax.xlane.f32.xlu2 %v4340_v15  ;;  %v2016_v61 = vor.u32 1.1754944e-38, %v2015_v33 }
 0x4ea   :  { %3053 = vpow2.f32 %v1622_v62 }
 0x4eb   :  { %v1993_v29 = vadd.f32 %v3048_v17, %v1992_v44  ;;  %v1141_v55 = vmax.f32 %v1070_v5, 0.0 }
 0x4ec   :  { %v3052_v11 = vpop.eup %3051 }
 0x4ed   :  { %v1997_v3 = vsel %vm1996_vm3, %v3048_v17, %v1993_v29  ;;  %v2005_v54 = vmul.f32 %v3052_v11, %v1721_v9  ;;  %1363 = vmatmul.f32.gmra.mxu3 %v1141_v55  ;;  %v1723_v6 = vpop.xlane.xlu2 %1722  ;;  %v1433_v47 = vpop.xlane.xlu1 %1432  ;;  %vm2010_vm5 = vweird.f32 %v3052_v11  ;;  %v4366_v9 = vadd.f32 %v4219_v45, %v1313_v1 }
 0x4ee   :  { %v2002_v22 = vsel %vm1999_vm4, %v2001_v21, %v1997_v3  ;;  %3055 = vrcp.f32 %v1723_v6  ;;  %v1532_v58 = vsub.f32 %v4153_v42, %v1433_v47  ;;  %vm2011_vm8 = vmor %vm2009_vm7, %vm2010_vm5  ;;  %v2030_v55 = vand.u32 2147483648, %v1723_v6 }
 0x4ef   :  { %v2003_v16 = vmul.f32 %v4135_v57, %v2002_v22  ;;  %v2006_v24 = vsub.f32 1.0, %v2005_v54  ;;  %vm2024_vm11 = vweird.f32 %v1723_v6 }
 0x4f0   :  { %v1072_v18 = vpop.f32.mrf.mxu2  ;;  %v4354_v17 = vpop.eup %3053  ;;  %v1624_v57 = vmul.f32 1.442695, %v1532_v58 }
 0x4f1   :  { %v1316_v32 = vpop.f32.mrf.mxu3  ;;  %2796 = vst.msk [vmem:[%s4919_s4 + $0x58] sm:$0xff] %vm2784_vm6, %v2003_v16  ;;  %v2007_v10 = vmul.f32 %v3052_v11, %v2006_v24  ;;  %v1073_v2 = vadd.f32 %v4160_v36, %v1072_v18  ;;  %1460 = vmax.xlane.f32.xlu0 %v4351_v34  ;;  %1750 = vadd.xlane.f32.xlu1 %v4354_v17  ;;  %v2031_v24 = vor.u32 1.1754944e-38, %v2030_v55 }
 0x4f2   :  { %3057 = vpow2.f32 %v1624_v57 }
 0x4f3   :  { %v2008_v42 = vadd.f32 %v3052_v11, %v2007_v10  ;;  %v1142_v60 = vmax.f32 %v1073_v2, 0.0 }
 0x4f4   :  { %v3056_v56 = vpop.eup %3055 }
 0x4f5   :  { %v2012_v59 = vsel %vm2011_vm8, %v3052_v11, %v2008_v42  ;;  %v2020_v35 = vmul.f32 %v3056_v56, %v1723_v6  ;;  %1366 = vmatmul.f32.gmra.mxu3 %v1142_v60  ;;  %v1435_v48 = vpop.xlane.xlu2 %1434  ;;  %v1725_v30 = vpop.xlane.xlu0 %1724  ;;  %vm2025_vm10 = vweird.f32 %v3056_v56 }
 0x4f6   :  { %v2017_v44 = vsel %vm2014_vm9, %v2016_v61, %v2012_v59  ;;  %v1533_v62 = vsub.f32 %v4167_v4, %v1435_v48  ;;  %3059 = vrcp.f32 %v1725_v30  ;;  %v2028_v4 = vand.u32 2147483647, %v1723_v6  ;;  %vm2026_vm12 = vmor %vm2024_vm11, %vm2025_vm10 }
 0x4f7   :  { %v2018_v5 = vmul.f32 %v4145_v7, %v2017_v44  ;;  %v2021_v29 = vsub.f32 1.0, %v2020_v35  ;;  %v4382_v6 = vadd.f32 %v4219_v45, %v1316_v32  ;;  %v2043_v61 = vand.u32 2147483647, %v1725_v30 }
 0x4f8   :  { %v1626_v21 = vmul.f32 1.442695, %v1533_v62  ;;  %v1075_v3 = vpop.f32.mrf.mxu2  ;;  %v4368_v11 = vpop.eup %3057  ;;  %vm2029_vm13 = vcmp.eq.f32.partialorder %v2028_v4, 8.507059e+37  ;;  %v2045_v59 = vand.u32 2147483648, %v1725_v30  ;;  %vm2039_vm15 = vweird.f32 %v1725_v30 }
 0x4f9   :  { %v1319_v54 = vpop.f32.mrf.mxu3  ;;  %2797 = vst.msk [vmem:[%s4919_s4 + $0x60] sm:$0xff] %vm2784_vm6, %v2018_v5  ;;  %v2022_v47 = vmul.f32 %v3056_v56, %v2021_v29  ;;  %v1076_v7 = vadd.f32 %v4160_v36, %v1075_v3  ;;  %1752 = vadd.xlane.f32.xlu2 %v4368_v11  ;;  %1462 = vmax.xlane.f32.xlu1 %v4366_v9  ;;  %vm2044_vm1 = vcmp.eq.f32.partialorder %v2043_v61, 8.507059e+37 }
 0x4fa   :  { %3061 = vpow2.f32 %v1626_v21  ;;  %v2046_v5 = vor.u32 1.1754944e-38, %v2045_v59  ;;  %v4394_v4 = vadd.f32 %v4219_v45, %v1319_v54 }
 0x4fb   :  { %v2023_v1 = vadd.f32 %v3056_v56, %v2022_v47  ;;  %v1143_v22 = vmax.f32 %v1076_v7, 0.0 }
 0x4fc   :  { %v3060_v16 = vpop.eup %3059 }
 0x4fd   :  { %v2027_v58 = vsel %vm2026_vm12, %v3056_v56, %v2023_v1  ;;  %v2035_v39 = vmul.f32 %v3060_v16, %v1725_v30  ;;  %1369 = vmatmul.f32.gmra.mxu3 %v1143_v22  ;;  %v1727_v33 = vpop.xlane.xlu1 %1726  ;;  %v1437_v18 = vpop.xlane.xlu0 %1436  ;;  %vm2040_vm14 = vweird.f32 %v3060_v16 }
 0x4fe   :  { %v2032_v10 = vsel %vm2029_vm13, %v2031_v24, %v2027_v58  ;;  %3063 = vrcp.f32 %v1727_v33  ;;  %v1534_v42 = vsub.f32 %v4175_v19, %v1437_v18  ;;  %vm2041_vm0 = vmor %vm2039_vm15, %vm2040_vm14  ;;  %v2060_v30 = vand.u32 2147483648, %v1727_v33 }
 0x4ff   :  { %v2033_v57 = vmul.f32 %v4155_v23, %v2032_v10  ;;  %v2036_v2 = vsub.f32 1.0, %v2035_v39  ;;  %v2058_v58 = vand.u32 2147483647, %v1727_v33  ;;  %vm2054_vm3 = vweird.f32 %v1727_v33 }
 0x500   :  { %v4379_v60 = vpop.eup %3061  ;;  %v1078_v56 = vpop.f32.mrf.mxu2  ;;  %v1628_v23 = vmul.f32 1.442695, %v1534_v42 }
 0x501   :  { %v1322_v35 = vpop.f32.mrf.mxu3  ;;  %2798 = vst.msk [vmem:[%s4919_s4 + $0x68] sm:$0xff] %vm2784_vm6, %v2033_v57  ;;  %v2037_v48 = vmul.f32 %v3060_v16, %v2036_v2  ;;  %v1079_v44 = vadd.f32 %v4160_v36, %v1078_v56  ;;  %1754 = vadd.xlane.f32.xlu0 %v4379_v60  ;;  %1464 = vmax.xlane.f32.xlu2 %v4382_v6  ;;  %vm2059_vm5 = vcmp.eq.f32.partialorder %v2058_v58, 8.507059e+37 }
 0x502   :  { %3065 = vpow2.f32 %v1628_v23  ;;  %v4408_v2 = vadd.f32 %v4219_v45, %v1322_v35 }
 0x503   :  { %v2038_v19 = vadd.f32 %v3060_v16, %v2037_v48  ;;  %v1144_v32 = vmax.f32 %v1079_v44, 0.0 }
 0x504   :  { %v3064_v62 = vpop.eup %3063 }
 0x505   :  { %v2042_v29 = vsel %vm2041_vm0, %v3060_v16, %v2038_v19  ;;  %v2050_v55 = vmul.f32 %v3064_v62, %v1727_v33  ;;  %1372 = vmatmul.f32.gmra.mxu3 %v1144_v32  ;;  %v1439_v21 = vpop.xlane.xlu1 %1438  ;;  %vm2055_vm2 = vweird.f32 %v3064_v62 }
 0x506   :  { %v2047_v3 = vsel %vm2044_vm1, %v2046_v5, %v2042_v29  ;;  %v1535_v47 = vsub.f32 %v4184_v53, %v1439_v21  ;;  %vm2056_vm4 = vmor %vm2054_vm3, %vm2055_vm2  ;;  %v2061_v53 = vor.u32 1.1754944e-38, %v2060_v30 }
 0x507   :  { %v2048_v36 = vmul.f32 %v4169_v8, %v2047_v3  ;;  %v2051_v7 = vsub.f32 1.0, %v2050_v55 }
 0x508   :  { %v1630_v1 = vmul.f32 1.442695, %v1535_v47  ;;  %v4396_v24 = vpop.eup %3065 }
 0x509   :  { %v1325_v22 = vpop.f32.mrf.mxu3  ;;  %2799 = vst.msk [vmem:[%s4919_s4 + $0x70] sm:$0xff] %vm2784_vm6, %v2048_v36  ;;  %v2052_v16 = vmul.f32 %v3064_v62, %v2051_v7  ;;  %1466 = vmax.xlane.f32.xlu0 %v4394_v4  ;;  %1756 = vadd.xlane.f32.xlu1 %v4396_v24 }
 0x50a   :  { %3067 = vpow2.f32 %v1630_v1  ;;  %v4418_v35 = vadd.f32 %v4219_v45, %v1325_v22 }
 0x50b   :  { %v2053_v8 = vadd.f32 %v3064_v62, %v2052_v16 }
 0x50c   :  { %v1729_v54 = vpop.xlane.xlu2 %1728 }
 0x50d   :  { %v2057_v39 = vsel %vm2056_vm4, %v3064_v62, %v2053_v8  ;;  %3069 = vrcp.f32 %v1729_v54  ;;  %v2075_v23 = vand.u32 2147483648, %v1729_v54  ;;  %v2073_v32 = vand.u32 2147483647, %v1729_v54 }
 0x50e   :  { %v2062_v18 = vsel %vm2059_vm5, %v2061_v53, %v2057_v39  ;;  %vm2069_vm8 = vweird.f32 %v1729_v54 }
 0x50f   :  { %v2063_v10 = vmul.f32 %v4177_v46, %v2062_v18  ;;  %vm2074_vm10 = vcmp.eq.f32.partialorder %v2073_v32, 8.507059e+37 }
 0x510   :  { %v4405_v57 = vpop.eup %3067 }
 0x511   :  { %v1328_v42 = vpop.f32.mrf.mxu3  ;;  %2800 = vst.msk [vmem:[%s4919_s4 + $0x78] sm:$0xff] %vm2784_vm6, %v2063_v10  ;;  %1758 = vadd.xlane.f32.xlu2 %v4405_v57  ;;  %1468 = vmax.xlane.f32.xlu1 %v4408_v2 }
 0x513   :  { %v3070_v33 = vpop.eup %3069 }
 0x514   :  { %v2065_v61 = vmul.f32 %v3070_v33, %v1729_v54  ;;  %v1441_v59 = vpop.xlane.xlu2 %1440  ;;  %v1731_v56 = vpop.xlane.xlu0 %1730  ;;  %vm2070_vm7 = vweird.f32 %v3070_v33 }
 0x515   :  { %v1536_v46 = vsub.f32 %v4201_v13, %v1441_v59  ;;  %3071 = vrcp.f32 %v1731_v56  ;;  %vm2071_vm9 = vmor %vm2069_vm8, %vm2070_vm7  ;;  %v2076_v13 = vor.u32 1.1754944e-38, %v2075_v23  ;;  %v2090_v16 = vand.u32 2147483648, %v1731_v56 }
 0x516   :  { %v2066_v48 = vsub.f32 1.0, %v2065_v61  ;;  %v2088_v53 = vand.u32 2147483647, %v1731_v56  ;;  %vm2084_vm12 = vweird.f32 %v1731_v56 }
 0x517   :  { %v1632_v44 = vmul.f32 1.442695, %v1536_v46  ;;  %v4435_v46 = vadd.f32 %v4219_v45, %v1328_v42 }
 0x518   :  { %v2067_v19 = vmul.f32 %v3070_v33, %v2066_v48  ;;  %vm2089_vm14 = vcmp.eq.f32.partialorder %v2088_v53, 8.507059e+37 }
 0x519   :  { %v4420_v62 = vpop.f32.mrf.mxu3  ;;  %3073 = vpow2.f32 %v1632_v44  ;;  %1470 = vmax.xlane.f32.xlu2 %v4418_v35 }
 0x51a   :  { %v2068_v5 = vadd.f32 %v3070_v33, %v2067_v19 }
 0x51b   :  { %v3072_v29 = vpop.eup %3071 }
 0x51c   :  { %v2072_v55 = vsel %vm2071_vm9, %v3070_v33, %v2068_v5  ;;  %v2080_v21 = vmul.f32 %v3072_v29, %v1731_v56  ;;  %v1443_v3 = vpop.xlane.xlu0 %1442  ;;  %v1733_v36 = vpop.xlane.xlu1 %1732  ;;  %vm2085_vm11 = vweird.f32 %v3072_v29 }
 0x51d   :  { %v2077_v47 = vsel %vm2074_vm10, %v2076_v13, %v2072_v55  ;;  %v1537_v7 = vsub.f32 %v4222_v63, %v1443_v3  ;;  %3075 = vrcp.f32 %v1733_v36  ;;  %vm2086_vm13 = vmor %vm2084_vm12, %vm2085_vm11  ;;  %v2091_v63 = vor.u32 1.1754944e-38, %v2090_v16 }
 0x51e   :  { %v2078_v30 = vmul.f32 %v4190_v0, %v2077_v47  ;;  %v2081_v1 = vsub.f32 1.0, %v2080_v21  ;;  %v2105_v19 = vand.u32 2147483648, %v1733_v36  ;;  %vm2099_vm0 = vweird.f32 %v1733_v36 }
 0x51f   :  { %v4425_v22 = vpop.eup %3073  ;;  %v1634_v58 = vmul.f32 1.442695, %v1537_v7 }
 0x520   :  { %2801 = vst.msk [vmem:[%s4919_s4 + $0x80] sm:$0xff] %vm2784_vm6, %v2078_v30  ;;  %v2082_v8 = vmul.f32 %v3072_v29, %v2081_v1  ;;  %1760 = vadd.xlane.f32.xlu0 %v4425_v22  ;;  %v4452_v30 = vadd.f32 %v4219_v45, %v4420_v62 }
 0x521   :  { %v4431_v54 = vpop.f32.mrf.mxu3  ;;  %3077 = vpow2.f32 %v1634_v58 }
 0x522   :  { %v2083_v0 = vadd.f32 %v3072_v29, %v2082_v8 }
 0x523   :  { %v3076_v39 = vpop.eup %3075 }
 0x524   :  { %v2087_v18 = vsel %vm2086_vm13, %v3072_v29, %v2083_v0  ;;  %v1735_v10 = vpop.xlane.xlu2 %1734  ;;  %v2095_v61 = vmul.f32 %v3076_v39, %v1733_v36  ;;  %v1445_v59 = vpop.xlane.xlu1 %1444  ;;  %vm2100_vm15 = vweird.f32 %v3076_v39 }
 0x525   :  { %v2092_v33 = vsel %vm2089_vm14, %v2091_v63, %v2087_v18  ;;  %3079 = vrcp.f32 %v1735_v10  ;;  %v1538_v56 = vsub.f32 %v4239_v25, %v1445_v59  ;;  %vm2101_vm1 = vmor %vm2099_vm0, %vm2100_vm15  ;;  %v2106_v25 = vor.u32 1.1754944e-38, %v2105_v19 }
 0x526   :  { %v2093_v48 = vmul.f32 %v4203_v26, %v2092_v33  ;;  %v2096_v44 = vsub.f32 1.0, %v2095_v61  ;;  %v2103_v26 = vand.u32 2147483647, %v1733_v36  ;;  %v2120_v36 = vand.u32 2147483648, %v1735_v10 }
 0x527   :  { %v4438_v23 = vpop.eup %3077  ;;  %v1636_v5 = vmul.f32 1.442695, %v1538_v56  ;;  %v2118_v0 = vand.u32 2147483647, %v1735_v10  ;;  %vm2114_vm4 = vweird.f32 %v1735_v10 }
 0x528   :  { %2802 = vst.msk [vmem:[%s4919_s4 + $0x88] sm:$0xff] %vm2784_vm6, %v2093_v48  ;;  %1472 = vmax.xlane.f32.xlu0 %v4435_v46  ;;  %1762 = vadd.xlane.f32.xlu1 %v4438_v23  ;;  %v2097_v42 = vmul.f32 %v3076_v39, %v2096_v44  ;;  %vm2104_vm2 = vcmp.eq.f32.partialorder %v2103_v26, 8.507059e+37  ;;  %v2121_v62 = vor.u32 1.1754944e-38, %v2120_v36 }
 0x529   :  { %v4445_v32 = vpop.f32.mrf.mxu3  ;;  %3081 = vpow2.f32 %v1636_v5  ;;  %vm2119_vm7 = vcmp.eq.f32.partialorder %v2118_v0, 8.507059e+37  ;;  %v4471_v5 = vadd.f32 %v4219_v45, %v4431_v54 }
 0x52a   :  { %v2098_v13 = vadd.f32 %v3076_v39, %v2097_v42 }
 0x52b   :  { %v3080_v29 = vpop.eup %3079 }
 0x52c   :  { %v2110_v55 = vmul.f32 %v3080_v29, %v1735_v10  ;;  %v1447_v21 = vpop.xlane.xlu2 %1446  ;;  %v1737_v3 = vpop.xlane.xlu0 %1736  ;;  %v2102_v47 = vsel %vm2101_vm1, %v3076_v39, %v2098_v13  ;;  %vm2115_vm3 = vweird.f32 %v3080_v29 }
 0x52d   :  { %v1539_v7 = vsub.f32 %v4251_v49, %v1447_v21  ;;  %3083 = vrcp.f32 %v1737_v3  ;;  %v2107_v1 = vsel %vm2104_vm2, %v2106_v25, %v2102_v47  ;;  %vm2116_vm5 = vmor %vm2114_vm4, %vm2115_vm3  ;;  %v2135_v10 = vand.u32 2147483648, %v1737_v3 }
 0x52e   :  { %v2111_v16 = vsub.f32 1.0, %v2110_v55  ;;  %v2108_v58 = vmul.f32 %v4224_v14, %v2107_v1  ;;  %vm2129_vm9 = vweird.f32 %v1737_v3  ;;  %v4484_v1 = vld [vmem:[%s4918_s3 + $0x3] ss:$0 sm:$0xff] }
 0x52f   :  { %v1638_v8 = vmul.f32 1.442695, %v1539_v7  ;;  %v4458_v39 = vpop.eup %3081  ;;  %v2136_v45 = vor.u32 1.1754944e-38, %v2135_v10 }
 0x530   :  { %v2112_v53 = vmul.f32 %v3080_v29, %v2111_v16  ;;  %1474 = vmax.xlane.f32.xlu1 %v4452_v30  ;;  %2803 = vst.msk [vmem:[%s4919_s4 + $0x90] sm:$0xff] %vm2784_vm6, %v2108_v58  ;;  %1764 = vadd.xlane.f32.xlu2 %v4458_v39  ;;  %v4488_v16 = vadd.f32 %v4484_v1, %v4445_v32 }
 0x531   :  { %v4455_v63 = vpop.f32.mrf.mxu3  ;;  %3085 = vpow2.f32 %v1638_v8 }
 0x532   :  { %v2113_v49 = vadd.f32 %v3080_v29, %v2112_v53 }
 0x533   :  { %v3084_v14 = vpop.eup %3083 }
 0x534   :  { %v2117_v18 = vsel %vm2116_vm5, %v3080_v29, %v2113_v49  ;;  %v2125_v33 = vmul.f32 %v3084_v14, %v1737_v3  ;;  %v1449_v61 = vpop.xlane.xlu0 %1448  ;;  %v1739_v48 = vpop.xlane.xlu1 %1738  ;;  %vm2130_vm8 = vweird.f32 %v3084_v14 }
 0x535   :  { %v2122_v59 = vsel %vm2119_vm7, %v2121_v62, %v2117_v18  ;;  %v1540_v44 = vsub.f32 %v4265_v28, %v1449_v61  ;;  %3087 = vrcp.f32 %v1739_v48  ;;  %v2133_v28 = vand.u32 2147483647, %v1737_v3  ;;  %vm2131_vm10 = vmor %vm2129_vm9, %vm2130_vm8 }
 0x536   :  { %v2123_v56 = vmul.f32 %v4235_v40, %v2122_v59  ;;  %v2126_v19 = vsub.f32 1.0, %v2125_v33  ;;  %v2150_v53 = vand.u32 2147483648, %v1739_v48  ;;  %vm2144_vm13 = vweird.f32 %v1739_v48 }
 0x537   :  { %v4467_v42 = vpop.eup %3085  ;;  %v1640_v26 = vmul.f32 1.442695, %v1540_v44  ;;  %vm2134_vm11 = vcmp.eq.f32.partialorder %v2133_v28, 8.507059e+37  ;;  %v4504_v44 = vadd.f32 %v4484_v1, %v4455_v63 }
 0x538   :  { %2804 = vst.msk [vmem:[%s4919_s4 + $0x98] sm:$0xff] %vm2784_vm6, %v2123_v56  ;;  %v2127_v29 = vmul.f32 %v3084_v14, %v2126_v19  ;;  %1766 = vadd.xlane.f32.xlu0 %v4467_v42  ;;  %1476 = vmax.xlane.f32.xlu2 %v4471_v5  ;;  %v2151_v62 = vor.u32 1.1754944e-38, %v2150_v53 }
 0x539   :  { %v4477_v13 = vpop.f32.mrf.mxu3  ;;  %3089 = vpow2.f32 %v1640_v26 }
 0x53a   :  { %v2128_v40 = vadd.f32 %v3084_v14, %v2127_v29 }
 0x53b   :  { %v3088_v54 = vpop.eup %3087 }
 0x53c   :  { %v2132_v25 = vsel %vm2131_vm10, %v3084_v14, %v2128_v40  ;;  %v2140_v21 = vmul.f32 %v3088_v54, %v1739_v48  ;;  %v1741_v47 = vpop.xlane.xlu2 %1740  ;;  %v1451_v7 = vpop.xlane.xlu1 %1450  ;;  %vm2145_vm12 = vweird.f32 %v3088_v54 }
 0x53d   :  { %v2137_v55 = vsel %vm2134_vm11, %v2136_v45, %v2132_v25  ;;  %3091 = vrcp.f32 %v1741_v47  ;;  %v1541_v8 = vsub.f32 %v4281_v38, %v1451_v7  ;;  %vm2146_vm14 = vmor %vm2144_vm13, %vm2145_vm12  ;;  %v2165_v26 = vand.u32 2147483648, %v1741_v47 }
 0x53e   :  { %v2138_v3 = vmul.f32 %v4253_v41, %v2137_v55  ;;  %v2141_v36 = vsub.f32 1.0, %v2140_v21  ;;  %v2148_v41 = vand.u32 2147483647, %v1739_v48  ;;  %v2163_v45 = vand.u32 2147483647, %v1741_v47 }
 0x53f   :  { %v4491_v58 = vpop.eup %3089  ;;  %v1642_v49 = vmul.f32 1.442695, %v1541_v8  ;;  %vm2159_vm1 = vweird.f32 %v1741_v47 }
 0x540   :  { %2805 = vst.msk [vmem:[%s4919_s4 + $0xa0] sm:$0xff] %vm2784_vm6, %v2138_v3  ;;  %1478 = vmax.xlane.f32.xlu0 %v4488_v16  ;;  %1768 = vadd.xlane.f32.xlu1 %v4491_v58  ;;  %v2142_v32 = vmul.f32 %v3088_v54, %v2141_v36  ;;  %vm2149_vm15 = vcmp.eq.f32.partialorder %v2148_v41, 8.507059e+37  ;;  %vm2164_vm3 = vcmp.eq.f32.partialorder %v2163_v45, 8.507059e+37 }
 0x541   :  { %v4498_v0 = vpop.f32.mrf.mxu3  ;;  %3093 = vpow2.f32 %v1642_v49 }
 0x542   :  { %v2143_v14 = vadd.f32 %v3088_v54, %v2142_v32 }
 0x543   :  { %v3092_v38 = vpop.eup %3091 }
 0x544   :  { %v1743_v18 = vpop.xlane.xlu0 %1742  ;;  %v2147_v33 = vsel %vm2146_vm14, %v3088_v54, %v2143_v14  ;;  %v2155_v61 = vmul.f32 %v3092_v38, %v1741_v47  ;;  %v1453_v59 = vpop.xlane.xlu2 %1452  ;;  %vm2160_vm0 = vweird.f32 %v3092_v38  ;;  %v2166_v54 = vor.u32 1.1754944e-38, %v2165_v26 }
 0x545   :  { %3095 = vrcp.f32 %v1743_v18  ;;  %v2152_v56 = vsel %vm2149_vm15, %v2151_v62, %v2147_v33  ;;  %v1542_v19 = vsub.f32 %v4298_v51, %v1453_v59  ;;  %vm2161_vm2 = vmor %vm2159_vm1, %vm2160_vm0  ;;  %v2180_v32 = vand.u32 2147483648, %v1743_v18 }
 0x546   :  { %v2153_v10 = vmul.f32 %v4269_v31, %v2152_v56  ;;  %v2156_v48 = vsub.f32 1.0, %v2155_v61  ;;  %v4524_v47 = vadd.f32 %v4484_v1, %v4477_v13  ;;  %vm2174_vm5 = vweird.f32 %v1743_v18 }
 0x547   :  { %v1644_v29 = vmul.f32 1.442695, %v1542_v19  ;;  %v4511_v40 = vpop.eup %3093  ;;  %v4539_v26 = vadd.f32 %v4484_v1, %v4498_v0 }
 0x548   :  { %1480 = vmax.xlane.f32.xlu1 %v4504_v44  ;;  %2806 = vst.msk [vmem:[%s4919_s4 + $0xa8] sm:$0xff] %vm2784_vm6, %v2153_v10  ;;  %v2157_v63 = vmul.f32 %v3092_v38, %v2156_v48  ;;  %1770 = vadd.xlane.f32.xlu2 %v4511_v40 }
 0x549   :  { %v4508_v28 = vpop.f32.mrf.mxu3  ;;  %3097 = vpow2.f32 %v1644_v29 }
 0x54a   :  { %v2158_v51 = vadd.f32 %v3092_v38, %v2157_v63 }
 0x54b   :  { %v3096_v31 = vpop.eup %3095 }
 0x54c   :  { %v2170_v25 = vmul.f32 %v3096_v31, %v1743_v18  ;;  %v1455_v55 = vpop.xlane.xlu0 %1454  ;;  %v2162_v21 = vsel %vm2161_vm2, %v3092_v38, %v2158_v51  ;;  %v1745_v7 = vpop.xlane.xlu1 %1744  ;;  %vm2175_vm4 = vweird.f32 %v3096_v31  ;;  %v2178_v38 = vand.u32 2147483647, %v1743_v18 }
 0x54d   :  { %v1543_v3 = vsub.f32 %v4310_v52, %v1455_v55  ;;  %v2167_v36 = vsel %vm2164_vm3, %v2166_v54, %v2162_v21  ;;  %3099 = vrcp.f32 %v1745_v7  ;;  %vm2176_vm7 = vmor %vm2174_vm5, %vm2175_vm4  ;;  %v2181_v52 = vor.u32 1.1754944e-38, %v2180_v32 }
 0x54e   :  { %v2171_v8 = vsub.f32 1.0, %v2170_v25  ;;  %v2168_v53 = vmul.f32 %v4283_v20, %v2167_v36  ;;  %vm2179_vm8 = vcmp.eq.f32.partialorder %v2178_v38, 8.507059e+37  ;;  %v2195_v63 = vand.u32 2147483648, %v1745_v7 }
 0x54f   :  { %v1646_v41 = vmul.f32 1.442695, %v1543_v3  ;;  %v4520_v49 = vpop.eup %3097  ;;  %vm2189_vm10 = vweird.f32 %v1745_v7  ;;  %v4552_v36 = vadd.f32 %v4484_v1, %v4508_v28 }
 0x550   :  { %v2172_v14 = vmul.f32 %v3096_v31, %v2171_v8  ;;  %2807 = vst.msk [vmem:[%s4919_s4 + $0xb0] sm:$0xff] %vm2784_vm6, %v2168_v53  ;;  %1772 = vadd.xlane.f32.xlu0 %v4520_v49  ;;  %1482 = vmax.xlane.f32.xlu2 %v4524_v47  ;;  %v2196_v54 = vor.u32 1.1754944e-38, %v2195_v63 }
 0x551   :  { %v4526_v62 = vpop.f32.mrf.mxu3  ;;  %3101 = vpow2.f32 %v1646_v41 }
 0x552   :  { %v2173_v20 = vadd.f32 %v3096_v31, %v2172_v14 }
 0x553   :  { %v3100_v13 = vpop.eup %3099 }
 0x554   :  { %v2177_v33 = vsel %vm2176_vm7, %v3096_v31, %v2173_v20  ;;  %v2185_v59 = vmul.f32 %v3100_v13, %v1745_v7  ;;  %v1747_v56 = vpop.xlane.xlu2 %1746  ;;  %v1457_v19 = vpop.xlane.xlu1 %1456  ;;  %vm2190_vm9 = vweird.f32 %v3100_v13  ;;  %v2193_v31 = vand.u32 2147483647, %v1745_v7 }
 0x555   :  { %v2182_v61 = vsel %vm2179_vm8, %v2181_v52, %v2177_v33  ;;  %3103 = vrcp.f32 %v1747_v56  ;;  %v1544_v29 = vsub.f32 %v4324_v43, %v1457_v19  ;;  %vm2191_vm11 = vmor %vm2189_vm10, %vm2190_vm9  ;;  %v2210_v41 = vand.u32 2147483648, %v1747_v56 }
 0x556   :  { %v2183_v10 = vmul.f32 %v4294_v50, %v2182_v61  ;;  %v2186_v18 = vsub.f32 1.0, %v2185_v59  ;;  %vm2194_vm12 = vcmp.eq.f32.partialorder %v2193_v31, 8.507059e+37  ;;  %v2208_v52 = vand.u32 2147483647, %v1747_v56 }
 0x557   :  { %v4535_v48 = vpop.eup %3101  ;;  %v1648_v51 = vmul.f32 1.442695, %v1544_v29  ;;  %vm2204_vm14 = vweird.f32 %v1747_v56 }
 0x558   :  { %2808 = vst.msk [vmem:[%s4919_s4 + $0xb8] sm:$0xff] %vm2784_vm6, %v2183_v10  ;;  %1774 = vadd.xlane.f32.xlu1 %v4535_v48  ;;  %v2187_v50 = vmul.f32 %v3100_v13, %v2186_v18  ;;  %1484 = vmax.xlane.f32.xlu0 %v4539_v26  ;;  %vm2209_vm0 = vcmp.eq.f32.partialorder %v2208_v52, 8.507059e+37 }
 0x559   :  { %v4546_v45 = vpop.f32.mrf.mxu3  ;;  %3105 = vpow2.f32 %v1648_v51 }
 0x55a   :  { %v2188_v0 = vadd.f32 %v3100_v13, %v2187_v50 }
 0x55b   :  { %v3104_v43 = vpop.eup %3103 }
 0x55c   :  { %v1749_v25 = vpop.xlane.xlu0 %1748  ;;  %v2192_v55 = vsel %vm2191_vm11, %v3100_v13, %v2188_v0  ;;  %v2200_v21 = vmul.f32 %v3104_v43, %v1747_v56  ;;  %v1459_v3 = vpop.xlane.xlu2 %1458  ;;  %vm2205_vm13 = vweird.f32 %v3104_v43  ;;  %v2211_v13 = vor.u32 1.1754944e-38, %v2210_v41 }
 0x55d   :  { %3107 = vrcp.f32 %v1749_v25  ;;  %v2197_v8 = vsel %vm2194_vm12, %v2196_v54, %v2192_v55  ;;  %v1545_v53 = vsub.f32 %v4340_v15, %v1459_v3  ;;  %vm2206_vm15 = vmor %vm2204_vm14, %vm2205_vm13  ;;  %v2225_v50 = vand.u32 2147483648, %v1749_v25 }
 0x55e   :  { %v2198_v32 = vmul.f32 %v4312_v37, %v2197_v8  ;;  %v2201_v7 = vsub.f32 1.0, %v2200_v21  ;;  %v4572_v56 = vadd.f32 %v4484_v1, %v4526_v62  ;;  %vm2219_vm2 = vweird.f32 %v1749_v25 }
 0x55f   :  { %v1650_v14 = vmul.f32 1.442695, %v1545_v53  ;;  %v4559_v20 = vpop.eup %3105 }
 0x560   :  { %1486 = vmax.xlane.f32.xlu1 %v4552_v36  ;;  %2809 = vst.msk [vmem:[%s4919_s4 + $0xc0] sm:$0xff] %vm2784_vm6, %v2198_v32  ;;  %v2202_v28 = vmul.f32 %v3104_v43, %v2201_v7  ;;  %1776 = vadd.xlane.f32.xlu2 %v4559_v20  ;;  %v4585_v7 = vadd.f32 %v4484_v1, %v4546_v45 }
 0x561   :  { %v4556_v38 = vpop.f32.mrf.mxu3  ;;  %3109 = vpow2.f32 %v1650_v14 }
 0x562   :  { %v2203_v15 = vadd.f32 %v3104_v43, %v2202_v28 }
 0x563   :  { %v3108_v37 = vpop.eup %3107 }
 0x564   :  { %v2215_v33 = vmul.f32 %v3108_v37, %v1749_v25  ;;  %v1461_v61 = vpop.xlane.xlu0 %1460  ;;  %v2207_v59 = vsel %vm2206_vm15, %v3104_v43, %v2203_v15  ;;  %v1751_v19 = vpop.xlane.xlu1 %1750  ;;  %vm2220_vm1 = vweird.f32 %v3108_v37  ;;  %v2223_v43 = vand.u32 2147483647, %v1749_v25 }
 0x565   :  { %v1546_v10 = vsub.f32 %v4351_v34, %v1461_v61  ;;  %v2212_v18 = vsel %vm2209_vm0, %v2211_v13, %v2207_v59  ;;  %3111 = vrcp.f32 %v1751_v19  ;;  %vm2221_vm3 = vmor %vm2219_vm2, %vm2220_vm1  ;;  %v2226_v34 = vor.u32 1.1754944e-38, %v2225_v50 }
 0x566   :  { %v2216_v29 = vsub.f32 1.0, %v2215_v33  ;;  %v2213_v63 = vmul.f32 %v4326_v27, %v2212_v18  ;;  %vm2224_vm4 = vcmp.eq.f32.partialorder %v2223_v43, 8.507059e+37  ;;  %v2240_v41 = vand.u32 2147483648, %v1751_v19 }
 0x567   :  { %v1652_v31 = vmul.f32 1.442695, %v1546_v10  ;;  %v4568_v51 = vpop.eup %3109  ;;  %v2238_v52 = vand.u32 2147483647, %v1751_v19  ;;  %vm2234_vm7 = vweird.f32 %v1751_v19  ;;  %v4599_v10 = vadd.f32 %v4484_v1, %v4556_v38 }
 0x568   :  { %v2217_v0 = vmul.f32 %v3108_v37, %v2216_v29  ;;  %2810 = vst.msk [vmem:[%s4919_s4 + $0xc8] sm:$0xff] %vm2784_vm6, %v2213_v63  ;;  %1778 = vadd.xlane.f32.xlu0 %v4568_v51  ;;  %1488 = vmax.xlane.f32.xlu2 %v4572_v56  ;;  %v2241_v15 = vor.u32 1.1754944e-38, %v2240_v41 }
 0x569   :  { %v1361_v54 = vpop.f32.mrf.mxu3  ;;  %3113 = vpow2.f32 %v1652_v31  ;;  %vm2239_vm9 = vcmp.eq.f32.partialorder %v2238_v52, 8.507059e+37 }
 0x56a   :  { %v2218_v27 = vadd.f32 %v3108_v37, %v2217_v0  ;;  %v4592_v14 = vadd.f32 %v4484_v1, %v1361_v54 }
 0x56b   :  { %v3112_v62 = vpop.eup %3111 }
 0x56c   :  { %v2222_v55 = vsel %vm2221_vm3, %v3108_v37, %v2218_v27  ;;  %v2230_v3 = vmul.f32 %v3112_v62, %v1751_v19  ;;  %v1753_v8 = vpop.xlane.xlu2 %1752  ;;  %vm2235_vm5 = vweird.f32 %v3112_v62  ;;  %v1463_v59 = vpop.xlane.xlu1 %1462 }
 0x56d   :  { %v2227_v21 = vsel %vm2224_vm4, %v2226_v34, %v2222_v55  ;;  %3115 = vrcp.f32 %v1753_v8  ;;  %vm2236_vm8 = vmor %vm2234_vm7, %vm2235_vm5  ;;  %v2255_v19 = vand.u32 2147483648, %v1753_v8  ;;  %v2253_v38 = vand.u32 2147483647, %v1753_v8 }
 0x56e   :  { %v2228_v53 = vmul.f32 %v4337_v12, %v2227_v21  ;;  %v2231_v25 = vsub.f32 1.0, %v2230_v3  ;;  %vm2249_vm11 = vweird.f32 %v1753_v8  ;;  %v1547_v27 = vsub.f32 %v4366_v9, %v1463_v59 }
 0x56f   :  { %v4581_v32 = vpop.eup %3113  ;;  %v2256_v54 = vor.u32 1.1754944e-38, %v2255_v19  ;;  %vm2254_vm13 = vcmp.eq.f32.partialorder %v2253_v38, 8.507059e+37 }
 0x570   :  { %2811 = vst.msk [vmem:[%s4919_s4 + $0xd0] sm:$0xff] %vm2784_vm6, %v2228_v53  ;;  %1780 = vadd.xlane.f32.xlu1 %v4581_v32  ;;  %v2232_v12 = vmul.f32 %v3112_v62, %v2231_v25  ;;  %1490 = vmax.xlane.f32.xlu0 %v4585_v7 }
 0x571   :  { %v1364_v28 = vpop.f32.mrf.mxu3  ;;  %1494 = vmax.xlane.f32.xlu2 %v4592_v14 }
 0x572   :  { %v2233_v45 = vadd.f32 %v3112_v62, %v2232_v12  ;;  %v4603_v50 = vadd.f32 %v4484_v1, %v1364_v28 }
 0x573   :  { %v3116_v37 = vpop.eup %3115 }
 0x574   :  { %v1755_v13 = vpop.xlane.xlu0 %1754  ;;  %v2237_v33 = vsel %vm2236_vm8, %v3112_v62, %v2233_v45  ;;  %v2245_v61 = vmul.f32 %v3116_v37, %v1753_v8  ;;  %vm2250_vm10 = vweird.f32 %v3116_v37  ;;  %v1465_v34 = vpop.xlane.xlu2 %1464  ;;  %v1654_v45 = vmul.f32 1.442695, %v1547_v27 }
 0x575   :  { %3117 = vrcp.f32 %v1755_v13  ;;  %v2242_v18 = vsel %vm2239_vm9, %v2241_v15, %v2237_v33  ;;  %vm2251_vm12 = vmor %vm2249_vm11, %vm2250_vm10  ;;  %v2270_v12 = vand.u32 2147483648, %v1755_v13  ;;  %v2268_v15 = vand.u32 2147483647, %v1755_v13 }
 0x576   :  { %v2243_v29 = vmul.f32 %v4354_v17, %v2242_v18  ;;  %v2246_v63 = vsub.f32 1.0, %v2245_v61  ;;  %vm2264_vm15 = vweird.f32 %v1755_v13 }
 0x577   :  { %v2271_v61 = vor.u32 1.1754944e-38, %v2270_v12  ;;  %vm2269_vm1 = vcmp.eq.f32.partialorder %v2268_v15, 8.507059e+37 }
 0x578   :  { %1492 = vmax.xlane.f32.xlu1 %v4599_v10  ;;  %2812 = vst.msk [vmem:[%s4919_s4 + $0xd8] sm:$0xff] %vm2784_vm6, %v2243_v29  ;;  %v2247_v0 = vmul.f32 %v3116_v37, %v2246_v63  ;;  %1496 = vmax.xlane.f32.xlu0 %v4603_v50 }
 0x579   :  { %v1367_v31 = vpop.f32.mrf.mxu3 }
 0x57a   :  { %v2248_v17 = vadd.f32 %v3116_v37, %v2247_v0  ;;  %v4614_v28 = vadd.f32 %v4484_v1, %v1367_v31 }
 0x57b   :  { %v3118_v43 = vpop.eup %3117 }
 0x57c   :  { %v2260_v62 = vmul.f32 %v3118_v43, %v1755_v13  ;;  %v1467_v55 = vpop.xlane.xlu0 %1466  ;;  %v2252_v21 = vsel %vm2251_vm12, %v3116_v37, %v2248_v17  ;;  %v1757_v3 = vpop.xlane.xlu1 %1756  ;;  %vm2265_vm14 = vweird.f32 %v3118_v43 }
 0x57d   :  { %v1549_v53 = vsub.f32 %v4394_v4, %v1467_v55  ;;  %v2257_v25 = vsel %vm2254_vm13, %v2256_v54, %v2252_v21  ;;  %3119 = vrcp.f32 %v1757_v3  ;;  %vm2266_vm0 = vmor %vm2264_vm15, %vm2265_vm14  ;;  %v2285_v54 = vand.u32 2147483648, %v1757_v3 }
 0x57e   :  { %v2261_v41 = vsub.f32 1.0, %v2260_v62  ;;  %v2258_v8 = vmul.f32 %v4368_v11, %v2257_v25  ;;  %v1548_v11 = vsub.f32 %v4382_v6, %v1465_v34  ;;  %vm2279_vm3 = vweird.f32 %v1757_v3 }
 0x57f   :  { %v1658_v52 = vmul.f32 1.442695, %v1549_v53  ;;  %v2286_v53 = vor.u32 1.1754944e-38, %v2285_v54 }
 0x580   :  { %v2262_v9 = vmul.f32 %v3118_v43, %v2261_v41  ;;  %1498 = vmax.xlane.f32.xlu1 %v4614_v28  ;;  %2813 = vst.msk [vmem:[%s4919_s4 + $0xe0] sm:$0xff] %vm2784_vm6, %v2258_v8  ;;  %v1656_v13 = vmul.f32 1.442695, %v1548_v11 }
 0x581   :  { %v1370_v33 = vpop.f32.mrf.mxu3  ;;  %3121 = vpow2.f32 %v1658_v52 }
 0x582   :  { %v4623_v4 = vadd.f32 %v4484_v1, %v1370_v33  ;;  %v2263_v37 = vadd.f32 %v3118_v43, %v2262_v9  ;;  %3123 = vpow2.f32 %v1654_v45 }
 0x583   :  { %v3120_v59 = vpop.eup %3119 }
 0x584   :  { %1500 = vmax.xlane.f32.xlu2 %v4623_v4  ;;  %v2267_v18 = vsel %vm2266_vm0, %v3118_v43, %v2263_v37  ;;  %v1759_v29 = vpop.xlane.xlu2 %1758  ;;  %v2275_v19 = vmul.f32 %v3120_v59, %v1757_v3  ;;  %v1469_v31 = vpop.xlane.xlu1 %1468  ;;  %v2283_v43 = vand.u32 2147483647, %v1757_v3  ;;  %vm2280_vm2 = vweird.f32 %v3120_v59 }
 0x585   :  { %v2272_v63 = vsel %vm2269_vm1, %v2271_v61, %v2267_v18  ;;  %3125 = vrcp.f32 %v1759_v29  ;;  %v1550_v6 = vsub.f32 %v4408_v2, %v1469_v31  ;;  %vm2281_vm4 = vmor %vm2279_vm3, %vm2280_vm2  ;;  %v2300_v9 = vand.u32 2147483648, %v1759_v29 }
 0x586   :  { %v2273_v0 = vmul.f32 %v4379_v60, %v2272_v63  ;;  %v2276_v17 = vsub.f32 1.0, %v2275_v19  ;;  %3127 = vpow2.f32 %v1656_v13  ;;  %vm2284_vm5 = vcmp.eq.f32.partialorder %v2283_v43, 8.507059e+37 }
 0x587   :  { %v4628_v38 = vpop.eup %3121  ;;  %v1660_v62 = vmul.f32 1.442695, %v1550_v6  ;;  %v2298_v33 = vand.u32 2147483647, %v1759_v29  ;;  %vm2294_vm8 = vweird.f32 %v1759_v29 }
 0x588   :  { %2814 = vst.msk [vmem:[%s4919_s4 + $0xe8] sm:$0xff] %vm2784_vm6, %v2273_v0  ;;  %1786 = vadd.xlane.f32.xlu1 %v4628_v38  ;;  %v2277_v34 = vmul.f32 %v3120_v59, %v2276_v17  ;;  %v4639_v55 = vpop.eup %3123 }
 0x589   :  { %v1373_v27 = vpop.f32.mrf.mxu3  ;;  %3129 = vpow2.f32 %v1660_v62  ;;  %vm2299_vm10 = vcmp.eq.f32.partialorder %v2298_v33, 8.507059e+37 }
 0x58a   :  { %v4637_v60 = vadd.f32 %v4484_v1, %v1373_v27  ;;  %v2278_v2 = vadd.f32 %v3120_v59, %v2277_v34 }
 0x58b   :  { %v3126_v21 = vpop.eup %3125 }
 0x58c   :  { %1502 = vmax.xlane.f32.xlu0 %v4637_v60  ;;  %1782 = vadd.xlane.f32.xlu2 %v4639_v55  ;;  %v2290_v25 = vmul.f32 %v3126_v21, %v1759_v29  ;;  %v1471_v41 = vpop.xlane.xlu2 %1470  ;;  %v2282_v8 = vsel %vm2281_vm4, %v3120_v59, %v2278_v2  ;;  %vm2295_vm7 = vweird.f32 %v3126_v21  ;;  %v4645_v37 = vpop.eup %3127 }
 0x58d   :  { %v1551_v1 = vsub.f32 %v4418_v35, %v1471_v41  ;;  %v2287_v12 = vsel %vm2284_vm5, %v2286_v53, %v2282_v8  ;;  %vm2296_vm9 = vmor %vm2294_vm8, %vm2295_vm7  ;;  %v2301_v35 = vor.u32 1.1754944e-38, %v2300_v9 }
 0x58e   :  { %v2291_v52 = vsub.f32 1.0, %v2290_v25  ;;  %v2288_v45 = vmul.f32 %v4396_v24, %v2287_v12 }
 0x58f   :  { %v1662_v15 = vmul.f32 1.442695, %v1551_v1  ;;  %v4651_v11 = vpop.eup %3129 }
 0x590   :  { %v2292_v3 = vmul.f32 %v3126_v21, %v2291_v52  ;;  %2815 = vst.msk [vmem:[%s4919_s4 + $0xf0] sm:$0xff] %vm2784_vm6, %v2288_v45 }
 0x591   :  { %3131 = vpow2.f32 %v1662_v15 }
 0x592   :  { %v2293_v61 = vadd.f32 %v3126_v21, %v2292_v3 }
 0x593   :  { %v1761_v24 = vpop.xlane.xlu0 %1760 }
 0x594   :  { %1784 = vadd.xlane.f32.xlu0 %v4645_v37  ;;  %1788 = vadd.xlane.f32.xlu2 %v4651_v11  ;;  %v2297_v59 = vsel %vm2296_vm9, %v3126_v21, %v2293_v61  ;;  %3133 = vrcp.f32 %v1761_v24  ;;  %v2315_v43 = vand.u32 2147483648, %v1761_v24  ;;  %vm2309_vm12 = vweird.f32 %v1761_v24 }
 0x595   :  { %v2302_v18 = vsel %vm2299_vm10, %v2301_v35, %v2297_v59 }
 0x596   :  { %v2303_v63 = vmul.f32 %v4405_v57, %v2302_v18  ;;  %v2313_v57 = vand.u32 2147483647, %v1761_v24  ;;  %v2316_v21 = vor.u32 1.1754944e-38, %v2315_v43 }
 0x597   :  { %v4660_v29 = vpop.eup %3131 }
 0x598   :  { %2816 = vst.msk [vmem:[%s4919_s4 + $0xf8] sm:$0xff] %vm2784_vm6, %v2303_v63  ;;  %vm2314_vm14 = vcmp.eq.f32.partialorder %v2313_v57, 8.507059e+37 }
 0x59a   :  { %v3134_v19 = vpop.eup %3133 }
 0x59b   :  { %v2305_v31 = vmul.f32 %v3134_v19, %v1761_v24  ;;  %v1763_v0 = vpop.xlane.xlu1 %1762  ;;  %v1473_v13 = vpop.xlane.xlu0 %1472  ;;  %vm2310_vm11 = vweird.f32 %v3134_v19 }
 0x59c   :  { %1790 = vadd.xlane.f32.xlu0 %v4660_v29  ;;  %3135 = vrcp.f32 %v1763_v0  ;;  %v1552_v6 = vsub.f32 %v4435_v46, %v1473_v13  ;;  %vm2311_vm13 = vmor %vm2309_vm12, %vm2310_vm11  ;;  %v2330_v52 = vand.u32 2147483648, %v1763_v0  ;;  %v2328_v15 = vand.u32 2147483647, %v1763_v0 }
 0x59d   :  { %v2306_v17 = vsub.f32 1.0, %v2305_v31  ;;  %vm2324_vm0 = vweird.f32 %v1763_v0 }
 0x59e   :  { %v1664_v27 = vmul.f32 1.442695, %v1552_v6  ;;  %vm2329_vm2 = vcmp.eq.f32.partialorder %v2328_v15, 8.507059e+37 }
 0x59f   :  { %v2307_v54 = vmul.f32 %v3134_v19, %v2306_v17 }
 0x5a0   :  { %3137 = vpow2.f32 %v1664_v27 }
 0x5a1   :  { %v2308_v34 = vadd.f32 %v3134_v19, %v2307_v54 }
 0x5a2   :  { %v3136_v62 = vpop.eup %3135 }
 0x5a3   :  { %v2312_v2 = vsel %vm2311_vm13, %v3134_v19, %v2308_v34  ;;  %v2320_v53 = vmul.f32 %v3136_v62, %v1763_v0  ;;  %v1475_v25 = vpop.xlane.xlu1 %1474  ;;  %v1765_v12 = vpop.xlane.xlu2 %1764  ;;  %vm2325_vm15 = vweird.f32 %v3136_v62 }
 0x5a4   :  { %v2317_v41 = vsel %vm2314_vm14, %v2316_v21, %v2312_v2  ;;  %v1553_v8 = vsub.f32 %v4452_v30, %v1475_v25  ;;  %3139 = vrcp.f32 %v1765_v12  ;;  %vm2326_vm1 = vmor %vm2324_vm0, %vm2325_vm15  ;;  %v2345_v13 = vand.u32 2147483648, %v1765_v12 }
 0x5a5   :  { %v2318_v46 = vmul.f32 %v4425_v22, %v2317_v41  ;;  %v2321_v1 = vsub.f32 1.0, %v2320_v53  ;;  %v2331_v22 = vor.u32 1.1754944e-38, %v2330_v52  ;;  %v2343_v43 = vand.u32 2147483647, %v1765_v12 }
 0x5a6   :  { %v4666_v45 = vpop.eup %3137  ;;  %v1666_v3 = vmul.f32 1.442695, %v1553_v8  ;;  %vm2339_vm4 = vweird.f32 %v1765_v12  ;;  %v2346_v34 = vor.u32 1.1754944e-38, %v2345_v13 }
 0x5a7   :  { %2817 = vst.msk [vmem:[%s4919_s4 + $0x100] sm:$0xff] %vm2784_vm6, %v2318_v46  ;;  %v2322_v9 = vmul.f32 %v3136_v62, %v2321_v1  ;;  %1792 = vadd.xlane.f32.xlu1 %v4666_v45  ;;  %vm2344_vm7 = vcmp.eq.f32.partialorder %v2343_v43, 8.507059e+37 }
 0x5a8   :  { %3141 = vpow2.f32 %v1666_v3 }
 0x5a9   :  { %v2323_v30 = vadd.f32 %v3136_v62, %v2322_v9 }
 0x5aa   :  { %v3140_v35 = vpop.eup %3139 }
 0x5ab   :  { %v2327_v33 = vsel %vm2326_vm1, %v3136_v62, %v2323_v30  ;;  %v1767_v61 = vpop.xlane.xlu0 %1766  ;;  %v2335_v18 = vmul.f32 %v3140_v35, %v1765_v12  ;;  %v1477_v63 = vpop.xlane.xlu2 %1476  ;;  %vm2340_vm3 = vweird.f32 %v3140_v35 }
 0x5ac   :  { %v2332_v24 = vsel %vm2329_vm2, %v2331_v22, %v2327_v33  ;;  %3143 = vrcp.f32 %v1767_v61  ;;  %v1554_v19 = vsub.f32 %v4471_v5, %v1477_v63  ;;  %vm2341_vm5 = vmor %vm2339_vm4, %vm2340_vm3  ;;  %v2358_v25 = vand.u32 2147483647, %v1767_v61 }
 0x5ad   :  { %v2333_v59 = vmul.f32 %v4438_v23, %v2332_v24  ;;  %v2336_v0 = vsub.f32 1.0, %v2335_v18  ;;  %v2360_v41 = vand.u32 2147483648, %v1767_v61  ;;  %vm2354_vm9 = vweird.f32 %v1767_v61 }
 0x5ae   :  { %v4675_v31 = vpop.eup %3141  ;;  %v1668_v17 = vmul.f32 1.442695, %v1554_v19  ;;  %vm2359_vm11 = vcmp.eq.f32.partialorder %v2358_v25, 8.507059e+37 }
 0x5af   :  { %2818 = vst.msk [vmem:[%s4919_s4 + $0x108] sm:$0xff] %vm2784_vm6, %v2333_v59  ;;  %1794 = vadd.xlane.f32.xlu2 %v4675_v31  ;;  %v2337_v6 = vmul.f32 %v3140_v35, %v2336_v0  ;;  %v2361_v9 = vor.u32 1.1754944e-38, %v2360_v41 }
 0x5b0   :  { %3145 = vpow2.f32 %v1668_v17 }
 0x5b1   :  { %v2338_v54 = vadd.f32 %v3140_v35, %v2337_v6 }
 0x5b2   :  { %v3144_v23 = vpop.eup %3143 }
 0x5b3   :  { %v2350_v5 = vmul.f32 %v3144_v23, %v1767_v61  ;;  %v1769_v57 = vpop.xlane.xlu1 %1768  ;;  %v1479_v27 = vpop.xlane.xlu0 %1478  ;;  %v2342_v62 = vsel %vm2341_vm5, %v3140_v35, %v2338_v54  ;;  %vm2355_vm8 = vweird.f32 %v3144_v23 }
 0x5b4   :  { %3147 = vrcp.f32 %v1769_v57  ;;  %v1555_v2 = vsub.f32 %v4488_v16, %v1479_v27  ;;  %v2347_v53 = vsel %vm2344_vm7, %v2346_v34, %v2342_v62  ;;  %vm2356_vm10 = vmor %vm2354_vm9, %vm2355_vm8  ;;  %v2375_v59 = vand.u32 2147483648, %v1769_v57 }
 0x5b5   :  { %v2351_v21 = vsub.f32 1.0, %v2350_v5  ;;  %v2348_v8 = vmul.f32 %v4458_v39, %v2347_v53  ;;  %v2373_v63 = vand.u32 2147483647, %v1769_v57  ;;  %vm2369_vm13 = vweird.f32 %v1769_v57 }
 0x5b6   :  { %v1670_v1 = vmul.f32 1.442695, %v1555_v2  ;;  %v4684_v12 = vpop.eup %3145 }
 0x5b7   :  { %v2352_v46 = vmul.f32 %v3144_v23, %v2351_v21  ;;  %2819 = vst.msk [vmem:[%s4919_s4 + $0x110] sm:$0xff] %vm2784_vm6, %v2348_v8  ;;  %1796 = vadd.xlane.f32.xlu0 %v4684_v12  ;;  %vm2374_vm15 = vcmp.eq.f32.partialorder %v2373_v63, 8.507059e+37 }
 0x5b8   :  { %3149 = vpow2.f32 %v1670_v1 }
 0x5b9   :  { %v2353_v52 = vadd.f32 %v3144_v23, %v2352_v46 }
 0x5ba   :  { %v3148_v16 = vpop.eup %3147 }
 0x5bb   :  { %v2357_v15 = vsel %vm2356_vm10, %v3144_v23, %v2353_v52  ;;  %v2365_v39 = vmul.f32 %v3148_v16, %v1769_v57  ;;  %v1481_v3 = vpop.xlane.xlu1 %1480  ;;  %v1771_v24 = vpop.xlane.xlu2 %1770  ;;  %vm2370_vm12 = vweird.f32 %v3148_v16 }
 0x5bc   :  { %v2362_v30 = vsel %vm2359_vm11, %v2361_v9, %v2357_v15  ;;  %v1556_v22 = vsub.f32 %v4504_v44, %v1481_v3  ;;  %3151 = vrcp.f32 %v1771_v24  ;;  %vm2371_vm14 = vmor %vm2369_vm13, %vm2370_vm12  ;;  %v2390_v34 = vand.u32 2147483648, %v1771_v24 }
 0x5bd   :  { %v2363_v33 = vmul.f32 %v4467_v42, %v2362_v30  ;;  %v2366_v35 = vsub.f32 1.0, %v2365_v39  ;;  %v2376_v42 = vor.u32 1.1754944e-38, %v2375_v59  ;;  %vm2384_vm1 = vweird.f32 %v1771_v24 }
 0x5be   :  { %v4693_v61 = vpop.eup %3149  ;;  %v1672_v19 = vmul.f32 1.442695, %v1556_v22  ;;  %v2391_v25 = vor.u32 1.1754944e-38, %v2390_v34 }
 0x5bf   :  { %2820 = vst.msk [vmem:[%s4919_s4 + $0x118] sm:$0xff] %vm2784_vm6, %v2363_v33  ;;  %v2367_v18 = vmul.f32 %v3148_v16, %v2366_v35  ;;  %1798 = vadd.xlane.f32.xlu1 %v4693_v61 }
 0x5c0   :  { %3153 = vpow2.f32 %v1672_v19 }
 0x5c1   :  { %v2368_v44 = vadd.f32 %v3148_v16, %v2367_v18 }
 0x5c2   :  { %v3152_v13 = vpop.eup %3151 }
 0x5c3   :  { %v2372_v0 = vsel %vm2371_vm14, %v3148_v16, %v2368_v44  ;;  %v1773_v6 = vpop.xlane.xlu0 %1772  ;;  %v2380_v23 = vmul.f32 %v3152_v13, %v1771_v24  ;;  %v1483_v54 = vpop.xlane.xlu2 %1482  ;;  %vm2385_vm0 = vweird.f32 %v3152_v13 }
 0x5c4   :  { %v2377_v17 = vsel %vm2374_vm15, %v2376_v42, %v2372_v0  ;;  %3155 = vrcp.f32 %v1773_v6  ;;  %v1557_v5 = vsub.f32 %v4524_v47, %v1483_v54  ;;  %vm2386_vm2 = vmor %vm2384_vm1, %vm2385_vm0  ;;  %v2405_v15 = vand.u32 2147483648, %v1773_v6 }
 0x5c5   :  { %v2378_v43 = vmul.f32 %v4491_v58, %v2377_v17  ;;  %v2381_v57 = vsub.f32 1.0, %v2380_v23  ;;  %v2388_v58 = vand.u32 2147483647, %v1771_v24  ;;  %v2403_v22 = vand.u32 2147483647, %v1773_v6 }
 0x5c6   :  { %v4702_v27 = vpop.eup %3153  ;;  %v1674_v62 = vmul.f32 1.442695, %v1557_v5  ;;  %vm2399_vm5 = vweird.f32 %v1773_v6 }
 0x5c7   :  { %2821 = vst.msk [vmem:[%s4919_s4 + $0x120] sm:$0xff] %vm2784_vm6, %v2378_v43  ;;  %1800 = vadd.xlane.f32.xlu2 %v4702_v27  ;;  %v2382_v21 = vmul.f32 %v3152_v13, %v2381_v57  ;;  %vm2389_vm3 = vcmp.eq.f32.partialorder %v2388_v58, 8.507059e+37  ;;  %vm2404_vm8 = vcmp.eq.f32.partialorder %v2403_v22, 8.507059e+37 }
 0x5c8   :  { %3157 = vpow2.f32 %v1674_v62 }
 0x5c9   :  { %v2383_v53 = vadd.f32 %v3152_v13, %v2382_v21 }
 0x5ca   :  { %v3156_v2 = vpop.eup %3155 }
 0x5cb   :  { %v1775_v47 = vpop.xlane.xlu1 %1774  ;;  %v2395_v41 = vmul.f32 %v3156_v2, %v1773_v6  ;;  %v1485_v8 = vpop.xlane.xlu0 %1484  ;;  %v2387_v46 = vsel %vm2386_vm2, %v3152_v13, %v2383_v53  ;;  %vm2400_vm4 = vweird.f32 %v3156_v2 }
 0x5cc   :  { %3159 = vrcp.f32 %v1775_v47  ;;  %v1558_v1 = vsub.f32 %v4539_v26, %v1485_v8  ;;  %v2392_v52 = vsel %vm2389_vm3, %v2391_v25, %v2387_v46  ;;  %vm2401_vm7 = vmor %vm2399_vm5, %vm2400_vm4  ;;  %v2420_v0 = vand.u32 2147483648, %v1775_v47 }
 0x5cd   :  { %v2396_v16 = vsub.f32 1.0, %v2395_v41  ;;  %v2393_v9 = vmul.f32 %v4511_v40, %v2392_v52  ;;  %v2406_v40 = vor.u32 1.1754944e-38, %v2405_v15  ;;  %v2418_v6 = vand.u32 2147483647, %v1775_v47 }
 0x5ce   :  { %v1676_v39 = vmul.f32 1.442695, %v1558_v1  ;;  %v4711_v3 = vpop.eup %3157  ;;  %vm2414_vm10 = vweird.f32 %v1775_v47 }
 0x5cf   :  { %v2397_v30 = vmul.f32 %v3156_v2, %v2396_v16  ;;  %2822 = vst.msk [vmem:[%s4919_s4 + $0x128] sm:$0xff] %vm2784_vm6, %v2393_v9  ;;  %1802 = vadd.xlane.f32.xlu0 %v4711_v3  ;;  %vm2419_vm12 = vcmp.eq.f32.partialorder %v2418_v6, 8.507059e+37 }
 0x5d0   :  { %3161 = vpow2.f32 %v1676_v39 }
 0x5d1   :  { %v2398_v33 = vadd.f32 %v3156_v2, %v2397_v30 }
 0x5d2   :  { %v3160_v26 = vpop.eup %3159 }
 0x5d3   :  { %v2410_v35 = vmul.f32 %v3160_v26, %v1775_v47  ;;  %v1487_v24 = vpop.xlane.xlu1 %1486  ;;  %v2402_v59 = vsel %vm2401_vm7, %v3156_v2, %v2398_v33  ;;  %v1777_v44 = vpop.xlane.xlu2 %1776  ;;  %vm2415_vm9 = vweird.f32 %v3160_v26 }
 0x5d4   :  { %v1559_v18 = vsub.f32 %v4552_v36, %v1487_v24  ;;  %v2407_v63 = vsel %vm2404_vm8, %v2406_v40, %v2402_v59  ;;  %3163 = vrcp.f32 %v1777_v44  ;;  %vm2416_vm11 = vmor %vm2414_vm10, %vm2415_vm9  ;;  %v2435_v47 = vand.u32 2147483648, %v1777_v44 }
 0x5d5   :  { %v2411_v19 = vsub.f32 1.0, %v2410_v35  ;;  %v2408_v42 = vmul.f32 %v4520_v49, %v2407_v63  ;;  %v2421_v49 = vor.u32 1.1754944e-38, %v2420_v0  ;;  %vm2429_vm14 = vweird.f32 %v1777_v44 }
 0x5d6   :  { %v4720_v13 = vpop.eup %3161  ;;  %v1678_v43 = vmul.f32 1.442695, %v1559_v18  ;;  %v2436_v1 = vor.u32 1.1754944e-38, %v2435_v47 }
 0x5d7   :  { %v2412_v17 = vmul.f32 %v3160_v26, %v2411_v19  ;;  %2823 = vst.msk [vmem:[%s4919_s4 + $0x130] sm:$0xff] %vm2784_vm6, %v2408_v42  ;;  %1804 = vadd.xlane.f32.xlu1 %v4720_v13 }
 0x5d8   :  { %3165 = vpow2.f32 %v1678_v43 }
 0x5d9   :  { %v2413_v36 = vadd.f32 %v3160_v26, %v2412_v17 }
 0x5da   :  { %v3164_v54 = vpop.eup %3163 }
 0x5db   :  { %v2417_v23 = vsel %vm2416_vm11, %v3160_v26, %v2413_v36  ;;  %v1779_v57 = vpop.xlane.xlu0 %1778  ;;  %v2425_v62 = vmul.f32 %v3164_v54, %v1777_v44  ;;  %v1489_v21 = vpop.xlane.xlu2 %1488  ;;  %vm2430_vm13 = vweird.f32 %v3164_v54 }
 0x5dc   :  { %v2422_v5 = vsel %vm2419_vm12, %v2421_v49, %v2417_v23  ;;  %3167 = vrcp.f32 %v1779_v57  ;;  %v1560_v58 = vsub.f32 %v4572_v56, %v1489_v21  ;;  %vm2431_vm15 = vmor %vm2429_vm14, %vm2430_vm13  ;;  %v2450_v40 = vand.u32 2147483648, %v1779_v57 }
 0x5dd   :  { %v2423_v34 = vmul.f32 %v4535_v48, %v2422_v5  ;;  %v2426_v53 = vsub.f32 1.0, %v2425_v62  ;;  %v2433_v48 = vand.u32 2147483647, %v1777_v44  ;;  %v2448_v18 = vand.u32 2147483647, %v1779_v57 }
 0x5de   :  { %v4729_v2 = vpop.eup %3165  ;;  %v1680_v25 = vmul.f32 1.442695, %v1560_v58  ;;  %vm2444_vm2 = vweird.f32 %v1779_v57 }
 0x5df   :  { %2824 = vst.msk [vmem:[%s4919_s4 + $0x138] sm:$0xff] %vm2784_vm6, %v2423_v34  ;;  %1806 = vadd.xlane.f32.xlu2 %v4729_v2  ;;  %v2427_v41 = vmul.f32 %v3164_v54, %v2426_v53  ;;  %vm2434_vm0 = vcmp.eq.f32.partialorder %v2433_v48, 8.507059e+37  ;;  %vm2449_vm4 = vcmp.eq.f32.partialorder %v2448_v18, 8.507059e+37 }
 0x5e0   :  { %3169 = vpow2.f32 %v1680_v25 }
 0x5e1   :  { %v2428_v46 = vadd.f32 %v3164_v54, %v2427_v41 }
 0x5e2   :  { %v3168_v8 = vpop.eup %3167 }
 0x5e3   :  { %v1781_v56 = vpop.xlane.xlu1 %1780  ;;  %v2440_v52 = vmul.f32 %v3168_v8, %v1779_v57  ;;  %v1491_v16 = vpop.xlane.xlu0 %1490  ;;  %v2432_v9 = vsel %vm2431_vm15, %v3164_v54, %v2428_v46  ;;  %vm2445_vm1 = vweird.f32 %v3168_v8 }
 0x5e4   :  { %3171 = vrcp.f32 %v1781_v56  ;;  %v1495_v15 = vpop.xlane.xlu2 %1494  ;;  %v1561_v39 = vsub.f32 %v4585_v7, %v1491_v16  ;;  %v2437_v30 = vsel %vm2434_vm0, %v2436_v1, %v2432_v9  ;;  %vm2446_vm3 = vmor %vm2444_vm2, %vm2445_vm1  ;;  %v2465_v23 = vand.u32 2147483648, %v1781_v56 }
 0x5e5   :  { %v2441_v22 = vsub.f32 1.0, %v2440_v52  ;;  %v1563_v26 = vsub.f32 %v4592_v14, %v1495_v15  ;;  %v2438_v33 = vmul.f32 %v4559_v20, %v2437_v30  ;;  %v2451_v20 = vor.u32 1.1754944e-38, %v2450_v40 }
 0x5e6   :  { %v1682_v35 = vmul.f32 1.442695, %v1561_v39  ;;  %v4739_v24 = vpop.eup %3169  ;;  %v2463_v34 = vand.u32 2147483647, %v1781_v56  ;;  %vm2459_vm7 = vweird.f32 %v1781_v56 }
 0x5e7   :  { %v2442_v59 = vmul.f32 %v3168_v8, %v2441_v22  ;;  %v1686_v63 = vmul.f32 1.442695, %v1563_v26  ;;  %2825 = vst.msk [vmem:[%s4919_s4 + $0x140] sm:$0xff] %vm2784_vm6, %v2438_v33  ;;  %1808 = vadd.xlane.f32.xlu0 %v4739_v24 }
 0x5e8   :  { %3173 = vpow2.f32 %v1682_v35  ;;  %vm2464_vm9 = vcmp.eq.f32.partialorder %v2463_v34, 8.507059e+37 }
 0x5e9   :  { %v2443_v14 = vadd.f32 %v3168_v8, %v2442_v59  ;;  %3175 = vpow2.f32 %v1686_v63 }
 0x5ea   :  { %v3172_v7 = vpop.eup %3171 }
 0x5eb   :  { %v2455_v19 = vmul.f32 %v3172_v7, %v1781_v56  ;;  %v1493_v44 = vpop.xlane.xlu1 %1492  ;;  %v2447_v42 = vsel %vm2446_vm3, %v3168_v8, %v2443_v14  ;;  %v1497_v17 = vpop.xlane.xlu0 %1496  ;;  %vm2460_vm5 = vweird.f32 %v3172_v7 }
 0x5ec   :  { %v1562_v0 = vsub.f32 %v4599_v10, %v1493_v44  ;;  %v2452_v6 = vsel %vm2449_vm4, %v2451_v20, %v2447_v42  ;;  %v1564_v36 = vsub.f32 %v4603_v50, %v1497_v17  ;;  %vm2461_vm8 = vmor %vm2459_vm7, %vm2460_vm5 }
 0x5ed   :  { %v2456_v43 = vsub.f32 1.0, %v2455_v19  ;;  %v2453_v49 = vmul.f32 %v4568_v51, %v2452_v6  ;;  %v2466_v51 = vor.u32 1.1754944e-38, %v2465_v23 }
 0x5ee   :  { %v1684_v54 = vmul.f32 1.442695, %v1562_v0  ;;  %v4749_v5 = vpop.eup %3173  ;;  %v1688_v62 = vmul.f32 1.442695, %v1564_v36 }
 0x5ef   :  { %v2457_v57 = vmul.f32 %v3172_v7, %v2456_v43  ;;  %v4751_v21 = vpop.eup %3175  ;;  %2826 = vst.msk [vmem:[%s4919_s4 + $0x148] sm:$0xff] %vm2784_vm6, %v2453_v49  ;;  %1810 = vadd.xlane.f32.xlu1 %v4749_v5 }
 0x5f0   :  { %3177 = vpow2.f32 %v1684_v54  ;;  %1814 = vadd.xlane.f32.xlu0 %v4751_v21 }
 0x5f1   :  { %v2458_v10 = vadd.f32 %v3172_v7, %v2457_v57  ;;  %3179 = vpow2.f32 %v1688_v62 }
 0x5f3   :  { %v2462_v50 = vsel %vm2461_vm8, %v3172_v7, %v2458_v10  ;;  %v1499_v58 = vpop.xlane.xlu1 %1498 }
 0x5f4   :  { %v2467_v53 = vsel %vm2464_vm9, %v2466_v51, %v2462_v50  ;;  %v1565_v47 = vsub.f32 %v4614_v28, %v1499_v58 }
 0x5f5   :  { %v2468_v25 = vmul.f32 %v4581_v32, %v2467_v53 }
 0x5f6   :  { %v4761_v41 = vpop.eup %3177  ;;  %v1690_v48 = vmul.f32 1.442695, %v1565_v47 }
 0x5f7   :  { %v1501_v8 = vpop.xlane.xlu2 %1500  ;;  %v4763_v46 = vpop.eup %3179  ;;  %2827 = vst.msk [vmem:[%s4919_s4 + $0x150] sm:$0xff] %vm2784_vm6, %v2468_v25  ;;  %1812 = vadd.xlane.f32.xlu2 %v4761_v41 }
 0x5f8   :  { %v1566_v56 = vsub.f32 %v4623_v4, %v1501_v8  ;;  %3181 = vpow2.f32 %v1690_v48  ;;  %1816 = vadd.xlane.f32.xlu1 %v4763_v46 }
 0x5fa   :  { %v1692_v28 = vmul.f32 1.442695, %v1566_v56 }
 0x5fb   :  { %v1787_v32 = vpop.xlane.xlu1 %1786 }
 0x5fc   :  { %3183 = vpow2.f32 %v1692_v28  ;;  %v2510_v33 = vand.u32 2147483648, %v1787_v32  ;;  %v2508_v63 = vand.u32 2147483647, %v1787_v32  ;;  %vm2504_vm11 = vweird.f32 %v1787_v32 }
 0x5fd   :  { %3185 = vrcp.f32 %v1787_v32 }
 0x5fe   :  { %v4772_v1 = vpop.eup %3181  ;;  %v2511_v19 = vor.u32 1.1754944e-38, %v2510_v33  ;;  %vm2509_vm14 = vcmp.eq.f32.partialorder %v2508_v63, 8.507059e+37 }
 0x5ff   :  { %v1783_v52 = vpop.xlane.xlu2 %1782  ;;  %v1503_v16 = vpop.xlane.xlu0 %1502  ;;  %1818 = vadd.xlane.f32.xlu2 %v4772_v1 }
 0x600   :  { %3187 = vrcp.f32 %v1783_v52  ;;  %v1567_v9 = vsub.f32 %v4637_v60, %v1503_v16  ;;  %v2480_v14 = vand.u32 2147483648, %v1783_v52  ;;  %v2478_v42 = vand.u32 2147483647, %v1783_v52 }
 0x601   :  { %vm2474_vm15 = vweird.f32 %v1783_v52 }
 0x602   :  { %v4776_v15 = vpop.eup %3183  ;;  %v1694_v39 = vmul.f32 1.442695, %v1567_v9  ;;  %v2481_v49 = vor.u32 1.1754944e-38, %v2480_v14  ;;  %vm2479_vm1 = vcmp.eq.f32.partialorder %v2478_v42, 8.507059e+37 }
 0x603   :  { %v3186_v4 = vpop.eup %3185  ;;  %1820 = vadd.xlane.f32.xlu0 %v4776_v15 }
 0x604   :  { %v2500_v30 = vmul.f32 %v3186_v4, %v1787_v32  ;;  %3189 = vpow2.f32 %v1694_v39  ;;  %vm2505_vm10 = vweird.f32 %v3186_v4 }
 0x605   :  { %vm2506_vm12 = vmor %vm2504_vm11, %vm2505_vm10 }
 0x606   :  { %v3188_v22 = vpop.eup %3187  ;;  %v2501_v26 = vsub.f32 1.0, %v2500_v30 }
 0x607   :  { %v2470_v40 = vmul.f32 %v3188_v22, %v1783_v52  ;;  %v1789_v35 = vpop.xlane.xlu2 %1788  ;;  %v1785_v59 = vpop.xlane.xlu0 %1784  ;;  %vm2475_vm13 = vweird.f32 %v3188_v22 }
 0x608   :  { %v2502_v18 = vmul.f32 %v3186_v4, %v2501_v26  ;;  %3191 = vrcp.f32 %v1789_v35  ;;  %vm2476_vm0 = vmor %vm2474_vm15, %vm2475_vm13  ;;  %v2525_v58 = vand.u32 2147483648, %v1789_v35  ;;  %v2523_v47 = vand.u32 2147483647, %v1789_v35 }
 0x609   :  { %v2471_v7 = vsub.f32 1.0, %v2470_v40  ;;  %3193 = vrcp.f32 %v1785_v59  ;;  %v2495_v25 = vand.u32 2147483648, %v1785_v59  ;;  %v2493_v8 = vand.u32 2147483647, %v1785_v59 }
 0x60a   :  { %v2503_v60 = vadd.f32 %v3186_v4, %v2502_v18  ;;  %v4779_v20 = vpop.eup %3189  ;;  %vm2519_vm4 = vweird.f32 %v1789_v35  ;;  %vm2489_vm7 = vweird.f32 %v1785_v59  ;;  %vm2524_vm8 = vcmp.eq.f32.partialorder %v2523_v47, 8.507059e+37 }
 0x60b   :  { %v2472_v44 = vmul.f32 %v3188_v22, %v2471_v7  ;;  %1822 = vadd.xlane.f32.xlu1 %v4779_v20  ;;  %v2496_v16 = vor.u32 1.1754944e-38, %v2495_v25  ;;  %vm2494_vm10 = vcmp.eq.f32.partialorder %v2493_v8, 8.507059e+37 }
 0x60c   :  { %v2507_v0 = vsel %vm2506_vm12, %v3186_v4, %v2503_v60 }
 0x60d   :  { %v2512_v17 = vsel %vm2509_vm14, %v2511_v19, %v2507_v0  ;;  %v2473_v6 = vadd.f32 %v3188_v22, %v2472_v44 }
 0x60e   :  { %v3192_v43 = vpop.eup %3191  ;;  %v2513_v36 = vmul.f32 %v4628_v38, %v2512_v17 }
 0x60f   :  { %v3194_v23 = vpop.eup %3193  ;;  %v2477_v54 = vsel %vm2476_vm0, %v3188_v22, %v2473_v6  ;;  %v2515_v57 = vmul.f32 %v3192_v43, %v1789_v35  ;;  %v1791_v34 = vpop.xlane.xlu0 %1790  ;;  %vm2520_vm2 = vweird.f32 %v3192_v43 }
 0x610   :  { %2830 = vst.msk [vmem:[%s4919_s4 + $0x168] sm:$0xff] %vm2784_vm6, %v2513_v36  ;;  %v2482_v62 = vsel %vm2479_vm1, %v2481_v49, %v2477_v54  ;;  %v2485_v10 = vmul.f32 %v3194_v23, %v1785_v59  ;;  %3195 = vrcp.f32 %v1791_v34  ;;  %vm2490_vm3 = vweird.f32 %v3194_v23  ;;  %vm2521_vm5 = vmor %vm2519_vm4, %vm2520_vm2 }
 0x611   :  { %v2483_v51 = vmul.f32 %v4639_v55, %v2482_v62  ;;  %v2516_v50 = vsub.f32 1.0, %v2515_v57  ;;  %v2526_v55 = vor.u32 1.1754944e-38, %v2525_v58  ;;  %vm2491_vm9 = vmor %vm2489_vm7, %vm2490_vm3  ;;  %v2540_v40 = vand.u32 2147483648, %v1791_v34 }
 0x612   :  { %v2486_v38 = vsub.f32 1.0, %v2485_v10  ;;  %v2538_v59 = vand.u32 2147483647, %v1791_v34  ;;  %vm2534_vm12 = vweird.f32 %v1791_v34 }
 0x613   :  { %2828 = vst.msk [vmem:[%s4919_s4 + $0x158] sm:$0xff] %vm2784_vm6, %v2483_v51  ;;  %v2517_v53 = vmul.f32 %v3192_v43, %v2516_v50 }
 0x614   :  { %v2487_v48 = vmul.f32 %v3194_v23, %v2486_v38  ;;  %vm2539_vm14 = vcmp.eq.f32.partialorder %v2538_v59, 8.507059e+37 }
 0x615   :  { %v2518_v56 = vadd.f32 %v3192_v43, %v2517_v53 }
 0x616   :  { %v3196_v28 = vpop.eup %3195  ;;  %v2488_v32 = vadd.f32 %v3194_v23, %v2487_v48 }
 0x617   :  { %v2522_v52 = vsel %vm2521_vm5, %v3192_v43, %v2518_v56  ;;  %v2530_v9 = vmul.f32 %v3196_v28, %v1791_v34  ;;  %vm2535_vm11 = vweird.f32 %v3196_v28 }
 0x618   :  { %v2527_v4 = vsel %vm2524_vm8, %v2526_v55, %v2522_v52  ;;  %v2492_v39 = vsel %vm2491_vm9, %v3194_v23, %v2488_v32  ;;  %vm2536_vm13 = vmor %vm2534_vm12, %vm2535_vm11 }
 0x619   :  { %v2528_v30 = vmul.f32 %v4651_v11, %v2527_v4  ;;  %v2497_v22 = vsel %vm2494_vm10, %v2496_v16, %v2492_v39  ;;  %v2531_v26 = vsub.f32 1.0, %v2530_v9 }
 0x61a   :  { %v2498_v33 = vmul.f32 %v4645_v37, %v2497_v22  ;;  %v1793_v18 = vpop.xlane.xlu1 %1792  ;;  %v2541_v37 = vor.u32 1.1754944e-38, %v2540_v40 }
 0x61b   :  { %2831 = vst.msk [vmem:[%s4919_s4 + $0x170] sm:$0xff] %vm2784_vm6, %v2528_v30  ;;  %v2532_v35 = vmul.f32 %v3196_v28, %v2531_v26  ;;  %3197 = vrcp.f32 %v1793_v18  ;;  %v2555_v0 = vand.u32 2147483648, %v1793_v18  ;;  %v2553_v6 = vand.u32 2147483647, %v1793_v18 }
 0x61c   :  { %2829 = vst.msk [vmem:[%s4919_s4 + $0x160] sm:$0xff] %vm2784_vm6, %v2498_v33  ;;  %vm2549_vm0 = vweird.f32 %v1793_v18 }
 0x61d   :  { %v2533_v11 = vadd.f32 %v3196_v28, %v2532_v35  ;;  %v2556_v49 = vor.u32 1.1754944e-38, %v2555_v0  ;;  %vm2554_vm2 = vcmp.eq.f32.partialorder %v2553_v6, 8.507059e+37 }
 0x61f   :  { %v2537_v63 = vsel %vm2536_vm13, %v3196_v28, %v2533_v11 }
 0x620   :  { %v2542_v7 = vsel %vm2539_vm14, %v2541_v37, %v2537_v63 }
 0x621   :  { %v2543_v60 = vmul.f32 %v4660_v29, %v2542_v7  ;;  %v3198_v14 = vpop.eup %3197 }
 0x622   :  { %v2545_v19 = vmul.f32 %v3198_v14, %v1793_v18  ;;  %v1795_v44 = vpop.xlane.xlu2 %1794  ;;  %vm2550_vm15 = vweird.f32 %v3198_v14 }
 0x623   :  { %2832 = vst.msk [vmem:[%s4919_s4 + $0x178] sm:$0xff] %vm2784_vm6, %v2543_v60  ;;  %3199 = vrcp.f32 %v1795_v44  ;;  %vm2551_vm1 = vmor %vm2549_vm0, %vm2550_vm15  ;;  %v2570_v10 = vand.u32 2147483648, %v1795_v44  ;;  %v2568_v50 = vand.u32 2147483647, %v1795_v44  ;;  %vm2564_vm4 = vweird.f32 %v1795_v44 }
 0x624   :  { %v2546_v42 = vsub.f32 1.0, %v2545_v19 }
 0x625   :  { %v2571_v38 = vor.u32 1.1754944e-38, %v2570_v10  ;;  %vm2569_vm7 = vcmp.eq.f32.partialorder %v2568_v50, 8.507059e+37 }
 0x626   :  { %v2547_v17 = vmul.f32 %v3198_v14, %v2546_v42 }
 0x628   :  { %v2548_v43 = vadd.f32 %v3198_v14, %v2547_v17 }
 0x629   :  { %v3200_v36 = vpop.eup %3199 }
 0x62a   :  { %v2552_v29 = vsel %vm2551_vm1, %v3198_v14, %v2548_v43  ;;  %v2560_v23 = vmul.f32 %v3200_v36, %v1795_v44  ;;  %v1797_v57 = vpop.xlane.xlu0 %1796  ;;  %vm2565_vm3 = vweird.f32 %v3200_v36 }
 0x62b   :  { %v2557_v54 = vsel %vm2554_vm2, %v2556_v49, %v2552_v29  ;;  %3201 = vrcp.f32 %v1797_v57  ;;  %vm2566_vm5 = vmor %vm2564_vm4, %vm2565_vm3  ;;  %v2585_v28 = vand.u32 2147483648, %v1797_v57  ;;  %v2583_v32 = vand.u32 2147483647, %v1797_v57 }
 0x62c   :  { %v2558_v34 = vmul.f32 %v4666_v45, %v2557_v54  ;;  %v2561_v62 = vsub.f32 1.0, %v2560_v23  ;;  %vm2579_vm9 = vweird.f32 %v1797_v57 }
 0x62d   :  { %v2586_v9 = vor.u32 1.1754944e-38, %v2585_v28  ;;  %vm2584_vm11 = vcmp.eq.f32.partialorder %v2583_v32, 8.507059e+37 }
 0x62e   :  { %2833 = vst.msk [vmem:[%s4919_s4 + $0x180] sm:$0xff] %vm2784_vm6, %v2558_v34  ;;  %v2562_v51 = vmul.f32 %v3200_v36, %v2561_v62 }
 0x630   :  { %v2563_v58 = vadd.f32 %v3200_v36, %v2562_v51 }
 0x631   :  { %v3202_v53 = vpop.eup %3201 }
 0x632   :  { %v2567_v47 = vsel %vm2566_vm5, %v3200_v36, %v2563_v58  ;;  %v1799_v25 = vpop.xlane.xlu1 %1798  ;;  %v2575_v48 = vmul.f32 %v3202_v53, %v1797_v57  ;;  %vm2580_vm8 = vweird.f32 %v3202_v53 }
 0x633   :  { %v2572_v45 = vsel %vm2569_vm7, %v2571_v38, %v2567_v47  ;;  %3203 = vrcp.f32 %v1799_v25  ;;  %vm2581_vm10 = vmor %vm2579_vm9, %vm2580_vm8  ;;  %v2600_v33 = vand.u32 2147483648, %v1799_v25  ;;  %v2598_v35 = vand.u32 2147483647, %v1799_v25 }
 0x634   :  { %v2573_v8 = vmul.f32 %v4675_v31, %v2572_v45  ;;  %v2576_v56 = vsub.f32 1.0, %v2575_v48  ;;  %vm2594_vm13 = vweird.f32 %v1799_v25 }
 0x635   :  { %v2601_v11 = vor.u32 1.1754944e-38, %v2600_v33  ;;  %vm2599_vm15 = vcmp.eq.f32.partialorder %v2598_v35, 8.507059e+37 }
 0x636   :  { %2834 = vst.msk [vmem:[%s4919_s4 + $0x188] sm:$0xff] %vm2784_vm6, %v2573_v8  ;;  %v2577_v55 = vmul.f32 %v3202_v53, %v2576_v56 }
 0x638   :  { %v2578_v16 = vadd.f32 %v3202_v53, %v2577_v55 }
 0x639   :  { %v3204_v52 = vpop.eup %3203 }
 0x63a   :  { %v2590_v4 = vmul.f32 %v3204_v52, %v1799_v25  ;;  %v1801_v39 = vpop.xlane.xlu2 %1800  ;;  %v2582_v30 = vsel %vm2581_vm10, %v3202_v53, %v2578_v16  ;;  %vm2595_vm12 = vweird.f32 %v3204_v52 }
 0x63b   :  { %3205 = vrcp.f32 %v1801_v39  ;;  %v2587_v31 = vsel %vm2584_vm11, %v2586_v9, %v2582_v30  ;;  %vm2596_vm14 = vmor %vm2594_vm13, %vm2595_vm12  ;;  %v2615_v19 = vand.u32 2147483648, %v1801_v39  ;;  %v2613_v42 = vand.u32 2147483647, %v1801_v39 }
 0x63c   :  { %v2591_v22 = vsub.f32 1.0, %v2590_v4  ;;  %v2588_v26 = vmul.f32 %v4684_v12, %v2587_v31  ;;  %vm2609_vm1 = vweird.f32 %v1801_v39 }
 0x63d   :  { %v2616_v17 = vor.u32 1.1754944e-38, %v2615_v19  ;;  %vm2614_vm3 = vcmp.eq.f32.partialorder %v2613_v42, 8.507059e+37 }
 0x63e   :  { %v2592_v40 = vmul.f32 %v3204_v52, %v2591_v22  ;;  %2835 = vst.msk [vmem:[%s4919_s4 + $0x190] sm:$0xff] %vm2784_vm6, %v2588_v26 }
 0x640   :  { %v2593_v59 = vadd.f32 %v3204_v52, %v2592_v40 }
 0x641   :  { %v3206_v18 = vpop.eup %3205 }
 0x642   :  { %v2597_v37 = vsel %vm2596_vm14, %v3204_v52, %v2593_v59  ;;  %v2605_v63 = vmul.f32 %v3206_v18, %v1801_v39  ;;  %v1803_v60 = vpop.xlane.xlu0 %1802  ;;  %vm2610_vm0 = vweird.f32 %v3206_v18 }
 0x643   :  { %v2602_v7 = vsel %vm2599_vm15, %v2601_v11, %v2597_v37  ;;  %3207 = vrcp.f32 %v1803_v60  ;;  %vm2611_vm2 = vmor %vm2609_vm1, %vm2610_vm0  ;;  %v2630_v54 = vand.u32 2147483648, %v1803_v60  ;;  %v2628_v34 = vand.u32 2147483647, %v1803_v60 }
 0x644   :  { %v2603_v12 = vmul.f32 %v4693_v61, %v2602_v7  ;;  %v2606_v14 = vsub.f32 1.0, %v2605_v63  ;;  %vm2624_vm5 = vweird.f32 %v1803_v60 }
 0x645   :  { %v2631_v51 = vor.u32 1.1754944e-38, %v2630_v54  ;;  %vm2629_vm8 = vcmp.eq.f32.partialorder %v2628_v34, 8.507059e+37 }
 0x646   :  { %2836 = vst.msk [vmem:[%s4919_s4 + $0x198] sm:$0xff] %vm2784_vm6, %v2603_v12  ;;  %v2607_v44 = vmul.f32 %v3206_v18, %v2606_v14 }
 0x648   :  { %v2608_v0 = vadd.f32 %v3206_v18, %v2607_v44 }
 0x649   :  { %v3208_v6 = vpop.eup %3207 }
 0x64a   :  { %v2612_v43 = vsel %vm2611_vm2, %v3206_v18, %v2608_v0  ;;  %v1805_v36 = vpop.xlane.xlu1 %1804  ;;  %v2620_v49 = vmul.f32 %v3208_v6, %v1803_v60  ;;  %vm2625_vm4 = vweird.f32 %v3208_v6 }
 0x64b   :  { %v2617_v61 = vsel %vm2614_vm3, %v2616_v17, %v2612_v43  ;;  %3209 = vrcp.f32 %v1805_v36  ;;  %vm2626_vm7 = vmor %vm2624_vm5, %vm2625_vm4  ;;  %v2645_v25 = vand.u32 2147483648, %v1805_v36  ;;  %v2643_v48 = vand.u32 2147483647, %v1805_v36 }
 0x64c   :  { %v2618_v29 = vmul.f32 %v4702_v27, %v2617_v61  ;;  %v2621_v23 = vsub.f32 1.0, %v2620_v49  ;;  %vm2639_vm10 = vweird.f32 %v1805_v36 }
 0x64d   :  { %v2646_v28 = vor.u32 1.1754944e-38, %v2645_v25  ;;  %vm2644_vm12 = vcmp.eq.f32.partialorder %v2643_v48, 8.507059e+37 }
 0x64e   :  { %2837 = vst.msk [vmem:[%s4919_s4 + $0x1a0] sm:$0xff] %vm2784_vm6, %v2618_v29  ;;  %v2622_v57 = vmul.f32 %v3208_v6, %v2621_v23 }
 0x650   :  { %v2623_v10 = vadd.f32 %v3208_v6, %v2622_v57 }
 0x651   :  { %v3210_v62 = vpop.eup %3209 }
 0x652   :  { %v2635_v50 = vmul.f32 %v3210_v62, %v1805_v36  ;;  %v1807_v58 = vpop.xlane.xlu2 %1806  ;;  %v2627_v38 = vsel %vm2626_vm7, %v3208_v6, %v2623_v10  ;;  %vm2640_vm9 = vweird.f32 %v3210_v62 }
 0x653   :  { %3211 = vrcp.f32 %v1807_v58  ;;  %v2632_v27 = vsel %vm2629_vm8, %v2631_v51, %v2627_v38  ;;  %vm2641_vm11 = vmor %vm2639_vm10, %vm2640_vm9  ;;  %v2660_v4 = vand.u32 2147483648, %v1807_v58  ;;  %v2658_v30 = vand.u32 2147483647, %v1807_v58 }
 0x654   :  { %v2636_v53 = vsub.f32 1.0, %v2635_v50  ;;  %v2633_v47 = vmul.f32 %v4711_v3, %v2632_v27  ;;  %vm2654_vm14 = vweird.f32 %v1807_v58 }
 0x655   :  { %v2661_v22 = vor.u32 1.1754944e-38, %v2660_v4  ;;  %vm2659_vm0 = vcmp.eq.f32.partialorder %v2658_v30, 8.507059e+37 }
 0x656   :  { %v2637_v45 = vmul.f32 %v3210_v62, %v2636_v53  ;;  %2838 = vst.msk [vmem:[%s4919_s4 + $0x1a8] sm:$0xff] %vm2784_vm6, %v2633_v47 }
 0x658   :  { %v2638_v8 = vadd.f32 %v3210_v62, %v2637_v45 }
 0x659   :  { %v3212_v56 = vpop.eup %3211 }
 0x65a   :  { %v2642_v55 = vsel %vm2641_vm11, %v3210_v62, %v2638_v8  ;;  %v2650_v32 = vmul.f32 %v3212_v56, %v1807_v58  ;;  %v1809_v16 = vpop.xlane.xlu0 %1808  ;;  %vm2655_vm13 = vweird.f32 %v3212_v56 }
 0x65b   :  { %v2647_v52 = vsel %vm2644_vm12, %v2646_v28, %v2642_v55  ;;  %3213 = vrcp.f32 %v1809_v16  ;;  %vm2656_vm15 = vmor %vm2654_vm14, %vm2655_vm13  ;;  %v2675_v37 = vand.u32 2147483648, %v1809_v16  ;;  %v2673_v7 = vand.u32 2147483647, %v1809_v16 }
 0x65c   :  { %v2648_v3 = vmul.f32 %v4720_v13, %v2647_v52  ;;  %v2651_v9 = vsub.f32 1.0, %v2650_v32  ;;  %vm2669_vm2 = vweird.f32 %v1809_v16 }
 0x65d   :  { %v2676_v19 = vor.u32 1.1754944e-38, %v2675_v37  ;;  %vm2674_vm4 = vcmp.eq.f32.partialorder %v2673_v7, 8.507059e+37 }
 0x65e   :  { %2839 = vst.msk [vmem:[%s4919_s4 + $0x1b0] sm:$0xff] %vm2784_vm6, %v2648_v3  ;;  %v2652_v39 = vmul.f32 %v3212_v56, %v2651_v9 }
 0x660   :  { %v2653_v31 = vadd.f32 %v3212_v56, %v2652_v39 }
 0x661   :  { %v3214_v26 = vpop.eup %3213 }
 0x662   :  { %v2657_v33 = vsel %vm2656_vm15, %v3212_v56, %v2653_v31  ;;  %v1811_v40 = vpop.xlane.xlu1 %1810  ;;  %v2665_v35 = vmul.f32 %v3214_v26, %v1809_v16  ;;  %vm2670_vm1 = vweird.f32 %v3214_v26 }
 0x663   :  { %v2662_v13 = vsel %vm2659_vm0, %v2661_v22, %v2657_v33  ;;  %3215 = vrcp.f32 %v1811_v40  ;;  %v1815_v59 = vpop.xlane.xlu0 %1814  ;;  %vm2671_vm3 = vmor %vm2669_vm2, %vm2670_vm1  ;;  %v2688_v43 = vand.u32 2147483647, %v1811_v40  ;;  %v2690_v49 = vand.u32 2147483648, %v1811_v40 }
 0x664   :  { %v2663_v18 = vmul.f32 %v4729_v2, %v2662_v13  ;;  %v2666_v11 = vsub.f32 1.0, %v2665_v35  ;;  %3217 = vrcp.f32 %v1815_v59  ;;  %v2718_v29 = vand.u32 2147483647, %v1815_v59 }
 0x665   :  { %v2720_v23 = vand.u32 2147483648, %v1815_v59  ;;  %vm2684_vm7 = vweird.f32 %v1811_v40  ;;  %vm2714_vm8 = vweird.f32 %v1815_v59  ;;  %vm2689_vm9 = vcmp.eq.f32.partialorder %v2688_v43, 8.507059e+37 }
 0x666   :  { %2840 = vst.msk [vmem:[%s4919_s4 + $0x1b8] sm:$0xff] %vm2784_vm6, %v2663_v18  ;;  %v2667_v63 = vmul.f32 %v3214_v26, %v2666_v11  ;;  %vm4858_vm12 = vcmp.eq.f32.partialorder %v2718_v29, 8.507059e+37 }
 0x667   :  { %v2721_v58 = vor.u32 1.1754944e-38, %v2720_v23 }
 0x668   :  { %v2668_v12 = vadd.f32 %v3214_v26, %v2667_v63 }
 0x669   :  { %v3216_v60 = vpop.eup %3215 }
 0x66a   :  { %v4847_v14 = vpop.xlane.xlu2 %1812  ;;  %v2680_v44 = vmul.f32 %v3216_v60, %v1811_v40  ;;  %v3218_v42 = vpop.eup %3217  ;;  %v2672_v0 = vsel %vm2671_vm3, %v3214_v26, %v2668_v12  ;;  %vm2685_vm5 = vweird.f32 %v3216_v60 }
 0x66b   :  { %3219 = vrcp.f32 %v4847_v14  ;;  %v4850_v2 = vpop.xlane.xlu1 %1816  ;;  %v2677_v17 = vsel %vm2674_vm4, %v2676_v19, %v2672_v0  ;;  %v2710_v36 = vmul.f32 %v3218_v42, %v1815_v59  ;;  %vm2715_vm10 = vweird.f32 %v3218_v42  ;;  %vm2686_vm11 = vmor %vm2684_vm7, %vm2685_vm5 }
 0x66c   :  { %3221 = vrcp.f32 %v4850_v2  ;;  %v2681_v6 = vsub.f32 1.0, %v2680_v44  ;;  %v2678_v61 = vmul.f32 %v4739_v24, %v2677_v17  ;;  %v2691_v24 = vor.u32 1.1754944e-38, %v2690_v49  ;;  %vm2716_vm13 = vmor %vm2714_vm8, %vm2715_vm10 }
 0x66d   :  { %v2711_v57 = vsub.f32 1.0, %v2710_v36  ;;  %v2703_v25 = vand.u32 2147483647, %v4847_v14  ;;  %v2705_v56 = vand.u32 2147483648, %v4847_v14  ;;  %v2735_v52 = vand.u32 2147483648, %v4850_v2 }
 0x66e   :  { %v2682_v54 = vmul.f32 %v3216_v60, %v2681_v6  ;;  %2841 = vst.msk [vmem:[%s4919_s4 + $0x1c0] sm:$0xff] %vm2784_vm6, %v2678_v61  ;;  %vm2699_vm0 = vweird.f32 %v4847_v14  ;;  %vm2729_vm2 = vweird.f32 %v4850_v2 }
 0x66f   :  { %v2712_v10 = vmul.f32 %v3218_v42, %v2711_v57  ;;  %v2706_v31 = vor.u32 1.1754944e-38, %v2705_v56  ;;  %vm2704_vm3 = vcmp.eq.f32.partialorder %v2703_v25, 8.507059e+37 }
 0x670   :  { %v2683_v62 = vadd.f32 %v3216_v60, %v2682_v54 }
 0x671   :  { %v3220_v34 = vpop.eup %3219  ;;  %v2713_v47 = vadd.f32 %v3218_v42, %v2712_v10 }
 0x672   :  { %v3222_v51 = vpop.eup %3221  ;;  %v2695_v38 = vmul.f32 %v3220_v34, %v4847_v14  ;;  %v4863_v27 = vpop.xlane.xlu2 %1818  ;;  %v2687_v53 = vsel %vm2686_vm11, %v3216_v60, %v2683_v62  ;;  %vm2700_vm14 = vweird.f32 %v3220_v34 }
 0x673   :  { %v2725_v45 = vmul.f32 %v3222_v51, %v4850_v2  ;;  %v2692_v48 = vsel %vm2689_vm9, %v2691_v24, %v2687_v53  ;;  %3223 = vrcp.f32 %v4863_v27  ;;  %v2717_v55 = vsel %vm2716_vm13, %v3218_v42, %v2713_v47  ;;  %vm2701_vm1 = vmor %vm2699_vm0, %vm2700_vm14 }
 0x674   :  { %v2696_v8 = vsub.f32 1.0, %v2695_v38  ;;  %v2693_v28 = vmul.f32 %v4749_v5, %v2692_v48  ;;  %v2722_v3 = vsel %vm4858_vm12, %v2721_v58, %v2717_v55  ;;  %vm2730_vm15 = vweird.f32 %v3222_v51 }
 0x675   :  { %v2726_v32 = vsub.f32 1.0, %v2725_v45  ;;  %v2723_v4 = vmul.f32 %v4751_v21, %v2722_v3  ;;  %v2733_v5 = vand.u32 2147483647, %v4850_v2  ;;  %vm2731_vm4 = vmor %vm2729_vm2, %vm2730_vm15  ;;  %v2736_v21 = vor.u32 1.1754944e-38, %v2735_v52 }
 0x676   :  { %v1821_v16 = vpop.xlane.xlu0 %1820  ;;  %v2697_v9 = vmul.f32 %v3220_v34, %v2696_v8  ;;  %2842 = vst.msk [vmem:[%s4919_s4 + $0x1c8] sm:$0xff] %vm2784_vm6, %v2693_v28  ;;  %v2748_v60 = vand.u32 2147483647, %v4863_v27  ;;  %v2750_v12 = vand.u32 2147483648, %v4863_v27  ;;  %vm2744_vm8 = vweird.f32 %v4863_v27 }
 0x677   :  { %3225 = vrcp.f32 %v1821_v16  ;;  %v2727_v39 = vmul.f32 %v3222_v51, %v2726_v32  ;;  %2844 = vst.msk [vmem:[%s4919_s4 + $0x1d8] sm:$0xff] %vm2784_vm6, %v2723_v4  ;;  %vm2734_vm5 = vcmp.eq.f32.partialorder %v2733_v5, 8.507059e+37  ;;  %v2765_v19 = vand.u32 2147483648, %v1821_v16 }
 0x678   :  { %v2698_v30 = vadd.f32 %v3220_v34, %v2697_v9  ;;  %v2763_v42 = vand.u32 2147483647, %v1821_v16  ;;  %v2751_v0 = vor.u32 1.1754944e-38, %v2750_v12  ;;  %vm2749_vm11 = vcmp.eq.f32.partialorder %v2748_v60, 8.507059e+37 }
 0x679   :  { %v2728_v22 = vadd.f32 %v3222_v51, %v2727_v39  ;;  %v3224_v26 = vpop.eup %3223  ;;  %vm2759_vm12 = vweird.f32 %v1821_v16  ;;  %v2766_v36 = vor.u32 1.1754944e-38, %v2765_v19 }
 0x67a   :  { %v2702_v33 = vsel %vm2701_vm1, %v3220_v34, %v2698_v30  ;;  %v2740_v35 = vmul.f32 %v3224_v26, %v4863_v27  ;;  %vm2745_vm7 = vweird.f32 %v3224_v26  ;;  %vm2764_vm14 = vcmp.eq.f32.partialorder %v2763_v42, 8.507059e+37 }
 0x67b   :  { %v2707_v40 = vsel %vm2704_vm3, %v2706_v31, %v2702_v33  ;;  %v2732_v13 = vsel %vm2731_vm4, %v3222_v51, %v2728_v22  ;;  %vm2746_vm10 = vmor %vm2744_vm8, %vm2745_vm7 }
 0x67c   :  { %v2708_v18 = vmul.f32 %v4761_v41, %v2707_v40  ;;  %v2737_v11 = vsel %vm2734_vm5, %v2736_v21, %v2732_v13  ;;  %v2741_v63 = vsub.f32 1.0, %v2740_v35 }
 0x67d   :  { %v3226_v59 = vpop.eup %3225  ;;  %v2738_v37 = vmul.f32 %v4763_v46, %v2737_v11 }
 0x67e   :  { %v2755_v7 = vmul.f32 %v3226_v59, %v1821_v16  ;;  %2843 = vst.msk [vmem:[%s4919_s4 + $0x1d0] sm:$0xff] %vm2784_vm6, %v2708_v18  ;;  %v1823_v14 = vpop.xlane.xlu1 %1822  ;;  %v2742_v41 = vmul.f32 %v3224_v26, %v2741_v63  ;;  %vm2760_vm9 = vweird.f32 %v3226_v59 }
 0x67f   :  { %2845 = vst.msk [vmem:[%s4919_s4 + $0x1e0] sm:$0xff] %vm2784_vm6, %v2738_v37  ;;  %3227 = vrcp.f32 %v1823_v14  ;;  %vm2761_vm13 = vmor %vm2759_vm12, %vm2760_vm9  ;;  %v2780_v62 = vand.u32 2147483648, %v1823_v14  ;;  %vm2774_vm0 = vweird.f32 %v1823_v14 }
 0x680   :  { %v2756_v46 = vsub.f32 1.0, %v2755_v7  ;;  %v2743_v44 = vadd.f32 %v3224_v26, %v2742_v41 }
 0x681   :  { %v2781_v24 = vor.u32 1.1754944e-38, %v2780_v62 }
 0x682   :  { %v2757_v2 = vmul.f32 %v3226_v59, %v2756_v46  ;;  %v2747_v17 = vsel %vm2746_vm10, %v3224_v26, %v2743_v44 }
 0x683   :  { %v2752_v43 = vsel %vm2749_vm11, %v2751_v0, %v2747_v17 }
 0x684   :  { %v2758_v6 = vadd.f32 %v3226_v59, %v2757_v2  ;;  %v2753_v49 = vmul.f32 %v4772_v1, %v2752_v43  ;;  %v2778_v1 = vand.u32 2147483647, %v1823_v14 }
 0x685   :  { %v3228_v61 = vpop.eup %3227 }
 0x686   :  { %v2762_v29 = vsel %vm2761_vm13, %v3226_v59, %v2758_v6  ;;  %v2770_v54 = vmul.f32 %v3228_v61, %v1823_v14  ;;  %2846 = vst.msk [vmem:[%s4919_s4 + $0x1e8] sm:$0xff] %vm2784_vm6, %v2753_v49  ;;  %vm2775_vm15 = vweird.f32 %v3228_v61  ;;  %vm2779_vm2 = vcmp.eq.f32.partialorder %v2778_v1, 8.507059e+37 }
 0x687   :  { %v2767_v23 = vsel %vm2764_vm14, %v2766_v36, %v2762_v29  ;;  %vm2776_vm1 = vmor %vm2774_vm0, %vm2775_vm15 }
 0x688   :  { %v2768_v57 = vmul.f32 %v4776_v15, %v2767_v23  ;;  %v2771_v34 = vsub.f32 1.0, %v2770_v54 }
 0x68a   :  { %2847 = vst.msk [vmem:[%s4919_s4 + $0x1f0] sm:$0xff] %vm2784_vm6, %v2768_v57  ;;  %v2772_v10 = vmul.f32 %v3228_v61, %v2771_v34 }
 0x68c   :  { %v2773_v51 = vadd.f32 %v3228_v61, %v2772_v10 }
 0x68e   :  { %v2777_v50 = vsel %vm2776_vm1, %v3228_v61, %v2773_v51 }
 0x68f   :  { %v2782_v58 = vsel %vm2779_vm2, %v2781_v24, %v2777_v50 }
 0x690   :  { %v2783_v38 = vmul.f32 %v4779_v20, %v2782_v58 }
 0x692   :  { %2848 = vst.msk [vmem:[%s4919_s4 + $0x1f8] sm:$0xff] %vm2784_vm6, %v2783_v38 }

</bundles_post_ra>
